<compile_context>
chip_gen: v5e
topology: v5e:2x2
jax: 0.10.0
libtpu: 0.0.40
codegen_flags: <defaults>
</compile_context>

<pallas_src>
import jax
import jax.numpy as jnp
from jax.experimental import pallas as pl
from jax.experimental.pallas import tpu as pltpu

KH = KW = 5
CIN, COUT = 3, 6
H_IN = W_IN = 32
HP = WP = 14                     # pooled spatial size (28 conv output / 2)
SPATIAL = HP * WP                # 196  (lane-dense axis, >= 128)
FLAT = COUT * SPATIAL            # 1176 (PyTorch flatten length)
H1, H2, H3 = 120, 84, 10

COUT_PAD = 8                     # conv out channels padded to sublane multiple
TAP = KH * KW * CIN              # 75 conv taps
BIAS_TAP = TAP                   # patch row 75 is constant 1.0 (folds conv bias)
TAP_PAD = 80                     # 75 taps + bias tap, padded to sublane multiple
H1P = H2P = H3P = 128            # MLP dims padded to full 128-lane width
B_TILE = 8                       # images per grid step (batch tile)


# ---------------------------------------------------------------------------
# Single fused kernel: conv + bias + maxpool + ReLU + flatten + fc1/fc2/fc3
# ---------------------------------------------------------------------------
def fused_net_kernel(p_ref, wc_ref, w1_ref, b1_ref, w2_ref, b2_ref,
                     w3_ref, b3_ref, o_ref, flat_ref):
    # p_ref  : (B_TILE, 4, TAP_PAD, SPATIAL) bf16  phase-im2col patches
    # wc_ref : (COUT_PAD, TAP_PAD)           bf16  conv weight (+bias column 75)
    # w1_ref : (COUT, SPATIAL, H1P)          bf16  fc1 weight split per conv channel
    # b*_ref : (1, H*P)                      f32   padded biases
    # o_ref  : (B_TILE, H3P)                 f32   padded logits
    # flat_ref (scratch): (COUT, B_TILE, SPATIAL) f32 pooled activations
    wc = wc_ref[...]                                        # (8, 80)

    for b in range(B_TILE):
        # conv + bias for each of the 4 pool phases: one MXU matmul per phase,
        # 196-wide lane dim; pool == elementwise max over phases.
        z = jnp.dot(wc, p_ref[b, 0], preferred_element_type=jnp.float32)
        for ph in range(1, 4):
            z = jnp.maximum(
                z, jnp.dot(wc, p_ref[b, ph], preferred_element_type=jnp.float32))
        act = jnp.maximum(z, 0.0)                           # (COUT_PAD, SPATIAL)
        # flatten in PyTorch (C, H, W) order: aligned single-row stores only.
        for c in range(COUT):
            flat_ref[c, b:b + 1, :] = act[c:c + 1, :]

    # fc1 as a sum of per-channel (B,196) @ (196,128) matmuls (no relayout).
    h = jnp.zeros((B_TILE, H1P), jnp.float32)
    for c in range(COUT):
        h = h + jnp.dot(flat_ref[c].astype(jnp.bfloat16), w1_ref[c],
                        preferred_element_type=jnp.float32)
    h = jnp.maximum(h + b1_ref[...], 0.0).astype(jnp.bfloat16)
    h = jnp.maximum(jnp.dot(h, w2_ref[...], preferred_element_type=jnp.float32)
                    + b2_ref[...], 0.0).astype(jnp.bfloat16)
    o_ref[...] = (jnp.dot(h, w3_ref[...], preferred_element_type=jnp.float32)
                  + b3_ref[...])


# ---------------------------------------------------------------------------
# Wrapper-side im2col over the 4 pool phases (directly from NCHW)
# ---------------------------------------------------------------------------
def _build_phase_patches(x_nchw):
    """(N,3,32,32) f32 -> (N, 4, TAP_PAD, SPATIAL) bf16.

    patches[n, 2*dh+dw, (kh*KW+kw)*CIN+ci, i*WP+j] = x[n, ci, 2i+dh+kh, 2j+dw+kw]
    row 75 is the constant 1.0 bias tap; rows 76..79 are zero padding.
    """
    n = x_nchw.shape[0]
    phases = []
    for dh in range(2):
        for dw in range(2):
            taps = []
            for kh in range(KH):
                for kw in range(KW):
                    h0, w0 = dh + kh, dw + kw
                    sl = jax.lax.slice(
                        x_nchw, (0, 0, h0, w0),
                        (n, CIN, h0 + 2 * (HP - 1) + 1, w0 + 2 * (WP - 1) + 1),
                        (1, 1, 2, 2))                       # (N, CIN, 14, 14)
                    taps.append(sl.reshape(n, CIN, SPATIAL))
            phases.append(jnp.stack(taps, axis=1).reshape(n, TAP, SPATIAL))
    p = jnp.stack(phases, axis=1)                           # (N, 4, 75, 196)
    ones = jnp.ones((n, 4, 1, SPATIAL), p.dtype)            # bias tap
    zeros = jnp.zeros((n, 4, TAP_PAD - TAP - 1, SPATIAL), p.dtype)
    return jnp.concatenate([p, ones, zeros], axis=2).astype(jnp.bfloat16)


def net_forward(x_nchw, params):
    wc, bc, w1, b1, w2, b2, w3, b3 = params
    n = x_nchw.shape[0]
    n_pad = ((n + B_TILE - 1) // B_TILE) * B_TILE
    if n_pad != n:
        x_nchw = jnp.pad(x_nchw, ((0, n_pad - n), (0, 0), (0, 0), (0, 0)))

    patches = _build_phase_patches(x_nchw)                  # (n_pad, 4, 80, 196)

    # conv weight (HWIO) -> (COUT_PAD, TAP_PAD); bias folded into the ones-tap column.
    w8 = jnp.zeros((COUT_PAD, TAP_PAD), jnp.float32)
    w8 = w8.at[:COUT, :TAP].set(wc.reshape(TAP, COUT).T)
    w8 = w8.at[:COUT, BIAS_TAP].set(bc)
    w8 = w8.astype(jnp.bfloat16)

    # MLP weights: zero-pad to 128-lane widths; fc1 split per conv channel so the
    # kernel never needs a sublane<->lane relayout of the activations.
    w1c = jnp.zeros((COUT, SPATIAL, H1P), jnp.float32)
    w1c = w1c.at[:, :, :H1].set(w1.reshape(COUT, SPATIAL, H1)).astype(jnp.bfloat16)
    b1p = jnp.zeros((1, H1P), jnp.float32).at[0, :H1].set(b1)
    w2p = jnp.zeros((H1P, H2P), jnp.float32).at[:H1, :H2].set(w2).astype(jnp.bfloat16)
    b2p = jnp.zeros((1, H2P), jnp.float32).at[0, :H2].set(b2)
    w3p = jnp.zeros((H2P, H3P), jnp.float32).at[:H2, :H3].set(w3).astype(jnp.bfloat16)
    b3p = jnp.zeros((1, H3P), jnp.float32).at[0, :H3].set(b3)

    out = pl.pallas_call(
        fused_net_kernel,
        out_shape=jax.ShapeDtypeStruct((n_pad, H3P), jnp.float32),
        grid=(n_pad // B_TILE,),
        in_specs=[
            pl.BlockSpec((B_TILE, 4, TAP_PAD, SPATIAL), lambda i: (i, 0, 0, 0)),
            pl.BlockSpec((COUT_PAD, TAP_PAD), lambda i: (0, 0)),
            pl.BlockSpec((COUT, SPATIAL, H1P), lambda i: (0, 0, 0)),
            pl.BlockSpec((1, H1P), lambda i: (0, 0)),
            pl.BlockSpec((H1P, H2P), lambda i: (0, 0)),
            pl.BlockSpec((1, H2P), lambda i: (0, 0)),
            pl.BlockSpec((H2P, H3P), lambda i: (0, 0)),
            pl.BlockSpec((1, H3P), lambda i: (0, 0)),
        ],
        out_specs=pl.BlockSpec((B_TILE, H3P), lambda i: (i, 0)),
        scratch_shapes=[pltpu.VMEM((COUT, B_TILE, SPATIAL), jnp.float32)],
        compiler_params=pltpu.CompilerParams(
            dimension_semantics=("parallel",)),
    )(patches, w8, w1c, b1p, w2p, b2p, w3p, b3p)

    return out[:n, :H3]


# ---------------------------------------------------------------------------
# Pure-JAX reference (verification only)
# ---------------------------------------------------------------------------
def reference_forward(x_nchw, params):
    wc, bc, w1, b1, w2, b2, w3, b3 = params
    x = jnp.transpose(x_nchw, (0, 2, 3, 1))
    conv = jax.lax.conv_general_dilated(
        x, wc, window_strides=(1, 1), padding="VALID",
        dimension_numbers=("NHWC", "HWIO", "NHWC"),
        precision=jax.lax.Precision.HIGHEST)
    conv = jnp.maximum(conv + bc[None, None, None, :], 0.0)
    n = conv.shape[0]
    pooled = conv.reshape(n, HP, 2, WP, 2, COUT).max(axis=(2, 4))
    flat = jnp.transpose(pooled, (0, 3, 1, 2)).reshape(n, FLAT)
    hi = jax.lax.Precision.HIGHEST
    h = jnp.maximum(jnp.dot(flat, w1, precision=hi) + b1, 0.0)
    h = jnp.maximum(jnp.dot(h, w2, precision=hi) + b2, 0.0)
    return jnp.dot(h, w3, precision=hi) + b3


# ---------------------------------------------------------------------------
# Deterministic parameter init (PyTorch-style U(-1/sqrt(fan_in), 1/sqrt(fan_in)))
# ---------------------------------------------------------------------------
def init_params(key):
    ks = jax.random.split(key, 8)

    def u(k, shape, fan_in):
        b = 1.0 / float(fan_in) ** 0.5
        return jax.random.uniform(k, shape, jnp.float32, -b, b)

    wc = u(ks[0], (KH, KW, CIN, COUT), KH * KW * CIN)   # HWIO conv weight
    bc = u(ks[1], (COUT,), KH * KW * CIN)
    w1 = u(ks[2], (FLAT, H1), FLAT)                     # stored as (in, out)
    b1 = u(ks[3], (H1,), FLAT)
    w2 = u(ks[4], (H1, H2), H1)
    b2 = u(ks[5], (H2,), H1)
    w3 = u(ks[6], (H2, H3), H2)
    b3 = u(ks[7], (H3,), H2)
    return (wc, bc, w1, b1, w2, b2, w3, b3)


if __name__ == "__main__":
    key = jax.random.PRNGKey(0)
    pkey, xkey = jax.random.split(key)
    params = init_params(pkey)
    x = jax.random.normal(xkey, (2, CIN, H_IN, W_IN), jnp.float32)  # NCHW

    out = jax.block_until_ready(jax.jit(net_forward)(x, params))
    assert out.shape == (2, H3) and out.dtype == jnp.float32

    ref = jax.block_until_ready(reference_forward(x, params))
    assert jnp.allclose(out, ref, atol=2e-2, rtol=2e-2), (
        f"max abs err {jnp.max(jnp.abs(out - ref))}")

    print("KERNEL_OK")
</pallas_src>

<mosaic_0001>
module attributes {stable_mosaic.version = 11 : i64} {
  func.func @fused_net_kernel(%arg0: i32, %arg1: memref<8x4x80x196xbf16, #tpu.memory_space<vmem>>, %arg2: memref<8x80xbf16, #tpu.memory_space<vmem>>, %arg3: memref<6x196x128xbf16, #tpu.memory_space<vmem>>, %arg4: memref<1x128xf32, #tpu.memory_space<vmem>>, %arg5: memref<128x128xbf16, #tpu.memory_space<vmem>>, %arg6: memref<1x128xf32, #tpu.memory_space<vmem>>, %arg7: memref<128x128xbf16, #tpu.memory_space<vmem>>, %arg8: memref<1x128xf32, #tpu.memory_space<vmem>>, %arg9: memref<8x128xf32, #tpu.memory_space<vmem>>, %arg10: memref<6x8x196xf32, #tpu.memory_space<vmem>>) attributes {dimension_semantics = [#tpu.dimension_semantics<parallel>], iteration_bounds = array<i64: 1>, scalar_prefetch = 0 : i64, scratch_operands = 1 : i64, tpu.core_type = #tpu.core_type<tc>, window_params = [{transform_indices = @transform_0, window_bounds = array<i64: 8, 4, 80, 196>}, {pipeline_mode = #tpu.pipeline_mode<synchronous>, transform_indices = @transform_1, window_bounds = array<i64: 8, 80>}, {pipeline_mode = #tpu.pipeline_mode<synchronous>, transform_indices = @transform_2, window_bounds = array<i64: 6, 196, 128>}, {pipeline_mode = #tpu.pipeline_mode<synchronous>, transform_indices = @transform_3, window_bounds = array<i64: 1, 128>}, {pipeline_mode = #tpu.pipeline_mode<synchronous>, transform_indices = @transform_4, window_bounds = array<i64: 128, 128>}, {pipeline_mode = #tpu.pipeline_mode<synchronous>, transform_indices = @transform_5, window_bounds = array<i64: 1, 128>}, {pipeline_mode = #tpu.pipeline_mode<synchronous>, transform_indices = @transform_6, window_bounds = array<i64: 128, 128>}, {pipeline_mode = #tpu.pipeline_mode<synchronous>, transform_indices = @transform_7, window_bounds = array<i64: 1, 128>}, {transform_indices = @transform_8, window_bounds = array<i64: 8, 128>}]} {
    %c0 = arith.constant 0 : index
    %c0_0 = arith.constant 0 : index
    %0 = vector.load %arg2[%c0, %c0_0] : memref<8x80xbf16, #tpu.memory_space<vmem>>, vector<8x80xbf16>
    %c0_1 = arith.constant 0 : index
    %c0_2 = arith.constant 0 : index
    %c0_3 = arith.constant 0 : index
    %c0_4 = arith.constant 0 : index
    %1 = vector.load %arg1[%c0_1, %c0_2, %c0_3, %c0_4] : memref<8x4x80x196xbf16, #tpu.memory_space<vmem>>, vector<1x1x80x196xbf16>
    %2 = vector.shape_cast %1 : vector<1x1x80x196xbf16> to vector<80x196xbf16>
    %cst = arith.constant dense<0.000000e+00> : vector<8x196xf32>
    %3 = tpu.matmul %0, %2, %cst {dimension_numbers = #tpu.dot_dimension_numbers<[1], [0], [0], [1], [0, 0, 1, 1], [], []>} : vector<8x80xbf16>, vector<80x196xbf16>, vector<8x196xf32> -> vector<8x196xf32>
    %c0_5 = arith.constant 0 : index
    %c1 = arith.constant 1 : index
    %c0_6 = arith.constant 0 : index
    %c0_7 = arith.constant 0 : index
    %4 = vector.load %arg1[%c0_5, %c1, %c0_6, %c0_7] : memref<8x4x80x196xbf16, #tpu.memory_space<vmem>>, vector<1x1x80x196xbf16>
    %5 = vector.shape_cast %4 : vector<1x1x80x196xbf16> to vector<80x196xbf16>
    %cst_8 = arith.constant dense<0.000000e+00> : vector<8x196xf32>
    %6 = tpu.matmul %0, %5, %cst_8 {dimension_numbers = #tpu.dot_dimension_numbers<[1], [0], [0], [1], [0, 0, 1, 1], [], []>} : vector<8x80xbf16>, vector<80x196xbf16>, vector<8x196xf32> -> vector<8x196xf32>
    %7 = arith.maximumf %3, %6 : vector<8x196xf32>
    %c0_9 = arith.constant 0 : index
    %c2 = arith.constant 2 : index
    %c0_10 = arith.constant 0 : index
    %c0_11 = arith.constant 0 : index
    %8 = vector.load %arg1[%c0_9, %c2, %c0_10, %c0_11] : memref<8x4x80x196xbf16, #tpu.memory_space<vmem>>, vector<1x1x80x196xbf16>
    %9 = vector.shape_cast %8 : vector<1x1x80x196xbf16> to vector<80x196xbf16>
    %cst_12 = arith.constant dense<0.000000e+00> : vector<8x196xf32>
    %10 = tpu.matmul %0, %9, %cst_12 {dimension_numbers = #tpu.dot_dimension_numbers<[1], [0], [0], [1], [0, 0, 1, 1], [], []>} : vector<8x80xbf16>, vector<80x196xbf16>, vector<8x196xf32> -> vector<8x196xf32>
    %11 = arith.maximumf %7, %10 : vector<8x196xf32>
    %c0_13 = arith.constant 0 : index
    %c3 = arith.constant 3 : index
    %c0_14 = arith.constant 0 : index
    %c0_15 = arith.constant 0 : index
    %12 = vector.load %arg1[%c0_13, %c3, %c0_14, %c0_15] : memref<8x4x80x196xbf16, #tpu.memory_space<vmem>>, vector<1x1x80x196xbf16>
    %13 = vector.shape_cast %12 : vector<1x1x80x196xbf16> to vector<80x196xbf16>
    %cst_16 = arith.constant dense<0.000000e+00> : vector<8x196xf32>
    %14 = tpu.matmul %0, %13, %cst_16 {dimension_numbers = #tpu.dot_dimension_numbers<[1], [0], [0], [1], [0, 0, 1, 1], [], []>} : vector<8x80xbf16>, vector<80x196xbf16>, vector<8x196xf32> -> vector<8x196xf32>
    %15 = arith.maximumf %11, %14 : vector<8x196xf32>
    %cst_17 = arith.constant 0.000000e+00 : f32
    %16 = vector.broadcast %cst_17 : f32 to vector<8x196xf32>
    %17 = arith.maximumf %15, %16 : vector<8x196xf32>
    %18 = vector.extract_strided_slice %17 {offsets = [0, 0], sizes = [1, 196], strides = [1, 1]} : vector<8x196xf32> to vector<1x196xf32>
    %c0_18 = arith.constant 0 : index
    %c0_19 = arith.constant 0 : index
    %c0_20 = arith.constant 0 : index
    %19 = vector.load %arg10[%c0_18, %c0_19, %c0_20] : memref<6x8x196xf32, #tpu.memory_space<vmem>>, vector<1x1x196xf32>
    %20 = vector.shape_cast %19 : vector<1x1x196xf32> to vector<1x196xf32>
    %21 = vector.shape_cast %18 : vector<1x196xf32> to vector<1x1x196xf32>
    tpu.vector_store %arg10[%c0_18, %c0_19, %c0_20], %21 {strides = array<i32>} : memref<6x8x196xf32, #tpu.memory_space<vmem>>, vector<1x1x196xf32>,
    %22 = vector.extract_strided_slice %17 {offsets = [1, 0], sizes = [1, 196], strides = [1, 1]} : vector<8x196xf32> to vector<1x196xf32>
    %c1_21 = arith.constant 1 : index
    %c0_22 = arith.constant 0 : index
    %c0_23 = arith.constant 0 : index
    %23 = vector.load %arg10[%c1_21, %c0_22, %c0_23] : memref<6x8x196xf32, #tpu.memory_space<vmem>>, vector<1x1x196xf32>
    %24 = vector.shape_cast %23 : vector<1x1x196xf32> to vector<1x196xf32>
    %25 = vector.shape_cast %22 : vector<1x196xf32> to vector<1x1x196xf32>
    tpu.vector_store %arg10[%c1_21, %c0_22, %c0_23], %25 {strides = array<i32>} : memref<6x8x196xf32, #tpu.memory_space<vmem>>, vector<1x1x196xf32>,
    %26 = vector.extract_strided_slice %17 {offsets = [2, 0], sizes = [1, 196], strides = [1, 1]} : vector<8x196xf32> to vector<1x196xf32>
    %c2_24 = arith.constant 2 : index
    %c0_25 = arith.constant 0 : index
    %c0_26 = arith.constant 0 : index
    %27 = vector.load %arg10[%c2_24, %c0_25, %c0_26] : memref<6x8x196xf32, #tpu.memory_space<vmem>>, vector<1x1x196xf32>
    %28 = vector.shape_cast %27 : vector<1x1x196xf32> to vector<1x196xf32>
    %29 = vector.shape_cast %26 : vector<1x196xf32> to vector<1x1x196xf32>
    tpu.vector_store %arg10[%c2_24, %c0_25, %c0_26], %29 {strides = array<i32>} : memref<6x8x196xf32, #tpu.memory_space<vmem>>, vector<1x1x196xf32>,
    %30 = vector.extract_strided_slice %17 {offsets = [3, 0], sizes = [1, 196], strides = [1, 1]} : vector<8x196xf32> to vector<1x196xf32>
    %c3_27 = arith.constant 3 : index
    %c0_28 = arith.constant 0 : index
    %c0_29 = arith.constant 0 : index
    %31 = vector.load %arg10[%c3_27, %c0_28, %c0_29] : memref<6x8x196xf32, #tpu.memory_space<vmem>>, vector<1x1x196xf32>
    %32 = vector.shape_cast %31 : vector<1x1x196xf32> to vector<1x196xf32>
    %33 = vector.shape_cast %30 : vector<1x196xf32> to vector<1x1x196xf32>
    tpu.vector_store %arg10[%c3_27, %c0_28, %c0_29], %33 {strides = array<i32>} : memref<6x8x196xf32, #tpu.memory_space<vmem>>, vector<1x1x196xf32>,
    %34 = vector.extract_strided_slice %17 {offsets = [4, 0], sizes = [1, 196], strides = [1, 1]} : vector<8x196xf32> to vector<1x196xf32>
    %c4 = arith.constant 4 : index
    %c0_30 = arith.constant 0 : index
    %c0_31 = arith.constant 0 : index
    %35 = vector.load %arg10[%c4, %c0_30, %c0_31] : memref<6x8x196xf32, #tpu.memory_space<vmem>>, vector<1x1x196xf32>
    %36 = vector.shape_cast %35 : vector<1x1x196xf32> to vector<1x196xf32>
    %37 = vector.shape_cast %34 : vector<1x196xf32> to vector<1x1x196xf32>
    tpu.vector_store %arg10[%c4, %c0_30, %c0_31], %37 {strides = array<i32>} : memref<6x8x196xf32, #tpu.memory_space<vmem>>, vector<1x1x196xf32>,
    %38 = vector.extract_strided_slice %17 {offsets = [5, 0], sizes = [1, 196], strides = [1, 1]} : vector<8x196xf32> to vector<1x196xf32>
    %c5 = arith.constant 5 : index
    %c0_32 = arith.constant 0 : index
    %c0_33 = arith.constant 0 : index
    %39 = vector.load %arg10[%c5, %c0_32, %c0_33] : memref<6x8x196xf32, #tpu.memory_space<vmem>>, vector<1x1x196xf32>
    %40 = vector.shape_cast %39 : vector<1x1x196xf32> to vector<1x196xf32>
    %41 = vector.shape_cast %38 : vector<1x196xf32> to vector<1x1x196xf32>
    tpu.vector_store %arg10[%c5, %c0_32, %c0_33], %41 {strides = array<i32>} : memref<6x8x196xf32, #tpu.memory_space<vmem>>, vector<1x1x196xf32>,
    %c1_34 = arith.constant 1 : index
    %c0_35 = arith.constant 0 : index
    %c0_36 = arith.constant 0 : index
    %c0_37 = arith.constant 0 : index
    %42 = vector.load %arg1[%c1_34, %c0_35, %c0_36, %c0_37] : memref<8x4x80x196xbf16, #tpu.memory_space<vmem>>, vector<1x1x80x196xbf16>
    %43 = vector.shape_cast %42 : vector<1x1x80x196xbf16> to vector<80x196xbf16>
    %cst_38 = arith.constant dense<0.000000e+00> : vector<8x196xf32>
    %44 = tpu.matmul %0, %43, %cst_38 {dimension_numbers = #tpu.dot_dimension_numbers<[1], [0], [0], [1], [0, 0, 1, 1], [], []>} : vector<8x80xbf16>, vector<80x196xbf16>, vector<8x196xf32> -> vector<8x196xf32>
    %c1_39 = arith.constant 1 : index
    %c1_40 = arith.constant 1 : index
    %c0_41 = arith.constant 0 : index
    %c0_42 = arith.constant 0 : index
    %45 = vector.load %arg1[%c1_39, %c1_40, %c0_41, %c0_42] : memref<8x4x80x196xbf16, #tpu.memory_space<vmem>>, vector<1x1x80x196xbf16>
    %46 = vector.shape_cast %45 : vector<1x1x80x196xbf16> to vector<80x196xbf16>
    %cst_43 = arith.constant dense<0.000000e+00> : vector<8x196xf32>
    %47 = tpu.matmul %0, %46, %cst_43 {dimension_numbers = #tpu.dot_dimension_numbers<[1], [0], [0], [1], [0, 0, 1, 1], [], []>} : vector<8x80xbf16>, vector<80x196xbf16>, vector<8x196xf32> -> vector<8x196xf32>
    %48 = arith.maximumf %44, %47 : vector<8x196xf32>
    %c1_44 = arith.constant 1 : index
    %c2_45 = arith.constant 2 : index
    %c0_46 = arith.constant 0 : index
    %c0_47 = arith.constant 0 : index
    %49 = vector.load %arg1[%c1_44, %c2_45, %c0_46, %c0_47] : memref<8x4x80x196xbf16, #tpu.memory_space<vmem>>, vector<1x1x80x196xbf16>
    %50 = vector.shape_cast %49 : vector<1x1x80x196xbf16> to vector<80x196xbf16>
    %cst_48 = arith.constant dense<0.000000e+00> : vector<8x196xf32>
    %51 = tpu.matmul %0, %50, %cst_48 {dimension_numbers = #tpu.dot_dimension_numbers<[1], [0], [0], [1], [0, 0, 1, 1], [], []>} : vector<8x80xbf16>, vector<80x196xbf16>, vector<8x196xf32> -> vector<8x196xf32>
    %52 = arith.maximumf %48, %51 : vector<8x196xf32>
    %c1_49 = arith.constant 1 : index
    %c3_50 = arith.constant 3 : index
    %c0_51 = arith.constant 0 : index
    %c0_52 = arith.constant 0 : index
    %53 = vector.load %arg1[%c1_49, %c3_50, %c0_51, %c0_52] : memref<8x4x80x196xbf16, #tpu.memory_space<vmem>>, vector<1x1x80x196xbf16>
    %54 = vector.shape_cast %53 : vector<1x1x80x196xbf16> to vector<80x196xbf16>
    %cst_53 = arith.constant dense<0.000000e+00> : vector<8x196xf32>
    %55 = tpu.matmul %0, %54, %cst_53 {dimension_numbers = #tpu.dot_dimension_numbers<[1], [0], [0], [1], [0, 0, 1, 1], [], []>} : vector<8x80xbf16>, vector<80x196xbf16>, vector<8x196xf32> -> vector<8x196xf32>
    %56 = arith.maximumf %52, %55 : vector<8x196xf32>
    %cst_54 = arith.constant 0.000000e+00 : f32
    %57 = vector.broadcast %cst_54 : f32 to vector<8x196xf32>
    %58 = arith.maximumf %56, %57 : vector<8x196xf32>
    %59 = vector.extract_strided_slice %58 {offsets = [0, 0], sizes = [1, 196], strides = [1, 1]} : vector<8x196xf32> to vector<1x196xf32>
    %c0_55 = arith.constant 0 : index
    %c1_56 = arith.constant 1 : index
    %c0_57 = arith.constant 0 : index
    %60 = vector.load %arg10[%c0_55, %c1_56, %c0_57] : memref<6x8x196xf32, #tpu.memory_space<vmem>>, vector<1x1x196xf32>
    %61 = vector.shape_cast %60 : vector<1x1x196xf32> to vector<1x196xf32>
    %62 = vector.shape_cast %59 : vector<1x196xf32> to vector<1x1x196xf32>
    tpu.vector_store %arg10[%c0_55, %c1_56, %c0_57], %62 {strides = array<i32>} : memref<6x8x196xf32, #tpu.memory_space<vmem>>, vector<1x1x196xf32>,
    %63 = vector.extract_strided_slice %58 {offsets = [1, 0], sizes = [1, 196], strides = [1, 1]} : vector<8x196xf32> to vector<1x196xf32>
    %c1_58 = arith.constant 1 : index
    %c1_59 = arith.constant 1 : index
    %c0_60 = arith.constant 0 : index
    %64 = vector.load %arg10[%c1_58, %c1_59, %c0_60] : memref<6x8x196xf32, #tpu.memory_space<vmem>>, vector<1x1x196xf32>
    %65 = vector.shape_cast %64 : vector<1x1x196xf32> to vector<1x196xf32>
    %66 = vector.shape_cast %63 : vector<1x196xf32> to vector<1x1x196xf32>
    tpu.vector_store %arg10[%c1_58, %c1_59, %c0_60], %66 {strides = array<i32>} : memref<6x8x196xf32, #tpu.memory_space<vmem>>, vector<1x1x196xf32>,
    %67 = vector.extract_strided_slice %58 {offsets = [2, 0], sizes = [1, 196], strides = [1, 1]} : vector<8x196xf32> to vector<1x196xf32>
    %c2_61 = arith.constant 2 : index
    %c1_62 = arith.constant 1 : index
    %c0_63 = arith.constant 0 : index
    %68 = vector.load %arg10[%c2_61, %c1_62, %c0_63] : memref<6x8x196xf32, #tpu.memory_space<vmem>>, vector<1x1x196xf32>
    %69 = vector.shape_cast %68 : vector<1x1x196xf32> to vector<1x196xf32>
    %70 = vector.shape_cast %67 : vector<1x196xf32> to vector<1x1x196xf32>
    tpu.vector_store %arg10[%c2_61, %c1_62, %c0_63], %70 {strides = array<i32>} : memref<6x8x196xf32, #tpu.memory_space<vmem>>, vector<1x1x196xf32>,
    %71 = vector.extract_strided_slice %58 {offsets = [3, 0], sizes = [1, 196], strides = [1, 1]} : vector<8x196xf32> to vector<1x196xf32>
    %c3_64 = arith.constant 3 : index
    %c1_65 = arith.constant 1 : index
    %c0_66 = arith.constant 0 : index
    %72 = vector.load %arg10[%c3_64, %c1_65, %c0_66] : memref<6x8x196xf32, #tpu.memory_space<vmem>>, vector<1x1x196xf32>
    %73 = vector.shape_cast %72 : vector<1x1x196xf32> to vector<1x196xf32>
    %74 = vector.shape_cast %71 : vector<1x196xf32> to vector<1x1x196xf32>
    tpu.vector_store %arg10[%c3_64, %c1_65, %c0_66], %74 {strides = array<i32>} : memref<6x8x196xf32, #tpu.memory_space<vmem>>, vector<1x1x196xf32>,
    %75 = vector.extract_strided_slice %58 {offsets = [4, 0], sizes = [1, 196], strides = [1, 1]} : vector<8x196xf32> to vector<1x196xf32>
    %c4_67 = arith.constant 4 : index
    %c1_68 = arith.constant 1 : index
    %c0_69 = arith.constant 0 : index
    %76 = vector.load %arg10[%c4_67, %c1_68, %c0_69] : memref<6x8x196xf32, #tpu.memory_space<vmem>>, vector<1x1x196xf32>
    %77 = vector.shape_cast %76 : vector<1x1x196xf32> to vector<1x196xf32>
    %78 = vector.shape_cast %75 : vector<1x196xf32> to vector<1x1x196xf32>
    tpu.vector_store %arg10[%c4_67, %c1_68, %c0_69], %78 {strides = array<i32>} : memref<6x8x196xf32, #tpu.memory_space<vmem>>, vector<1x1x196xf32>,
    %79 = vector.extract_strided_slice %58 {offsets = [5, 0], sizes = [1, 196], strides = [1, 1]} : vector<8x196xf32> to vector<1x196xf32>
    %c5_70 = arith.constant 5 : index
    %c1_71 = arith.constant 1 : index
    %c0_72 = arith.constant 0 : index
    %80 = vector.load %arg10[%c5_70, %c1_71, %c0_72] : memref<6x8x196xf32, #tpu.memory_space<vmem>>, vector<1x1x196xf32>
    %81 = vector.shape_cast %80 : vector<1x1x196xf32> to vector<1x196xf32>
    %82 = vector.shape_cast %79 : vector<1x196xf32> to vector<1x1x196xf32>
    tpu.vector_store %arg10[%c5_70, %c1_71, %c0_72], %82 {strides = array<i32>} : memref<6x8x196xf32, #tpu.memory_space<vmem>>, vector<1x1x196xf32>,
    %c2_73 = arith.constant 2 : index
    %c0_74 = arith.constant 0 : index
    %c0_75 = arith.constant 0 : index
    %c0_76 = arith.constant 0 : index
    %83 = vector.load %arg1[%c2_73, %c0_74, %c0_75, %c0_76] : memref<8x4x80x196xbf16, #tpu.memory_space<vmem>>, vector<1x1x80x196xbf16>
    %84 = vector.shape_cast %83 : vector<1x1x80x196xbf16> to vector<80x196xbf16>
    %cst_77 = arith.constant dense<0.000000e+00> : vector<8x196xf32>
    %85 = tpu.matmul %0, %84, %cst_77 {dimension_numbers = #tpu.dot_dimension_numbers<[1], [0], [0], [1], [0, 0, 1, 1], [], []>} : vector<8x80xbf16>, vector<80x196xbf16>, vector<8x196xf32> -> vector<8x196xf32>
    %c2_78 = arith.constant 2 : index
    %c1_79 = arith.constant 1 : index
    %c0_80 = arith.constant 0 : index
    %c0_81 = arith.constant 0 : index
    %86 = vector.load %arg1[%c2_78, %c1_79, %c0_80, %c0_81] : memref<8x4x80x196xbf16, #tpu.memory_space<vmem>>, vector<1x1x80x196xbf16>
    %87 = vector.shape_cast %86 : vector<1x1x80x196xbf16> to vector<80x196xbf16>
    %cst_82 = arith.constant dense<0.000000e+00> : vector<8x196xf32>
    %88 = tpu.matmul %0, %87, %cst_82 {dimension_numbers = #tpu.dot_dimension_numbers<[1], [0], [0], [1], [0, 0, 1, 1], [], []>} : vector<8x80xbf16>, vector<80x196xbf16>, vector<8x196xf32> -> vector<8x196xf32>
    %89 = arith.maximumf %85, %88 : vector<8x196xf32>
    %c2_83 = arith.constant 2 : index
    %c2_84 = arith.constant 2 : index
    %c0_85 = arith.constant 0 : index
    %c0_86 = arith.constant 0 : index
    %90 = vector.load %arg1[%c2_83, %c2_84, %c0_85, %c0_86] : memref<8x4x80x196xbf16, #tpu.memory_space<vmem>>, vector<1x1x80x196xbf16>
    %91 = vector.shape_cast %90 : vector<1x1x80x196xbf16> to vector<80x196xbf16>
    %cst_87 = arith.constant dense<0.000000e+00> : vector<8x196xf32>
    %92 = tpu.matmul %0, %91, %cst_87 {dimension_numbers = #tpu.dot_dimension_numbers<[1], [0], [0], [1], [0, 0, 1, 1], [], []>} : vector<8x80xbf16>, vector<80x196xbf16>, vector<8x196xf32> -> vector<8x196xf32>
    %93 = arith.maximumf %89, %92 : vector<8x196xf32>
    %c2_88 = arith.constant 2 : index
    %c3_89 = arith.constant 3 : index
    %c0_90 = arith.constant 0 : index
    %c0_91 = arith.constant 0 : index
    %94 = vector.load %arg1[%c2_88, %c3_89, %c0_90, %c0_91] : memref<8x4x80x196xbf16, #tpu.memory_space<vmem>>, vector<1x1x80x196xbf16>
    %95 = vector.shape_cast %94 : vector<1x1x80x196xbf16> to vector<80x196xbf16>
    %cst_92 = arith.constant dense<0.000000e+00> : vector<8x196xf32>
    %96 = tpu.matmul %0, %95, %cst_92 {dimension_numbers = #tpu.dot_dimension_numbers<[1], [0], [0], [1], [0, 0, 1, 1], [], []>} : vector<8x80xbf16>, vector<80x196xbf16>, vector<8x196xf32> -> vector<8x196xf32>
    %97 = arith.maximumf %93, %96 : vector<8x196xf32>
    %cst_93 = arith.constant 0.000000e+00 : f32
    %98 = vector.broadcast %cst_93 : f32 to vector<8x196xf32>
    %99 = arith.maximumf %97, %98 : vector<8x196xf32>
    %100 = vector.extract_strided_slice %99 {offsets = [0, 0], sizes = [1, 196], strides = [1, 1]} : vector<8x196xf32> to vector<1x196xf32>
    %c0_94 = arith.constant 0 : index
    %c2_95 = arith.constant 2 : index
    %c0_96 = arith.constant 0 : index
    %101 = vector.load %arg10[%c0_94, %c2_95, %c0_96] : memref<6x8x196xf32, #tpu.memory_space<vmem>>, vector<1x1x196xf32>
    %102 = vector.shape_cast %101 : vector<1x1x196xf32> to vector<1x196xf32>
    %103 = vector.shape_cast %100 : vector<1x196xf32> to vector<1x1x196xf32>
    tpu.vector_store %arg10[%c0_94, %c2_95, %c0_96], %103 {strides = array<i32>} : memref<6x8x196xf32, #tpu.memory_space<vmem>>, vector<1x1x196xf32>,
    %104 = vector.extract_strided_slice %99 {offsets = [1, 0], sizes = [1, 196], strides = [1, 1]} : vector<8x196xf32> to vector<1x196xf32>
    %c1_97 = arith.constant 1 : index
    %c2_98 = arith.constant 2 : index
    %c0_99 = arith.constant 0 : index
    %105 = vector.load %arg10[%c1_97, %c2_98, %c0_99] : memref<6x8x196xf32, #tpu.memory_space<vmem>>, vector<1x1x196xf32>
    %106 = vector.shape_cast %105 : vector<1x1x196xf32> to vector<1x196xf32>
    %107 = vector.shape_cast %104 : vector<1x196xf32> to vector<1x1x196xf32>
    tpu.vector_store %arg10[%c1_97, %c2_98, %c0_99], %107 {strides = array<i32>} : memref<6x8x196xf32, #tpu.memory_space<vmem>>, vector<1x1x196xf32>,
    %108 = vector.extract_strided_slice %99 {offsets = [2, 0], sizes = [1, 196], strides = [1, 1]} : vector<8x196xf32> to vector<1x196xf32>
    %c2_100 = arith.constant 2 : index
    %c2_101 = arith.constant 2 : index
    %c0_102 = arith.constant 0 : index
    %109 = vector.load %arg10[%c2_100, %c2_101, %c0_102] : memref<6x8x196xf32, #tpu.memory_space<vmem>>, vector<1x1x196xf32>
    %110 = vector.shape_cast %109 : vector<1x1x196xf32> to vector<1x196xf32>
    %111 = vector.shape_cast %108 : vector<1x196xf32> to vector<1x1x196xf32>
    tpu.vector_store %arg10[%c2_100, %c2_101, %c0_102], %111 {strides = array<i32>} : memref<6x8x196xf32, #tpu.memory_space<vmem>>, vector<1x1x196xf32>,
    %112 = vector.extract_strided_slice %99 {offsets = [3, 0], sizes = [1, 196], strides = [1, 1]} : vector<8x196xf32> to vector<1x196xf32>
    %c3_103 = arith.constant 3 : index
    %c2_104 = arith.constant 2 : index
    %c0_105 = arith.constant 0 : index
    %113 = vector.load %arg10[%c3_103, %c2_104, %c0_105] : memref<6x8x196xf32, #tpu.memory_space<vmem>>, vector<1x1x196xf32>
    %114 = vector.shape_cast %113 : vector<1x1x196xf32> to vector<1x196xf32>
    %115 = vector.shape_cast %112 : vector<1x196xf32> to vector<1x1x196xf32>
    tpu.vector_store %arg10[%c3_103, %c2_104, %c0_105], %115 {strides = array<i32>} : memref<6x8x196xf32, #tpu.memory_space<vmem>>, vector<1x1x196xf32>,
    %116 = vector.extract_strided_slice %99 {offsets = [4, 0], sizes = [1, 196], strides = [1, 1]} : vector<8x196xf32> to vector<1x196xf32>
    %c4_106 = arith.constant 4 : index
    %c2_107 = arith.constant 2 : index
    %c0_108 = arith.constant 0 : index
    %117 = vector.load %arg10[%c4_106, %c2_107, %c0_108] : memref<6x8x196xf32, #tpu.memory_space<vmem>>, vector<1x1x196xf32>
    %118 = vector.shape_cast %117 : vector<1x1x196xf32> to vector<1x196xf32>
    %119 = vector.shape_cast %116 : vector<1x196xf32> to vector<1x1x196xf32>
    tpu.vector_store %arg10[%c4_106, %c2_107, %c0_108], %119 {strides = array<i32>} : memref<6x8x196xf32, #tpu.memory_space<vmem>>, vector<1x1x196xf32>,
    %120 = vector.extract_strided_slice %99 {offsets = [5, 0], sizes = [1, 196], strides = [1, 1]} : vector<8x196xf32> to vector<1x196xf32>
    %c5_109 = arith.constant 5 : index
    %c2_110 = arith.constant 2 : index
    %c0_111 = arith.constant 0 : index
    %121 = vector.load %arg10[%c5_109, %c2_110, %c0_111] : memref<6x8x196xf32, #tpu.memory_space<vmem>>, vector<1x1x196xf32>
    %122 = vector.shape_cast %121 : vector<1x1x196xf32> to vector<1x196xf32>
    %123 = vector.shape_cast %120 : vector<1x196xf32> to vector<1x1x196xf32>
    tpu.vector_store %arg10[%c5_109, %c2_110, %c0_111], %123 {strides = array<i32>} : memref<6x8x196xf32, #tpu.memory_space<vmem>>, vector<1x1x196xf32>,
    %c3_112 = arith.constant 3 : index
    %c0_113 = arith.constant 0 : index
    %c0_114 = arith.constant 0 : index
    %c0_115 = arith.constant 0 : index
    %124 = vector.load %arg1[%c3_112, %c0_113, %c0_114, %c0_115] : memref<8x4x80x196xbf16, #tpu.memory_space<vmem>>, vector<1x1x80x196xbf16>
    %125 = vector.shape_cast %124 : vector<1x1x80x196xbf16> to vector<80x196xbf16>
    %cst_116 = arith.constant dense<0.000000e+00> : vector<8x196xf32>
    %126 = tpu.matmul %0, %125, %cst_116 {dimension_numbers = #tpu.dot_dimension_numbers<[1], [0], [0], [1], [0, 0, 1, 1], [], []>} : vector<8x80xbf16>, vector<80x196xbf16>, vector<8x196xf32> -> vector<8x196xf32>
    %c3_117 = arith.constant 3 : index
    %c1_118 = arith.constant 1 : index
    %c0_119 = arith.constant 0 : index
    %c0_120 = arith.constant 0 : index
    %127 = vector.load %arg1[%c3_117, %c1_118, %c0_119, %c0_120] : memref<8x4x80x196xbf16, #tpu.memory_space<vmem>>, vector<1x1x80x196xbf16>
    %128 = vector.shape_cast %127 : vector<1x1x80x196xbf16> to vector<80x196xbf16>
    %cst_121 = arith.constant dense<0.000000e+00> : vector<8x196xf32>
    %129 = tpu.matmul %0, %128, %cst_121 {dimension_numbers = #tpu.dot_dimension_numbers<[1], [0], [0], [1], [0, 0, 1, 1], [], []>} : vector<8x80xbf16>, vector<80x196xbf16>, vector<8x196xf32> -> vector<8x196xf32>
    %130 = arith.maximumf %126, %129 : vector<8x196xf32>
    %c3_122 = arith.constant 3 : index
    %c2_123 = arith.constant 2 : index
    %c0_124 = arith.constant 0 : index
    %c0_125 = arith.constant 0 : index
    %131 = vector.load %arg1[%c3_122, %c2_123, %c0_124, %c0_125] : memref<8x4x80x196xbf16, #tpu.memory_space<vmem>>, vector<1x1x80x196xbf16>
    %132 = vector.shape_cast %131 : vector<1x1x80x196xbf16> to vector<80x196xbf16>
    %cst_126 = arith.constant dense<0.000000e+00> : vector<8x196xf32>
    %133 = tpu.matmul %0, %132, %cst_126 {dimension_numbers = #tpu.dot_dimension_numbers<[1], [0], [0], [1], [0, 0, 1, 1], [], []>} : vector<8x80xbf16>, vector<80x196xbf16>, vector<8x196xf32> -> vector<8x196xf32>
    %134 = arith.maximumf %130, %133 : vector<8x196xf32>
    %c3_127 = arith.constant 3 : index
    %c3_128 = arith.constant 3 : index
    %c0_129 = arith.constant 0 : index
    %c0_130 = arith.constant 0 : index
    %135 = vector.load %arg1[%c3_127, %c3_128, %c0_129, %c0_130] : memref<8x4x80x196xbf16, #tpu.memory_space<vmem>>, vector<1x1x80x196xbf16>
    %136 = vector.shape_cast %135 : vector<1x1x80x196xbf16> to vector<80x196xbf16>
    %cst_131 = arith.constant dense<0.000000e+00> : vector<8x196xf32>
    %137 = tpu.matmul %0, %136, %cst_131 {dimension_numbers = #tpu.dot_dimension_numbers<[1], [0], [0], [1], [0, 0, 1, 1], [], []>} : vector<8x80xbf16>, vector<80x196xbf16>, vector<8x196xf32> -> vector<8x196xf32>
    %138 = arith.maximumf %134, %137 : vector<8x196xf32>
    %cst_132 = arith.constant 0.000000e+00 : f32
    %139 = vector.broadcast %cst_132 : f32 to vector<8x196xf32>
    %140 = arith.maximumf %138, %139 : vector<8x196xf32>
    %141 = vector.extract_strided_slice %140 {offsets = [0, 0], sizes = [1, 196], strides = [1, 1]} : vector<8x196xf32> to vector<1x196xf32>
    %c0_133 = arith.constant 0 : index
    %c3_134 = arith.constant 3 : index
    %c0_135 = arith.constant 0 : index
    %142 = vector.load %arg10[%c0_133, %c3_134, %c0_135] : memref<6x8x196xf32, #tpu.memory_space<vmem>>, vector<1x1x196xf32>
    %143 = vector.shape_cast %142 : vector<1x1x196xf32> to vector<1x196xf32>
    %144 = vector.shape_cast %141 : vector<1x196xf32> to vector<1x1x196xf32>
    tpu.vector_store %arg10[%c0_133, %c3_134, %c0_135], %144 {strides = array<i32>} : memref<6x8x196xf32, #tpu.memory_space<vmem>>, vector<1x1x196xf32>,
    %145 = vector.extract_strided_slice %140 {offsets = [1, 0], sizes = [1, 196], strides = [1, 1]} : vector<8x196xf32> to vector<1x196xf32>
    %c1_136 = arith.constant 1 : index
    %c3_137 = arith.constant 3 : index
    %c0_138 = arith.constant 0 : index
    %146 = vector.load %arg10[%c1_136, %c3_137, %c0_138] : memref<6x8x196xf32, #tpu.memory_space<vmem>>, vector<1x1x196xf32>
    %147 = vector.shape_cast %146 : vector<1x1x196xf32> to vector<1x196xf32>
    %148 = vector.shape_cast %145 : vector<1x196xf32> to vector<1x1x196xf32>
    tpu.vector_store %arg10[%c1_136, %c3_137, %c0_138], %148 {strides = array<i32>} : memref<6x8x196xf32, #tpu.memory_space<vmem>>, vector<1x1x196xf32>,
    %149 = vector.extract_strided_slice %140 {offsets = [2, 0], sizes = [1, 196], strides = [1, 1]} : vector<8x196xf32> to vector<1x196xf32>
    %c2_139 = arith.constant 2 : index
    %c3_140 = arith.constant 3 : index
    %c0_141 = arith.constant 0 : index
    %150 = vector.load %arg10[%c2_139, %c3_140, %c0_141] : memref<6x8x196xf32, #tpu.memory_space<vmem>>, vector<1x1x196xf32>
    %151 = vector.shape_cast %150 : vector<1x1x196xf32> to vector<1x196xf32>
    %152 = vector.shape_cast %149 : vector<1x196xf32> to vector<1x1x196xf32>
    tpu.vector_store %arg10[%c2_139, %c3_140, %c0_141], %152 {strides = array<i32>} : memref<6x8x196xf32, #tpu.memory_space<vmem>>, vector<1x1x196xf32>,
    %153 = vector.extract_strided_slice %140 {offsets = [3, 0], sizes = [1, 196], strides = [1, 1]} : vector<8x196xf32> to vector<1x196xf32>
    %c3_142 = arith.constant 3 : index
    %c3_143 = arith.constant 3 : index
    %c0_144 = arith.constant 0 : index
    %154 = vector.load %arg10[%c3_142, %c3_143, %c0_144] : memref<6x8x196xf32, #tpu.memory_space<vmem>>, vector<1x1x196xf32>
    %155 = vector.shape_cast %154 : vector<1x1x196xf32> to vector<1x196xf32>
    %156 = vector.shape_cast %153 : vector<1x196xf32> to vector<1x1x196xf32>
    tpu.vector_store %arg10[%c3_142, %c3_143, %c0_144], %156 {strides = array<i32>} : memref<6x8x196xf32, #tpu.memory_space<vmem>>, vector<1x1x196xf32>,
    %157 = vector.extract_strided_slice %140 {offsets = [4, 0], sizes = [1, 196], strides = [1, 1]} : vector<8x196xf32> to vector<1x196xf32>
    %c4_145 = arith.constant 4 : index
    %c3_146 = arith.constant 3 : index
    %c0_147 = arith.constant 0 : index
    %158 = vector.load %arg10[%c4_145, %c3_146, %c0_147] : memref<6x8x196xf32, #tpu.memory_space<vmem>>, vector<1x1x196xf32>
    %159 = vector.shape_cast %158 : vector<1x1x196xf32> to vector<1x196xf32>
    %160 = vector.shape_cast %157 : vector<1x196xf32> to vector<1x1x196xf32>
    tpu.vector_store %arg10[%c4_145, %c3_146, %c0_147], %160 {strides = array<i32>} : memref<6x8x196xf32, #tpu.memory_space<vmem>>, vector<1x1x196xf32>,
    %161 = vector.extract_strided_slice %140 {offsets = [5, 0], sizes = [1, 196], strides = [1, 1]} : vector<8x196xf32> to vector<1x196xf32>
    %c5_148 = arith.constant 5 : index
    %c3_149 = arith.constant 3 : index
    %c0_150 = arith.constant 0 : index
    %162 = vector.load %arg10[%c5_148, %c3_149, %c0_150] : memref<6x8x196xf32, #tpu.memory_space<vmem>>, vector<1x1x196xf32>
    %163 = vector.shape_cast %162 : vector<1x1x196xf32> to vector<1x196xf32>
    %164 = vector.shape_cast %161 : vector<1x196xf32> to vector<1x1x196xf32>
    tpu.vector_store %arg10[%c5_148, %c3_149, %c0_150], %164 {strides = array<i32>} : memref<6x8x196xf32, #tpu.memory_space<vmem>>, vector<1x1x196xf32>,
    %c4_151 = arith.constant 4 : index
    %c0_152 = arith.constant 0 : index
    %c0_153 = arith.constant 0 : index
    %c0_154 = arith.constant 0 : index
    %165 = vector.load %arg1[%c4_151, %c0_152, %c0_153, %c0_154] : memref<8x4x80x196xbf16, #tpu.memory_space<vmem>>, vector<1x1x80x196xbf16>
    %166 = vector.shape_cast %165 : vector<1x1x80x196xbf16> to vector<80x196xbf16>
    %cst_155 = arith.constant dense<0.000000e+00> : vector<8x196xf32>
    %167 = tpu.matmul %0, %166, %cst_155 {dimension_numbers = #tpu.dot_dimension_numbers<[1], [0], [0], [1], [0, 0, 1, 1], [], []>} : vector<8x80xbf16>, vector<80x196xbf16>, vector<8x196xf32> -> vector<8x196xf32>
    %c4_156 = arith.constant 4 : index
    %c1_157 = arith.constant 1 : index
    %c0_158 = arith.constant 0 : index
    %c0_159 = arith.constant 0 : index
    %168 = vector.load %arg1[%c4_156, %c1_157, %c0_158, %c0_159] : memref<8x4x80x196xbf16, #tpu.memory_space<vmem>>, vector<1x1x80x196xbf16>
    %169 = vector.shape_cast %168 : vector<1x1x80x196xbf16> to vector<80x196xbf16>
    %cst_160 = arith.constant dense<0.000000e+00> : vector<8x196xf32>
    %170 = tpu.matmul %0, %169, %cst_160 {dimension_numbers = #tpu.dot_dimension_numbers<[1], [0], [0], [1], [0, 0, 1, 1], [], []>} : vector<8x80xbf16>, vector<80x196xbf16>, vector<8x196xf32> -> vector<8x196xf32>
    %171 = arith.maximumf %167, %170 : vector<8x196xf32>
    %c4_161 = arith.constant 4 : index
    %c2_162 = arith.constant 2 : index
    %c0_163 = arith.constant 0 : index
    %c0_164 = arith.constant 0 : index
    %172 = vector.load %arg1[%c4_161, %c2_162, %c0_163, %c0_164] : memref<8x4x80x196xbf16, #tpu.memory_space<vmem>>, vector<1x1x80x196xbf16>
    %173 = vector.shape_cast %172 : vector<1x1x80x196xbf16> to vector<80x196xbf16>
    %cst_165 = arith.constant dense<0.000000e+00> : vector<8x196xf32>
    %174 = tpu.matmul %0, %173, %cst_165 {dimension_numbers = #tpu.dot_dimension_numbers<[1], [0], [0], [1], [0, 0, 1, 1], [], []>} : vector<8x80xbf16>, vector<80x196xbf16>, vector<8x196xf32> -> vector<8x196xf32>
    %175 = arith.maximumf %171, %174 : vector<8x196xf32>
    %c4_166 = arith.constant 4 : index
    %c3_167 = arith.constant 3 : index
    %c0_168 = arith.constant 0 : index
    %c0_169 = arith.constant 0 : index
    %176 = vector.load %arg1[%c4_166, %c3_167, %c0_168, %c0_169] : memref<8x4x80x196xbf16, #tpu.memory_space<vmem>>, vector<1x1x80x196xbf16>
    %177 = vector.shape_cast %176 : vector<1x1x80x196xbf16> to vector<80x196xbf16>
    %cst_170 = arith.constant dense<0.000000e+00> : vector<8x196xf32>
    %178 = tpu.matmul %0, %177, %cst_170 {dimension_numbers = #tpu.dot_dimension_numbers<[1], [0], [0], [1], [0, 0, 1, 1], [], []>} : vector<8x80xbf16>, vector<80x196xbf16>, vector<8x196xf32> -> vector<8x196xf32>
    %179 = arith.maximumf %175, %178 : vector<8x196xf32>
    %cst_171 = arith.constant 0.000000e+00 : f32
    %180 = vector.broadcast %cst_171 : f32 to vector<8x196xf32>
    %181 = arith.maximumf %179, %180 : vector<8x196xf32>
    %182 = vector.extract_strided_slice %181 {offsets = [0, 0], sizes = [1, 196], strides = [1, 1]} : vector<8x196xf32> to vector<1x196xf32>
    %c0_172 = arith.constant 0 : index
    %c4_173 = arith.constant 4 : index
    %c0_174 = arith.constant 0 : index
    %183 = vector.load %arg10[%c0_172, %c4_173, %c0_174] : memref<6x8x196xf32, #tpu.memory_space<vmem>>, vector<1x1x196xf32>
    %184 = vector.shape_cast %183 : vector<1x1x196xf32> to vector<1x196xf32>
    %185 = vector.shape_cast %182 : vector<1x196xf32> to vector<1x1x196xf32>
    tpu.vector_store %arg10[%c0_172, %c4_173, %c0_174], %185 {strides = array<i32>} : memref<6x8x196xf32, #tpu.memory_space<vmem>>, vector<1x1x196xf32>,
    %186 = vector.extract_strided_slice %181 {offsets = [1, 0], sizes = [1, 196], strides = [1, 1]} : vector<8x196xf32> to vector<1x196xf32>
    %c1_175 = arith.constant 1 : index
    %c4_176 = arith.constant 4 : index
    %c0_177 = arith.constant 0 : index
    %187 = vector.load %arg10[%c1_175, %c4_176, %c0_177] : memref<6x8x196xf32, #tpu.memory_space<vmem>>, vector<1x1x196xf32>
    %188 = vector.shape_cast %187 : vector<1x1x196xf32> to vector<1x196xf32>
    %189 = vector.shape_cast %186 : vector<1x196xf32> to vector<1x1x196xf32>
    tpu.vector_store %arg10[%c1_175, %c4_176, %c0_177], %189 {strides = array<i32>} : memref<6x8x196xf32, #tpu.memory_space<vmem>>, vector<1x1x196xf32>,
    %190 = vector.extract_strided_slice %181 {offsets = [2, 0], sizes = [1, 196], strides = [1, 1]} : vector<8x196xf32> to vector<1x196xf32>
    %c2_178 = arith.constant 2 : index
    %c4_179 = arith.constant 4 : index
    %c0_180 = arith.constant 0 : index
    %191 = vector.load %arg10[%c2_178, %c4_179, %c0_180] : memref<6x8x196xf32, #tpu.memory_space<vmem>>, vector<1x1x196xf32>
    %192 = vector.shape_cast %191 : vector<1x1x196xf32> to vector<1x196xf32>
    %193 = vector.shape_cast %190 : vector<1x196xf32> to vector<1x1x196xf32>
    tpu.vector_store %arg10[%c2_178, %c4_179, %c0_180], %193 {strides = array<i32>} : memref<6x8x196xf32, #tpu.memory_space<vmem>>, vector<1x1x196xf32>,
    %194 = vector.extract_strided_slice %181 {offsets = [3, 0], sizes = [1, 196], strides = [1, 1]} : vector<8x196xf32> to vector<1x196xf32>
    %c3_181 = arith.constant 3 : index
    %c4_182 = arith.constant 4 : index
    %c0_183 = arith.constant 0 : index
    %195 = vector.load %arg10[%c3_181, %c4_182, %c0_183] : memref<6x8x196xf32, #tpu.memory_space<vmem>>, vector<1x1x196xf32>
    %196 = vector.shape_cast %195 : vector<1x1x196xf32> to vector<1x196xf32>
    %197 = vector.shape_cast %194 : vector<1x196xf32> to vector<1x1x196xf32>
    tpu.vector_store %arg10[%c3_181, %c4_182, %c0_183], %197 {strides = array<i32>} : memref<6x8x196xf32, #tpu.memory_space<vmem>>, vector<1x1x196xf32>,
    %198 = vector.extract_strided_slice %181 {offsets = [4, 0], sizes = [1, 196], strides = [1, 1]} : vector<8x196xf32> to vector<1x196xf32>
    %c4_184 = arith.constant 4 : index
    %c4_185 = arith.constant 4 : index
    %c0_186 = arith.constant 0 : index
    %199 = vector.load %arg10[%c4_184, %c4_185, %c0_186] : memref<6x8x196xf32, #tpu.memory_space<vmem>>, vector<1x1x196xf32>
    %200 = vector.shape_cast %199 : vector<1x1x196xf32> to vector<1x196xf32>
    %201 = vector.shape_cast %198 : vector<1x196xf32> to vector<1x1x196xf32>
    tpu.vector_store %arg10[%c4_184, %c4_185, %c0_186], %201 {strides = array<i32>} : memref<6x8x196xf32, #tpu.memory_space<vmem>>, vector<1x1x196xf32>,
    %202 = vector.extract_strided_slice %181 {offsets = [5, 0], sizes = [1, 196], strides = [1, 1]} : vector<8x196xf32> to vector<1x196xf32>
    %c5_187 = arith.constant 5 : index
    %c4_188 = arith.constant 4 : index
    %c0_189 = arith.constant 0 : index
    %203 = vector.load %arg10[%c5_187, %c4_188, %c0_189] : memref<6x8x196xf32, #tpu.memory_space<vmem>>, vector<1x1x196xf32>
    %204 = vector.shape_cast %203 : vector<1x1x196xf32> to vector<1x196xf32>
    %205 = vector.shape_cast %202 : vector<1x196xf32> to vector<1x1x196xf32>
    tpu.vector_store %arg10[%c5_187, %c4_188, %c0_189], %205 {strides = array<i32>} : memref<6x8x196xf32, #tpu.memory_space<vmem>>, vector<1x1x196xf32>,
    %c5_190 = arith.constant 5 : index
    %c0_191 = arith.constant 0 : index
    %c0_192 = arith.constant 0 : index
    %c0_193 = arith.constant 0 : index
    %206 = vector.load %arg1[%c5_190, %c0_191, %c0_192, %c0_193] : memref<8x4x80x196xbf16, #tpu.memory_space<vmem>>, vector<1x1x80x196xbf16>
    %207 = vector.shape_cast %206 : vector<1x1x80x196xbf16> to vector<80x196xbf16>
    %cst_194 = arith.constant dense<0.000000e+00> : vector<8x196xf32>
    %208 = tpu.matmul %0, %207, %cst_194 {dimension_numbers = #tpu.dot_dimension_numbers<[1], [0], [0], [1], [0, 0, 1, 1], [], []>} : vector<8x80xbf16>, vector<80x196xbf16>, vector<8x196xf32> -> vector<8x196xf32>
    %c5_195 = arith.constant 5 : index
    %c1_196 = arith.constant 1 : index
    %c0_197 = arith.constant 0 : index
    %c0_198 = arith.constant 0 : index
    %209 = vector.load %arg1[%c5_195, %c1_196, %c0_197, %c0_198] : memref<8x4x80x196xbf16, #tpu.memory_space<vmem>>, vector<1x1x80x196xbf16>
    %210 = vector.shape_cast %209 : vector<1x1x80x196xbf16> to vector<80x196xbf16>
    %cst_199 = arith.constant dense<0.000000e+00> : vector<8x196xf32>
    %211 = tpu.matmul %0, %210, %cst_199 {dimension_numbers = #tpu.dot_dimension_numbers<[1], [0], [0], [1], [0, 0, 1, 1], [], []>} : vector<8x80xbf16>, vector<80x196xbf16>, vector<8x196xf32> -> vector<8x196xf32>
    %212 = arith.maximumf %208, %211 : vector<8x196xf32>
    %c5_200 = arith.constant 5 : index
    %c2_201 = arith.constant 2 : index
    %c0_202 = arith.constant 0 : index
    %c0_203 = arith.constant 0 : index
    %213 = vector.load %arg1[%c5_200, %c2_201, %c0_202, %c0_203] : memref<8x4x80x196xbf16, #tpu.memory_space<vmem>>, vector<1x1x80x196xbf16>
    %214 = vector.shape_cast %213 : vector<1x1x80x196xbf16> to vector<80x196xbf16>
    %cst_204 = arith.constant dense<0.000000e+00> : vector<8x196xf32>
    %215 = tpu.matmul %0, %214, %cst_204 {dimension_numbers = #tpu.dot_dimension_numbers<[1], [0], [0], [1], [0, 0, 1, 1], [], []>} : vector<8x80xbf16>, vector<80x196xbf16>, vector<8x196xf32> -> vector<8x196xf32>
    %216 = arith.maximumf %212, %215 : vector<8x196xf32>
    %c5_205 = arith.constant 5 : index
    %c3_206 = arith.constant 3 : index
    %c0_207 = arith.constant 0 : index
    %c0_208 = arith.constant 0 : index
    %217 = vector.load %arg1[%c5_205, %c3_206, %c0_207, %c0_208] : memref<8x4x80x196xbf16, #tpu.memory_space<vmem>>, vector<1x1x80x196xbf16>
    %218 = vector.shape_cast %217 : vector<1x1x80x196xbf16> to vector<80x196xbf16>
    %cst_209 = arith.constant dense<0.000000e+00> : vector<8x196xf32>
    %219 = tpu.matmul %0, %218, %cst_209 {dimension_numbers = #tpu.dot_dimension_numbers<[1], [0], [0], [1], [0, 0, 1, 1], [], []>} : vector<8x80xbf16>, vector<80x196xbf16>, vector<8x196xf32> -> vector<8x196xf32>
    %220 = arith.maximumf %216, %219 : vector<8x196xf32>
    %cst_210 = arith.constant 0.000000e+00 : f32
    %221 = vector.broadcast %cst_210 : f32 to vector<8x196xf32>
    %222 = arith.maximumf %220, %221 : vector<8x196xf32>
    %223 = vector.extract_strided_slice %222 {offsets = [0, 0], sizes = [1, 196], strides = [1, 1]} : vector<8x196xf32> to vector<1x196xf32>
    %c0_211 = arith.constant 0 : index
    %c5_212 = arith.constant 5 : index
    %c0_213 = arith.constant 0 : index
    %224 = vector.load %arg10[%c0_211, %c5_212, %c0_213] : memref<6x8x196xf32, #tpu.memory_space<vmem>>, vector<1x1x196xf32>
    %225 = vector.shape_cast %224 : vector<1x1x196xf32> to vector<1x196xf32>
    %226 = vector.shape_cast %223 : vector<1x196xf32> to vector<1x1x196xf32>
    tpu.vector_store %arg10[%c0_211, %c5_212, %c0_213], %226 {strides = array<i32>} : memref<6x8x196xf32, #tpu.memory_space<vmem>>, vector<1x1x196xf32>,
    %227 = vector.extract_strided_slice %222 {offsets = [1, 0], sizes = [1, 196], strides = [1, 1]} : vector<8x196xf32> to vector<1x196xf32>
    %c1_214 = arith.constant 1 : index
    %c5_215 = arith.constant 5 : index
    %c0_216 = arith.constant 0 : index
    %228 = vector.load %arg10[%c1_214, %c5_215, %c0_216] : memref<6x8x196xf32, #tpu.memory_space<vmem>>, vector<1x1x196xf32>
    %229 = vector.shape_cast %228 : vector<1x1x196xf32> to vector<1x196xf32>
    %230 = vector.shape_cast %227 : vector<1x196xf32> to vector<1x1x196xf32>
    tpu.vector_store %arg10[%c1_214, %c5_215, %c0_216], %230 {strides = array<i32>} : memref<6x8x196xf32, #tpu.memory_space<vmem>>, vector<1x1x196xf32>,
    %231 = vector.extract_strided_slice %222 {offsets = [2, 0], sizes = [1, 196], strides = [1, 1]} : vector<8x196xf32> to vector<1x196xf32>
    %c2_217 = arith.constant 2 : index
    %c5_218 = arith.constant 5 : index
    %c0_219 = arith.constant 0 : index
    %232 = vector.load %arg10[%c2_217, %c5_218, %c0_219] : memref<6x8x196xf32, #tpu.memory_space<vmem>>, vector<1x1x196xf32>
    %233 = vector.shape_cast %232 : vector<1x1x196xf32> to vector<1x196xf32>
    %234 = vector.shape_cast %231 : vector<1x196xf32> to vector<1x1x196xf32>
    tpu.vector_store %arg10[%c2_217, %c5_218, %c0_219], %234 {strides = array<i32>} : memref<6x8x196xf32, #tpu.memory_space<vmem>>, vector<1x1x196xf32>,
    %235 = vector.extract_strided_slice %222 {offsets = [3, 0], sizes = [1, 196], strides = [1, 1]} : vector<8x196xf32> to vector<1x196xf32>
    %c3_220 = arith.constant 3 : index
    %c5_221 = arith.constant 5 : index
    %c0_222 = arith.constant 0 : index
    %236 = vector.load %arg10[%c3_220, %c5_221, %c0_222] : memref<6x8x196xf32, #tpu.memory_space<vmem>>, vector<1x1x196xf32>
    %237 = vector.shape_cast %236 : vector<1x1x196xf32> to vector<1x196xf32>
    %238 = vector.shape_cast %235 : vector<1x196xf32> to vector<1x1x196xf32>
    tpu.vector_store %arg10[%c3_220, %c5_221, %c0_222], %238 {strides = array<i32>} : memref<6x8x196xf32, #tpu.memory_space<vmem>>, vector<1x1x196xf32>,
    %239 = vector.extract_strided_slice %222 {offsets = [4, 0], sizes = [1, 196], strides = [1, 1]} : vector<8x196xf32> to vector<1x196xf32>
    %c4_223 = arith.constant 4 : index
    %c5_224 = arith.constant 5 : index
    %c0_225 = arith.constant 0 : index
    %240 = vector.load %arg10[%c4_223, %c5_224, %c0_225] : memref<6x8x196xf32, #tpu.memory_space<vmem>>, vector<1x1x196xf32>
    %241 = vector.shape_cast %240 : vector<1x1x196xf32> to vector<1x196xf32>
    %242 = vector.shape_cast %239 : vector<1x196xf32> to vector<1x1x196xf32>
    tpu.vector_store %arg10[%c4_223, %c5_224, %c0_225], %242 {strides = array<i32>} : memref<6x8x196xf32, #tpu.memory_space<vmem>>, vector<1x1x196xf32>,
    %243 = vector.extract_strided_slice %222 {offsets = [5, 0], sizes = [1, 196], strides = [1, 1]} : vector<8x196xf32> to vector<1x196xf32>
    %c5_226 = arith.constant 5 : index
    %c5_227 = arith.constant 5 : index
    %c0_228 = arith.constant 0 : index
    %244 = vector.load %arg10[%c5_226, %c5_227, %c0_228] : memref<6x8x196xf32, #tpu.memory_space<vmem>>, vector<1x1x196xf32>
    %245 = vector.shape_cast %244 : vector<1x1x196xf32> to vector<1x196xf32>
    %246 = vector.shape_cast %243 : vector<1x196xf32> to vector<1x1x196xf32>
    tpu.vector_store %arg10[%c5_226, %c5_227, %c0_228], %246 {strides = array<i32>} : memref<6x8x196xf32, #tpu.memory_space<vmem>>, vector<1x1x196xf32>,
    %c6 = arith.constant 6 : index
    %c0_229 = arith.constant 0 : index
    %c0_230 = arith.constant 0 : index
    %c0_231 = arith.constant 0 : index
    %247 = vector.load %arg1[%c6, %c0_229, %c0_230, %c0_231] : memref<8x4x80x196xbf16, #tpu.memory_space<vmem>>, vector<1x1x80x196xbf16>
    %248 = vector.shape_cast %247 : vector<1x1x80x196xbf16> to vector<80x196xbf16>
    %cst_232 = arith.constant dense<0.000000e+00> : vector<8x196xf32>
    %249 = tpu.matmul %0, %248, %cst_232 {dimension_numbers = #tpu.dot_dimension_numbers<[1], [0], [0], [1], [0, 0, 1, 1], [], []>} : vector<8x80xbf16>, vector<80x196xbf16>, vector<8x196xf32> -> vector<8x196xf32>
    %c6_233 = arith.constant 6 : index
    %c1_234 = arith.constant 1 : index
    %c0_235 = arith.constant 0 : index
    %c0_236 = arith.constant 0 : index
    %250 = vector.load %arg1[%c6_233, %c1_234, %c0_235, %c0_236] : memref<8x4x80x196xbf16, #tpu.memory_space<vmem>>, vector<1x1x80x196xbf16>
    %251 = vector.shape_cast %250 : vector<1x1x80x196xbf16> to vector<80x196xbf16>
    %cst_237 = arith.constant dense<0.000000e+00> : vector<8x196xf32>
    %252 = tpu.matmul %0, %251, %cst_237 {dimension_numbers = #tpu.dot_dimension_numbers<[1], [0], [0], [1], [0, 0, 1, 1], [], []>} : vector<8x80xbf16>, vector<80x196xbf16>, vector<8x196xf32> -> vector<8x196xf32>
    %253 = arith.maximumf %249, %252 : vector<8x196xf32>
    %c6_238 = arith.constant 6 : index
    %c2_239 = arith.constant 2 : index
    %c0_240 = arith.constant 0 : index
    %c0_241 = arith.constant 0 : index
    %254 = vector.load %arg1[%c6_238, %c2_239, %c0_240, %c0_241] : memref<8x4x80x196xbf16, #tpu.memory_space<vmem>>, vector<1x1x80x196xbf16>
    %255 = vector.shape_cast %254 : vector<1x1x80x196xbf16> to vector<80x196xbf16>
    %cst_242 = arith.constant dense<0.000000e+00> : vector<8x196xf32>
    %256 = tpu.matmul %0, %255, %cst_242 {dimension_numbers = #tpu.dot_dimension_numbers<[1], [0], [0], [1], [0, 0, 1, 1], [], []>} : vector<8x80xbf16>, vector<80x196xbf16>, vector<8x196xf32> -> vector<8x196xf32>
    %257 = arith.maximumf %253, %256 : vector<8x196xf32>
    %c6_243 = arith.constant 6 : index
    %c3_244 = arith.constant 3 : index
    %c0_245 = arith.constant 0 : index
    %c0_246 = arith.constant 0 : index
    %258 = vector.load %arg1[%c6_243, %c3_244, %c0_245, %c0_246] : memref<8x4x80x196xbf16, #tpu.memory_space<vmem>>, vector<1x1x80x196xbf16>
    %259 = vector.shape_cast %258 : vector<1x1x80x196xbf16> to vector<80x196xbf16>
    %cst_247 = arith.constant dense<0.000000e+00> : vector<8x196xf32>
    %260 = tpu.matmul %0, %259, %cst_247 {dimension_numbers = #tpu.dot_dimension_numbers<[1], [0], [0], [1], [0, 0, 1, 1], [], []>} : vector<8x80xbf16>, vector<80x196xbf16>, vector<8x196xf32> -> vector<8x196xf32>
    %261 = arith.maximumf %257, %260 : vector<8x196xf32>
    %cst_248 = arith.constant 0.000000e+00 : f32
    %262 = vector.broadcast %cst_248 : f32 to vector<8x196xf32>
    %263 = arith.maximumf %261, %262 : vector<8x196xf32>
    %264 = vector.extract_strided_slice %263 {offsets = [0, 0], sizes = [1, 196], strides = [1, 1]} : vector<8x196xf32> to vector<1x196xf32>
    %c0_249 = arith.constant 0 : index
    %c6_250 = arith.constant 6 : index
    %c0_251 = arith.constant 0 : index
    %265 = vector.load %arg10[%c0_249, %c6_250, %c0_251] : memref<6x8x196xf32, #tpu.memory_space<vmem>>, vector<1x1x196xf32>
    %266 = vector.shape_cast %265 : vector<1x1x196xf32> to vector<1x196xf32>
    %267 = vector.shape_cast %264 : vector<1x196xf32> to vector<1x1x196xf32>
    tpu.vector_store %arg10[%c0_249, %c6_250, %c0_251], %267 {strides = array<i32>} : memref<6x8x196xf32, #tpu.memory_space<vmem>>, vector<1x1x196xf32>,
    %268 = vector.extract_strided_slice %263 {offsets = [1, 0], sizes = [1, 196], strides = [1, 1]} : vector<8x196xf32> to vector<1x196xf32>
    %c1_252 = arith.constant 1 : index
    %c6_253 = arith.constant 6 : index
    %c0_254 = arith.constant 0 : index
    %269 = vector.load %arg10[%c1_252, %c6_253, %c0_254] : memref<6x8x196xf32, #tpu.memory_space<vmem>>, vector<1x1x196xf32>
    %270 = vector.shape_cast %269 : vector<1x1x196xf32> to vector<1x196xf32>
    %271 = vector.shape_cast %268 : vector<1x196xf32> to vector<1x1x196xf32>
    tpu.vector_store %arg10[%c1_252, %c6_253, %c0_254], %271 {strides = array<i32>} : memref<6x8x196xf32, #tpu.memory_space<vmem>>, vector<1x1x196xf32>,
    %272 = vector.extract_strided_slice %263 {offsets = [2, 0], sizes = [1, 196], strides = [1, 1]} : vector<8x196xf32> to vector<1x196xf32>
    %c2_255 = arith.constant 2 : index
    %c6_256 = arith.constant 6 : index
    %c0_257 = arith.constant 0 : index
    %273 = vector.load %arg10[%c2_255, %c6_256, %c0_257] : memref<6x8x196xf32, #tpu.memory_space<vmem>>, vector<1x1x196xf32>
    %274 = vector.shape_cast %273 : vector<1x1x196xf32> to vector<1x196xf32>
    %275 = vector.shape_cast %272 : vector<1x196xf32> to vector<1x1x196xf32>
    tpu.vector_store %arg10[%c2_255, %c6_256, %c0_257], %275 {strides = array<i32>} : memref<6x8x196xf32, #tpu.memory_space<vmem>>, vector<1x1x196xf32>,
    %276 = vector.extract_strided_slice %263 {offsets = [3, 0], sizes = [1, 196], strides = [1, 1]} : vector<8x196xf32> to vector<1x196xf32>
    %c3_258 = arith.constant 3 : index
    %c6_259 = arith.constant 6 : index
    %c0_260 = arith.constant 0 : index
    %277 = vector.load %arg10[%c3_258, %c6_259, %c0_260] : memref<6x8x196xf32, #tpu.memory_space<vmem>>, vector<1x1x196xf32>
    %278 = vector.shape_cast %277 : vector<1x1x196xf32> to vector<1x196xf32>
    %279 = vector.shape_cast %276 : vector<1x196xf32> to vector<1x1x196xf32>
    tpu.vector_store %arg10[%c3_258, %c6_259, %c0_260], %279 {strides = array<i32>} : memref<6x8x196xf32, #tpu.memory_space<vmem>>, vector<1x1x196xf32>,
    %280 = vector.extract_strided_slice %263 {offsets = [4, 0], sizes = [1, 196], strides = [1, 1]} : vector<8x196xf32> to vector<1x196xf32>
    %c4_261 = arith.constant 4 : index
    %c6_262 = arith.constant 6 : index
    %c0_263 = arith.constant 0 : index
    %281 = vector.load %arg10[%c4_261, %c6_262, %c0_263] : memref<6x8x196xf32, #tpu.memory_space<vmem>>, vector<1x1x196xf32>
    %282 = vector.shape_cast %281 : vector<1x1x196xf32> to vector<1x196xf32>
    %283 = vector.shape_cast %280 : vector<1x196xf32> to vector<1x1x196xf32>
    tpu.vector_store %arg10[%c4_261, %c6_262, %c0_263], %283 {strides = array<i32>} : memref<6x8x196xf32, #tpu.memory_space<vmem>>, vector<1x1x196xf32>,
    %284 = vector.extract_strided_slice %263 {offsets = [5, 0], sizes = [1, 196], strides = [1, 1]} : vector<8x196xf32> to vector<1x196xf32>
    %c5_264 = arith.constant 5 : index
    %c6_265 = arith.constant 6 : index
    %c0_266 = arith.constant 0 : index
    %285 = vector.load %arg10[%c5_264, %c6_265, %c0_266] : memref<6x8x196xf32, #tpu.memory_space<vmem>>, vector<1x1x196xf32>
    %286 = vector.shape_cast %285 : vector<1x1x196xf32> to vector<1x196xf32>
    %287 = vector.shape_cast %284 : vector<1x196xf32> to vector<1x1x196xf32>
    tpu.vector_store %arg10[%c5_264, %c6_265, %c0_266], %287 {strides = array<i32>} : memref<6x8x196xf32, #tpu.memory_space<vmem>>, vector<1x1x196xf32>,
    %c7 = arith.constant 7 : index
    %c0_267 = arith.constant 0 : index
    %c0_268 = arith.constant 0 : index
    %c0_269 = arith.constant 0 : index
    %288 = vector.load %arg1[%c7, %c0_267, %c0_268, %c0_269] : memref<8x4x80x196xbf16, #tpu.memory_space<vmem>>, vector<1x1x80x196xbf16>
    %289 = vector.shape_cast %288 : vector<1x1x80x196xbf16> to vector<80x196xbf16>
    %cst_270 = arith.constant dense<0.000000e+00> : vector<8x196xf32>
    %290 = tpu.matmul %0, %289, %cst_270 {dimension_numbers = #tpu.dot_dimension_numbers<[1], [0], [0], [1], [0, 0, 1, 1], [], []>} : vector<8x80xbf16>, vector<80x196xbf16>, vector<8x196xf32> -> vector<8x196xf32>
    %c7_271 = arith.constant 7 : index
    %c1_272 = arith.constant 1 : index
    %c0_273 = arith.constant 0 : index
    %c0_274 = arith.constant 0 : index
    %291 = vector.load %arg1[%c7_271, %c1_272, %c0_273, %c0_274] : memref<8x4x80x196xbf16, #tpu.memory_space<vmem>>, vector<1x1x80x196xbf16>
    %292 = vector.shape_cast %291 : vector<1x1x80x196xbf16> to vector<80x196xbf16>
    %cst_275 = arith.constant dense<0.000000e+00> : vector<8x196xf32>
    %293 = tpu.matmul %0, %292, %cst_275 {dimension_numbers = #tpu.dot_dimension_numbers<[1], [0], [0], [1], [0, 0, 1, 1], [], []>} : vector<8x80xbf16>, vector<80x196xbf16>, vector<8x196xf32> -> vector<8x196xf32>
    %294 = arith.maximumf %290, %293 : vector<8x196xf32>
    %c7_276 = arith.constant 7 : index
    %c2_277 = arith.constant 2 : index
    %c0_278 = arith.constant 0 : index
    %c0_279 = arith.constant 0 : index
    %295 = vector.load %arg1[%c7_276, %c2_277, %c0_278, %c0_279] : memref<8x4x80x196xbf16, #tpu.memory_space<vmem>>, vector<1x1x80x196xbf16>
    %296 = vector.shape_cast %295 : vector<1x1x80x196xbf16> to vector<80x196xbf16>
    %cst_280 = arith.constant dense<0.000000e+00> : vector<8x196xf32>
    %297 = tpu.matmul %0, %296, %cst_280 {dimension_numbers = #tpu.dot_dimension_numbers<[1], [0], [0], [1], [0, 0, 1, 1], [], []>} : vector<8x80xbf16>, vector<80x196xbf16>, vector<8x196xf32> -> vector<8x196xf32>
    %298 = arith.maximumf %294, %297 : vector<8x196xf32>
    %c7_281 = arith.constant 7 : index
    %c3_282 = arith.constant 3 : index
    %c0_283 = arith.constant 0 : index
    %c0_284 = arith.constant 0 : index
    %299 = vector.load %arg1[%c7_281, %c3_282, %c0_283, %c0_284] : memref<8x4x80x196xbf16, #tpu.memory_space<vmem>>, vector<1x1x80x196xbf16>
    %300 = vector.shape_cast %299 : vector<1x1x80x196xbf16> to vector<80x196xbf16>
    %cst_285 = arith.constant dense<0.000000e+00> : vector<8x196xf32>
    %301 = tpu.matmul %0, %300, %cst_285 {dimension_numbers = #tpu.dot_dimension_numbers<[1], [0], [0], [1], [0, 0, 1, 1], [], []>} : vector<8x80xbf16>, vector<80x196xbf16>, vector<8x196xf32> -> vector<8x196xf32>
    %302 = arith.maximumf %298, %301 : vector<8x196xf32>
    %cst_286 = arith.constant 0.000000e+00 : f32
    %303 = vector.broadcast %cst_286 : f32 to vector<8x196xf32>
    %304 = arith.maximumf %302, %303 : vector<8x196xf32>
    %305 = vector.extract_strided_slice %304 {offsets = [0, 0], sizes = [1, 196], strides = [1, 1]} : vector<8x196xf32> to vector<1x196xf32>
    %c0_287 = arith.constant 0 : index
    %c7_288 = arith.constant 7 : index
    %c0_289 = arith.constant 0 : index
    %306 = vector.load %arg10[%c0_287, %c7_288, %c0_289] : memref<6x8x196xf32, #tpu.memory_space<vmem>>, vector<1x1x196xf32>
    %307 = vector.shape_cast %306 : vector<1x1x196xf32> to vector<1x196xf32>
    %308 = vector.shape_cast %305 : vector<1x196xf32> to vector<1x1x196xf32>
    tpu.vector_store %arg10[%c0_287, %c7_288, %c0_289], %308 {strides = array<i32>} : memref<6x8x196xf32, #tpu.memory_space<vmem>>, vector<1x1x196xf32>,
    %309 = vector.extract_strided_slice %304 {offsets = [1, 0], sizes = [1, 196], strides = [1, 1]} : vector<8x196xf32> to vector<1x196xf32>
    %c1_290 = arith.constant 1 : index
    %c7_291 = arith.constant 7 : index
    %c0_292 = arith.constant 0 : index
    %310 = vector.load %arg10[%c1_290, %c7_291, %c0_292] : memref<6x8x196xf32, #tpu.memory_space<vmem>>, vector<1x1x196xf32>
    %311 = vector.shape_cast %310 : vector<1x1x196xf32> to vector<1x196xf32>
    %312 = vector.shape_cast %309 : vector<1x196xf32> to vector<1x1x196xf32>
    tpu.vector_store %arg10[%c1_290, %c7_291, %c0_292], %312 {strides = array<i32>} : memref<6x8x196xf32, #tpu.memory_space<vmem>>, vector<1x1x196xf32>,
    %313 = vector.extract_strided_slice %304 {offsets = [2, 0], sizes = [1, 196], strides = [1, 1]} : vector<8x196xf32> to vector<1x196xf32>
    %c2_293 = arith.constant 2 : index
    %c7_294 = arith.constant 7 : index
    %c0_295 = arith.constant 0 : index
    %314 = vector.load %arg10[%c2_293, %c7_294, %c0_295] : memref<6x8x196xf32, #tpu.memory_space<vmem>>, vector<1x1x196xf32>
    %315 = vector.shape_cast %314 : vector<1x1x196xf32> to vector<1x196xf32>
    %316 = vector.shape_cast %313 : vector<1x196xf32> to vector<1x1x196xf32>
    tpu.vector_store %arg10[%c2_293, %c7_294, %c0_295], %316 {strides = array<i32>} : memref<6x8x196xf32, #tpu.memory_space<vmem>>, vector<1x1x196xf32>,
    %317 = vector.extract_strided_slice %304 {offsets = [3, 0], sizes = [1, 196], strides = [1, 1]} : vector<8x196xf32> to vector<1x196xf32>
    %c3_296 = arith.constant 3 : index
    %c7_297 = arith.constant 7 : index
    %c0_298 = arith.constant 0 : index
    %318 = vector.load %arg10[%c3_296, %c7_297, %c0_298] : memref<6x8x196xf32, #tpu.memory_space<vmem>>, vector<1x1x196xf32>
    %319 = vector.shape_cast %318 : vector<1x1x196xf32> to vector<1x196xf32>
    %320 = vector.shape_cast %317 : vector<1x196xf32> to vector<1x1x196xf32>
    tpu.vector_store %arg10[%c3_296, %c7_297, %c0_298], %320 {strides = array<i32>} : memref<6x8x196xf32, #tpu.memory_space<vmem>>, vector<1x1x196xf32>,
    %321 = vector.extract_strided_slice %304 {offsets = [4, 0], sizes = [1, 196], strides = [1, 1]} : vector<8x196xf32> to vector<1x196xf32>
    %c4_299 = arith.constant 4 : index
    %c7_300 = arith.constant 7 : index
    %c0_301 = arith.constant 0 : index
    %322 = vector.load %arg10[%c4_299, %c7_300, %c0_301] : memref<6x8x196xf32, #tpu.memory_space<vmem>>, vector<1x1x196xf32>
    %323 = vector.shape_cast %322 : vector<1x1x196xf32> to vector<1x196xf32>
    %324 = vector.shape_cast %321 : vector<1x196xf32> to vector<1x1x196xf32>
    tpu.vector_store %arg10[%c4_299, %c7_300, %c0_301], %324 {strides = array<i32>} : memref<6x8x196xf32, #tpu.memory_space<vmem>>, vector<1x1x196xf32>,
    %325 = vector.extract_strided_slice %304 {offsets = [5, 0], sizes = [1, 196], strides = [1, 1]} : vector<8x196xf32> to vector<1x196xf32>
    %c5_302 = arith.constant 5 : index
    %c7_303 = arith.constant 7 : index
    %c0_304 = arith.constant 0 : index
    %326 = vector.load %arg10[%c5_302, %c7_303, %c0_304] : memref<6x8x196xf32, #tpu.memory_space<vmem>>, vector<1x1x196xf32>
    %327 = vector.shape_cast %326 : vector<1x1x196xf32> to vector<1x196xf32>
    %328 = vector.shape_cast %325 : vector<1x196xf32> to vector<1x1x196xf32>
    tpu.vector_store %arg10[%c5_302, %c7_303, %c0_304], %328 {strides = array<i32>} : memref<6x8x196xf32, #tpu.memory_space<vmem>>, vector<1x1x196xf32>,
    %cst_305 = arith.constant 0.000000e+00 : f32
    %329 = vector.broadcast %cst_305 : f32 to vector<8x128xf32>
    %c0_306 = arith.constant 0 : index
    %c0_307 = arith.constant 0 : index
    %c0_308 = arith.constant 0 : index
    %330 = vector.load %arg10[%c0_306, %c0_307, %c0_308] : memref<6x8x196xf32, #tpu.memory_space<vmem>>, vector<1x8x196xf32>
    %331 = vector.shape_cast %330 : vector<1x8x196xf32> to vector<8x196xf32>
    %332 = arith.truncf %331 : vector<8x196xf32> to vector<8x196xbf16>
    %c0_309 = arith.constant 0 : index
    %c0_310 = arith.constant 0 : index
    %c0_311 = arith.constant 0 : index
    %333 = vector.load %arg3[%c0_309, %c0_310, %c0_311] : memref<6x196x128xbf16, #tpu.memory_space<vmem>>, vector<1x196x128xbf16>
    %334 = vector.shape_cast %333 : vector<1x196x128xbf16> to vector<196x128xbf16>
    %cst_312 = arith.constant dense<0.000000e+00> : vector<8x128xf32>
    %335 = tpu.matmul %332, %334, %cst_312 {dimension_numbers = #tpu.dot_dimension_numbers<[1], [0], [0], [1], [0, 0, 1, 1], [], []>} : vector<8x196xbf16>, vector<196x128xbf16>, vector<8x128xf32> -> vector<8x128xf32>
    %336 = arith.addf %329, %335 : vector<8x128xf32>
    %c1_313 = arith.constant 1 : index
    %c0_314 = arith.constant 0 : index
    %c0_315 = arith.constant 0 : index
    %337 = vector.load %arg10[%c1_313, %c0_314, %c0_315] : memref<6x8x196xf32, #tpu.memory_space<vmem>>, vector<1x8x196xf32>
    %338 = vector.shape_cast %337 : vector<1x8x196xf32> to vector<8x196xf32>
    %339 = arith.truncf %338 : vector<8x196xf32> to vector<8x196xbf16>
    %c1_316 = arith.constant 1 : index
    %c0_317 = arith.constant 0 : index
    %c0_318 = arith.constant 0 : index
    %340 = vector.load %arg3[%c1_316, %c0_317, %c0_318] : memref<6x196x128xbf16, #tpu.memory_space<vmem>>, vector<1x196x128xbf16>
    %341 = vector.shape_cast %340 : vector<1x196x128xbf16> to vector<196x128xbf16>
    %cst_319 = arith.constant dense<0.000000e+00> : vector<8x128xf32>
    %342 = tpu.matmul %339, %341, %cst_319 {dimension_numbers = #tpu.dot_dimension_numbers<[1], [0], [0], [1], [0, 0, 1, 1], [], []>} : vector<8x196xbf16>, vector<196x128xbf16>, vector<8x128xf32> -> vector<8x128xf32>
    %343 = arith.addf %336, %342 : vector<8x128xf32>
    %c2_320 = arith.constant 2 : index
    %c0_321 = arith.constant 0 : index
    %c0_322 = arith.constant 0 : index
    %344 = vector.load %arg10[%c2_320, %c0_321, %c0_322] : memref<6x8x196xf32, #tpu.memory_space<vmem>>, vector<1x8x196xf32>
    %345 = vector.shape_cast %344 : vector<1x8x196xf32> to vector<8x196xf32>
    %346 = arith.truncf %345 : vector<8x196xf32> to vector<8x196xbf16>
    %c2_323 = arith.constant 2 : index
    %c0_324 = arith.constant 0 : index
    %c0_325 = arith.constant 0 : index
    %347 = vector.load %arg3[%c2_323, %c0_324, %c0_325] : memref<6x196x128xbf16, #tpu.memory_space<vmem>>, vector<1x196x128xbf16>
    %348 = vector.shape_cast %347 : vector<1x196x128xbf16> to vector<196x128xbf16>
    %cst_326 = arith.constant dense<0.000000e+00> : vector<8x128xf32>
    %349 = tpu.matmul %346, %348, %cst_326 {dimension_numbers = #tpu.dot_dimension_numbers<[1], [0], [0], [1], [0, 0, 1, 1], [], []>} : vector<8x196xbf16>, vector<196x128xbf16>, vector<8x128xf32> -> vector<8x128xf32>
    %350 = arith.addf %343, %349 : vector<8x128xf32>
    %c3_327 = arith.constant 3 : index
    %c0_328 = arith.constant 0 : index
    %c0_329 = arith.constant 0 : index
    %351 = vector.load %arg10[%c3_327, %c0_328, %c0_329] : memref<6x8x196xf32, #tpu.memory_space<vmem>>, vector<1x8x196xf32>
    %352 = vector.shape_cast %351 : vector<1x8x196xf32> to vector<8x196xf32>
    %353 = arith.truncf %352 : vector<8x196xf32> to vector<8x196xbf16>
    %c3_330 = arith.constant 3 : index
    %c0_331 = arith.constant 0 : index
    %c0_332 = arith.constant 0 : index
    %354 = vector.load %arg3[%c3_330, %c0_331, %c0_332] : memref<6x196x128xbf16, #tpu.memory_space<vmem>>, vector<1x196x128xbf16>
    %355 = vector.shape_cast %354 : vector<1x196x128xbf16> to vector<196x128xbf16>
    %cst_333 = arith.constant dense<0.000000e+00> : vector<8x128xf32>
    %356 = tpu.matmul %353, %355, %cst_333 {dimension_numbers = #tpu.dot_dimension_numbers<[1], [0], [0], [1], [0, 0, 1, 1], [], []>} : vector<8x196xbf16>, vector<196x128xbf16>, vector<8x128xf32> -> vector<8x128xf32>
    %357 = arith.addf %350, %356 : vector<8x128xf32>
    %c4_334 = arith.constant 4 : index
    %c0_335 = arith.constant 0 : index
    %c0_336 = arith.constant 0 : index
    %358 = vector.load %arg10[%c4_334, %c0_335, %c0_336] : memref<6x8x196xf32, #tpu.memory_space<vmem>>, vector<1x8x196xf32>
    %359 = vector.shape_cast %358 : vector<1x8x196xf32> to vector<8x196xf32>
    %360 = arith.truncf %359 : vector<8x196xf32> to vector<8x196xbf16>
    %c4_337 = arith.constant 4 : index
    %c0_338 = arith.constant 0 : index
    %c0_339 = arith.constant 0 : index
    %361 = vector.load %arg3[%c4_337, %c0_338, %c0_339] : memref<6x196x128xbf16, #tpu.memory_space<vmem>>, vector<1x196x128xbf16>
    %362 = vector.shape_cast %361 : vector<1x196x128xbf16> to vector<196x128xbf16>
    %cst_340 = arith.constant dense<0.000000e+00> : vector<8x128xf32>
    %363 = tpu.matmul %360, %362, %cst_340 {dimension_numbers = #tpu.dot_dimension_numbers<[1], [0], [0], [1], [0, 0, 1, 1], [], []>} : vector<8x196xbf16>, vector<196x128xbf16>, vector<8x128xf32> -> vector<8x128xf32>
    %364 = arith.addf %357, %363 : vector<8x128xf32>
    %c5_341 = arith.constant 5 : index
    %c0_342 = arith.constant 0 : index
    %c0_343 = arith.constant 0 : index
    %365 = vector.load %arg10[%c5_341, %c0_342, %c0_343] : memref<6x8x196xf32, #tpu.memory_space<vmem>>, vector<1x8x196xf32>
    %366 = vector.shape_cast %365 : vector<1x8x196xf32> to vector<8x196xf32>
    %367 = arith.truncf %366 : vector<8x196xf32> to vector<8x196xbf16>
    %c5_344 = arith.constant 5 : index
    %c0_345 = arith.constant 0 : index
    %c0_346 = arith.constant 0 : index
    %368 = vector.load %arg3[%c5_344, %c0_345, %c0_346] : memref<6x196x128xbf16, #tpu.memory_space<vmem>>, vector<1x196x128xbf16>
    %369 = vector.shape_cast %368 : vector<1x196x128xbf16> to vector<196x128xbf16>
    %cst_347 = arith.constant dense<0.000000e+00> : vector<8x128xf32>
    %370 = tpu.matmul %367, %369, %cst_347 {dimension_numbers = #tpu.dot_dimension_numbers<[1], [0], [0], [1], [0, 0, 1, 1], [], []>} : vector<8x196xbf16>, vector<196x128xbf16>, vector<8x128xf32> -> vector<8x128xf32>
    %371 = arith.addf %364, %370 : vector<8x128xf32>
    %c0_348 = arith.constant 0 : index
    %c0_349 = arith.constant 0 : index
    %372 = vector.load %arg4[%c0_348, %c0_349] : memref<1x128xf32, #tpu.memory_space<vmem>>, vector<1x128xf32>
    %373 = vector.broadcast %372 : vector<1x128xf32> to vector<8x128xf32>
    %374 = arith.addf %371, %373 : vector<8x128xf32>
    %cst_350 = arith.constant 0.000000e+00 : f32
    %375 = vector.broadcast %cst_350 : f32 to vector<8x128xf32>
    %376 = arith.maximumf %374, %375 : vector<8x128xf32>
    %377 = arith.truncf %376 : vector<8x128xf32> to vector<8x128xbf16>
    %c0_351 = arith.constant 0 : index
    %c0_352 = arith.constant 0 : index
    %378 = vector.load %arg5[%c0_351, %c0_352] : memref<128x128xbf16, #tpu.memory_space<vmem>>, vector<128x128xbf16>
    %cst_353 = arith.constant dense<0.000000e+00> : vector<8x128xf32>
    %379 = tpu.matmul %377, %378, %cst_353 {dimension_numbers = #tpu.dot_dimension_numbers<[1], [0], [0], [1], [0, 0, 1, 1], [], []>} : vector<8x128xbf16>, vector<128x128xbf16>, vector<8x128xf32> -> vector<8x128xf32>
    %c0_354 = arith.constant 0 : index
    %c0_355 = arith.constant 0 : index
    %380 = vector.load %arg6[%c0_354, %c0_355] : memref<1x128xf32, #tpu.memory_space<vmem>>, vector<1x128xf32>
    %381 = vector.broadcast %380 : vector<1x128xf32> to vector<8x128xf32>
    %382 = arith.addf %379, %381 : vector<8x128xf32>
    %cst_356 = arith.constant 0.000000e+00 : f32
    %383 = vector.broadcast %cst_356 : f32 to vector<8x128xf32>
    %384 = arith.maximumf %382, %383 : vector<8x128xf32>
    %385 = arith.truncf %384 : vector<8x128xf32> to vector<8x128xbf16>
    %c0_357 = arith.constant 0 : index
    %c0_358 = arith.constant 0 : index
    %386 = vector.load %arg7[%c0_357, %c0_358] : memref<128x128xbf16, #tpu.memory_space<vmem>>, vector<128x128xbf16>
    %cst_359 = arith.constant dense<0.000000e+00> : vector<8x128xf32>
    %387 = tpu.matmul %385, %386, %cst_359 {dimension_numbers = #tpu.dot_dimension_numbers<[1], [0], [0], [1], [0, 0, 1, 1], [], []>} : vector<8x128xbf16>, vector<128x128xbf16>, vector<8x128xf32> -> vector<8x128xf32>
    %c0_360 = arith.constant 0 : index
    %c0_361 = arith.constant 0 : index
    %388 = vector.load %arg8[%c0_360, %c0_361] : memref<1x128xf32, #tpu.memory_space<vmem>>, vector<1x128xf32>
    %389 = vector.broadcast %388 : vector<1x128xf32> to vector<8x128xf32>
    %390 = arith.addf %387, %389 : vector<8x128xf32>
    %c0_362 = arith.constant 0 : index
    %c0_363 = arith.constant 0 : index
    %391 = vector.load %arg9[%c0_362, %c0_363] : memref<8x128xf32, #tpu.memory_space<vmem>>, vector<8x128xf32>
    tpu.vector_store %arg9[%c0_362, %c0_363], %390 {strides = array<i32>} : memref<8x128xf32, #tpu.memory_space<vmem>>, vector<8x128xf32>,
    return
  }
  func.func @transform_0(%arg0: i32) -> (i32, i32, i32, i32) {
    %c0_i32 = arith.constant 0 : i32
    %c0_i32_0 = arith.constant 0 : i32
    %c0_i32_1 = arith.constant 0 : i32
    %c0_i32_2 = arith.constant 0 : i32
    return %arg0, %c0_i32, %c0_i32_0, %c0_i32_1 : i32, i32, i32, i32
  }
  func.func @transform_1(%arg0: i32) -> (i32, i32) {
    %c0_i32 = arith.constant 0 : i32
    %c0_i32_0 = arith.constant 0 : i32
    %c0_i32_1 = arith.constant 0 : i32
    return %c0_i32, %c0_i32_0 : i32, i32
  }
  func.func @transform_2(%arg0: i32) -> (i32, i32, i32) {
    %c0_i32 = arith.constant 0 : i32
    %c0_i32_0 = arith.constant 0 : i32
    %c0_i32_1 = arith.constant 0 : i32
    %c0_i32_2 = arith.constant 0 : i32
    return %c0_i32, %c0_i32_0, %c0_i32_1 : i32, i32, i32
  }
  func.func @transform_3(%arg0: i32) -> (i32, i32) {
    %c0_i32 = arith.constant 0 : i32
    %c0_i32_0 = arith.constant 0 : i32
    %c0_i32_1 = arith.constant 0 : i32
    return %c0_i32, %c0_i32_0 : i32, i32
  }
  func.func @transform_4(%arg0: i32) -> (i32, i32) {
    %c0_i32 = arith.constant 0 : i32
    %c0_i32_0 = arith.constant 0 : i32
    %c0_i32_1 = arith.constant 0 : i32
    return %c0_i32, %c0_i32_0 : i32, i32
  }
  func.func @transform_5(%arg0: i32) -> (i32, i32) {
    %c0_i32 = arith.constant 0 : i32
    %c0_i32_0 = arith.constant 0 : i32
    %c0_i32_1 = arith.constant 0 : i32
    return %c0_i32, %c0_i32_0 : i32, i32
  }
  func.func @transform_6(%arg0: i32) -> (i32, i32) {
    %c0_i32 = arith.constant 0 : i32
    %c0_i32_0 = arith.constant 0 : i32
    %c0_i32_1 = arith.constant 0 : i32
    return %c0_i32, %c0_i32_0 : i32, i32
  }
  func.func @transform_7(%arg0: i32) -> (i32, i32) {
    %c0_i32 = arith.constant 0 : i32
    %c0_i32_0 = arith.constant 0 : i32
    %c0_i32_1 = arith.constant 0 : i32
    return %c0_i32, %c0_i32_0 : i32, i32
  }
  func.func @transform_8(%arg0: i32) -> (i32, i32) {
    %c0_i32 = arith.constant 0 : i32
    %c0_i32_0 = arith.constant 0 : i32
    return %arg0, %c0_i32 : i32, i32
  }
}

</mosaic_0001>

<bundles_post_ra>
// kernel: net_forward.1
= control target key start
LH: loop header
LB: loop body
LE: loop exit
PB: predicated region body
PF: predicated region fallthrough
CT: control target
= control target key end

     0   :  { %vm91_vm0 = vcmask 654336   ;;  %vm393_vm1 = vcmask 1040384   ;;  %vm3408_vm3 = vcmask 1041408   ;;  %vm3404_vm4 = vcmask 556032   ;;  %s9556_s0 = inlined_call_operand.vmem [shape: bf16[8,4,80,196], index: 0, kind: input, shape index: {}]   ;;  %s9557_s1 = inlined_call_operand.vmem [shape: bf16[8,80], index: 1, kind: input, shape index: {}]   ;;  %s9558_s2 = inlined_call_operand.vmem [shape: bf16[6,196,128], index: 2, kind: input, shape index: {}]   ;;  %s9559_s3 = inlined_call_operand.vmem [shape: f32[1,128], index: 3, kind: input, shape index: {}]   ;;  %s9560_s5 = inlined_call_operand.vmem [shape: f32[1,128], index: 5, kind: input, shape index: {}]   ;;  %s9561_s4 = inlined_call_operand.vmem [shape: bf16[128,128], index: 4, kind: input, shape index: {}]   ;;  %s9562_s6 = inlined_call_operand.vmem [shape: bf16[128,128], index: 6, kind: input, shape index: {}]   ;;  %s9563_s7 = inlined_call_operand.vmem [shape: f32[1,128], index: 7, kind: input, shape index: {}]   ;;  %s9564_s8 = inlined_call_operand.vmem [shape: f32[8,128], index: 8, kind: output, shape index: {}]  }
   0x1   :  { %v4342_v0 = vld [vmem:[%s9556_s0 + $0x40] sm:$0xf]  ;;  %v6454_v1 = vld [vmem:[%s9556_s0 + $0x44] sm:$0xf0]  ;;  %v6453_v2 = vld [vmem:[%s9556_s0 + $0x44] sm:$0xf] }
   0x2   :  { %v4343_v3 = vor.u32 %v6454_v1, %v4342_v0  ;;  %v4344_v4 = vld [vmem:[%s9556_s0 + $0x48] sm:$0xf0]  ;;  %v4394_v5 = vld [vmem:[%s9556_s0 + $0x90] sm:$0xf]  ;;  %v6464_v6 = vld [vmem:[%s9556_s0 + $0x94] sm:$0xf0] }
   0x3   :  { %v4347_v7 = vor.u32 %v6453_v2, %v4344_v4  ;;  %v4395_v8 = vor.u32 %v6464_v6, %v4394_v5  ;;  %v6463_v9 = vld [vmem:[%s9556_s0 + $0x94] sm:$0xf]  ;;  %v4396_v10 = vld [vmem:[%s9556_s0 + $0x98] sm:$0xf0]  ;;  %v4334_v11 = vld [vmem:[%s9556_s0 + $0x30] sm:$0xf] }
   0x4   :  { %98 = vmatpush.bf16.msra.mxu0 %v4343_v3  ;;  %v4399_v12 = vor.u32 %v6463_v9, %v4396_v10  ;;  %v6452_v13 = vld [vmem:[%s9556_s0 + $0x34] sm:$0xf0]  ;;  %v6451_v14 = vld [vmem:[%s9556_s0 + $0x34] sm:$0xf]  ;;  %v4336_v15 = vld [vmem:[%s9556_s0 + $0x38] sm:$0xf0] }
   0x5   :  { %111 = vmatpush.bf16.msra.mxu1 %v4347_v7  ;;  %185 = vmatpush.bf16.msra.mxu2 %v4395_v8  ;;  %v4335_v16 = vor.u32 %v6452_v13, %v4334_v11  ;;  %v4339_v17 = vor.u32 %v6451_v14, %v4336_v15  ;;  %v4386_v18 = vld [vmem:[%s9556_s0 + $0x80] sm:$0xf]  ;;  %v6462_v19 = vld [vmem:[%s9556_s0 + $0x84] sm:$0xf0]  ;;  %v6461_v20 = vld [vmem:[%s9556_s0 + $0x84] sm:$0xf] }
   0x6   :  { %198 = vmatpush.bf16.msra.mxu3 %v4399_v12  ;;  %v4387_v21 = vor.u32 %v6462_v19, %v4386_v18  ;;  %v4388_v22 = vld [vmem:[%s9556_s0 + $0x88] sm:$0xf0]  ;;  %v4326_v23 = vld [vmem:[%s9556_s0 + $0x20] sm:$0xf]  ;;  %v6450_v24 = vld [vmem:[%s9556_s0 + $0x24] sm:$0xf0] }
   0x7   :  { %v4391_v25 = vor.u32 %v6461_v20, %v4388_v22  ;;  %v6449_v26 = vld [vmem:[%s9556_s0 + $0x24] sm:$0xf]  ;;  %v4328_v27 = vld [vmem:[%s9556_s0 + $0x28] sm:$0xf0]  ;;  %v4378_v28 = vld [vmem:[%s9556_s0 + $0x70] sm:$0xf]  ;;  %v4327_v29 = vor.u32 %v6450_v24, %v4326_v23 }
   0x8   :  { %99 = vmatpush.bf16.msra.mxu0 %v4335_v16  ;;  %v6460_v30 = vld [vmem:[%s9556_s0 + $0x74] sm:$0xf0]  ;;  %v6459_v31 = vld [vmem:[%s9556_s0 + $0x74] sm:$0xf]  ;;  %v4380_v32 = vld [vmem:[%s9556_s0 + $0x78] sm:$0xf0]  ;;  %v4331_v33 = vor.u32 %v6449_v26, %v4328_v27 }
   0x9   :  { %112 = vmatpush.bf16.msra.mxu1 %v4339_v17  ;;  %186 = vmatpush.bf16.msra.mxu2 %v4387_v21  ;;  %v4379_v34 = vor.u32 %v6460_v30, %v4378_v28  ;;  %v4318_v35 = vld [vmem:[%s9556_s0 + $0x10] sm:$0xf]  ;;  %v6448_v36 = vld [vmem:[%s9556_s0 + $0x14] sm:$0xf0]  ;;  %v6447_v37 = vld [vmem:[%s9556_s0 + $0x14] sm:$0xf]  ;;  %v4383_v38 = vor.u32 %v6459_v31, %v4380_v32 }
   0xa   :  { %199 = vmatpush.bf16.msra.mxu3 %v4391_v25  ;;  %v4320_v39 = vld [vmem:[%s9556_s0 + $0x18] sm:$0xf0]  ;;  %v4370_v40 = vld [vmem:[%s9556_s0 + $0x60] sm:$0xf]  ;;  %v6458_v41 = vld [vmem:[%s9556_s0 + $0x64] sm:$0xf0]  ;;  %v4319_v44 = vor.u32 %v6448_v36, %v4318_v35 }
   0xb   :  { %v6457_v42 = vld [vmem:[%s9556_s0 + $0x64] sm:$0xf]  ;;  %v4372_v43 = vld [vmem:[%s9556_s0 + $0x68] sm:$0xf0]  ;;  %v4310_v45 = vld [vmem:[%s9556_s0] sm:$0xf]  ;;  %v4323_v47 = vor.u32 %v6447_v37, %v4320_v39  ;;  %v4371_v48 = vor.u32 %v6458_v41, %v4370_v40 }
   0xc   :  { %100 = vmatpush.bf16.msra.mxu0 %v4327_v29  ;;  %v6446_v46 = vld [vmem:[%s9556_s0 + $0x4] sm:$0xf0]  ;;  %v6445_v49 = vld [vmem:[%s9556_s0 + $0x4] sm:$0xf]  ;;  %v4312_v50 = vld [vmem:[%s9556_s0 + $0x8] sm:$0xf0]  ;;  %v4375_v52 = vor.u32 %v6457_v42, %v4372_v43 }
   0xd   :  { %113 = vmatpush.bf16.msra.mxu1 %v4331_v33  ;;  %187 = vmatpush.bf16.msra.mxu2 %v4379_v34  ;;  %v4362_v51 = vld [vmem:[%s9556_s0 + $0x50] sm:$0xf]  ;;  %v6456_v53 = vld [vmem:[%s9556_s0 + $0x54] sm:$0xf0]  ;;  %v6455_v54 = vld [vmem:[%s9556_s0 + $0x54] sm:$0xf]  ;;  %v4311_v59 = vor.u32 %v6446_v46, %v4310_v45  ;;  %v4315_v63 = vor.u32 %v6445_v49, %v4312_v50 }
   0xe   :  { %200 = vmatpush.bf16.msra.mxu3 %v4383_v38  ;;  %v4364_v55 = vld [vmem:[%s9556_s0 + $0x58] sm:$0xf0]  ;;  %v4446_v56 = vld [vmem:[%s9556_s0 + $0xe0] sm:$0xf]  ;;  %v6474_v57 = vld [vmem:[%s9556_s0 + $0xe4] sm:$0xf0]  ;;  %v4363_v0 = vor.u32 %v6456_v53, %v4362_v51 }
   0xf   :  { %v6473_v58 = vld [vmem:[%s9556_s0 + $0xe4] sm:$0xf]  ;;  %v4448_v60 = vld [vmem:[%s9556_s0 + $0xe8] sm:$0xf0]  ;;  %v4498_v61 = vld [vmem:[%s9556_s0 + $0x130] sm:$0xf]  ;;  %v4367_v3 = vor.u32 %v6455_v54, %v4364_v55  ;;  %v4447_v4 = vor.u32 %v6474_v57, %v4446_v56 }
  0x10   :  { %101 = vmatpush.bf16.msra.mxu0 %v4319_v44  ;;  %v6484_v62 = vld [vmem:[%s9556_s0 + $0x134] sm:$0xf0]  ;;  %v6483_v1 = vld [vmem:[%s9556_s0 + $0x134] sm:$0xf]  ;;  %v4500_v2 = vld [vmem:[%s9556_s0 + $0x138] sm:$0xf0]  ;;  %v4451_v5 = vor.u32 %v6473_v58, %v4448_v60 }
  0x11   :  { %114 = vmatpush.bf16.msra.mxu1 %v4323_v47  ;;  %188 = vmatpush.bf16.msra.mxu2 %v4371_v48  ;;  %v4499_v6 = vor.u32 %v6484_v62, %v4498_v61  ;;  %v4438_v7 = vld [vmem:[%s9556_s0 + $0xd0] sm:$0xf]  ;;  %v6472_v8 = vld [vmem:[%s9556_s0 + $0xd4] sm:$0xf0]  ;;  %v6471_v9 = vld [vmem:[%s9556_s0 + $0xd4] sm:$0xf]  ;;  %v4503_v10 = vor.u32 %v6483_v1, %v4500_v2 }
  0x12   :  { %201 = vmatpush.bf16.msra.mxu3 %v4375_v52  ;;  %v4440_v11 = vld [vmem:[%s9556_s0 + $0xd8] sm:$0xf0]  ;;  %v4490_v12 = vld [vmem:[%s9556_s0 + $0x120] sm:$0xf]  ;;  %v6482_v13 = vld [vmem:[%s9556_s0 + $0x124] sm:$0xf0]  ;;  %v4439_v17 = vor.u32 %v6472_v8, %v4438_v7 }
  0x13   :  { %v7068_v14 = vld [vmem:[%s9557_s1] sm:$0xf]  ;;  %v6481_v15 = vld [vmem:[%s9556_s0 + $0x124] sm:$0xf]  ;;  %v4492_v16 = vld [vmem:[%s9556_s0 + $0x128] sm:$0xf0]  ;;  %v4443_v18 = vor.u32 %v6471_v9, %v4440_v11  ;;  %v4491_v19 = vor.u32 %v6482_v13, %v4490_v12 }
  0x14   :  { %102 = vmatpush.bf16.msra.mxu0 %v4311_v59  ;;  %v4430_v20 = vld [vmem:[%s9556_s0 + $0xc0] sm:$0xf]  ;;  %v6470_v21 = vld [vmem:[%s9556_s0 + $0xc4] sm:$0xf0]  ;;  %v6469_v22 = vld [vmem:[%s9556_s0 + $0xc4] sm:$0xf]  ;;  %v4495_v23 = vor.u32 %v6481_v15, %v4492_v16 }
  0x15   :  { %115 = vmatpush.bf16.msra.mxu1 %v4315_v63  ;;  %189 = vmatpush.bf16.msra.mxu2 %v4363_v0  ;;  %v4432_v24 = vld [vmem:[%s9556_s0 + $0xc8] sm:$0xf0]  ;;  %v4482_v25 = vld [vmem:[%s9556_s0 + $0x110] sm:$0xf]  ;;  %v6480_v26 = vld [vmem:[%s9556_s0 + $0x114] sm:$0xf0]  ;;  %v4431_v29 = vor.u32 %v6470_v21, %v4430_v20 }
  0x16   :  { %202 = vmatpush.bf16.msra.mxu3 %v4367_v3  ;;  %v6479_v27 = vld [vmem:[%s9556_s0 + $0x114] sm:$0xf]  ;;  %v4484_v28 = vld [vmem:[%s9556_s0 + $0x118] sm:$0xf0]  ;;  %v4435_v30 = vor.u32 %v6469_v22, %v4432_v24  ;;  %v4483_v31 = vor.u32 %v6480_v26, %v4482_v25  ;;  %v4422_v32 = vld [vmem:[%s9556_s0 + $0xb0] sm:$0xf] }
  0x17   :  { %4348 = vmatmul.msk.bf16.vlgmr.msra.gmra.mxu0 %vm91_vm0, %v7068_v14  ;;  %v6468_v33 = vld [vmem:[%s9556_s0 + $0xb4] sm:$0xf0]  ;;  %v6467_v34 = vld [vmem:[%s9556_s0 + $0xb4] sm:$0xf]  ;;  %v4487_v35 = vor.u32 %v6479_v27, %v4484_v28  ;;  %v4424_v36 = vld [vmem:[%s9556_s0 + $0xb8] sm:$0xf0] }
  0x18   :  { %274 = vmatpush.bf16.msrb.mxu0 %v4447_v4  ;;  %4349 = vmatmul.msk.bf16.vlgmr.msra.gmra.mxu1 %vm91_vm0, %v7068_v14  ;;  %v4474_v37 = vld [vmem:[%s9556_s0 + $0x100] sm:$0xf]  ;;  %v6478_v38 = vld [vmem:[%s9556_s0 + $0x104] sm:$0xf0]  ;;  %v6477_v39 = vld [vmem:[%s9556_s0 + $0x104] sm:$0xf]  ;;  %v4423_v41 = vor.u32 %v6468_v33, %v4422_v32  ;;  %v4427_v44 = vor.u32 %v6467_v34, %v4424_v36 }
  0x19   :  { %287 = vmatpush.bf16.msrb.mxu1 %v4451_v5  ;;  %363 = vmatpush.bf16.msrb.mxu2 %v4499_v6  ;;  %v4476_v40 = vld [vmem:[%s9556_s0 + $0x108] sm:$0xf0]  ;;  %v4414_v42 = vld [vmem:[%s9556_s0 + $0xa0] sm:$0xf]  ;;  %v6466_v43 = vld [vmem:[%s9556_s0 + $0xa4] sm:$0xf0]  ;;  %v4475_v45 = vor.u32 %v6478_v38, %v4474_v37 }
  0x1a   :  { %376 = vmatpush.bf16.msrb.mxu3 %v4503_v10  ;;  %4400 = vmatmul.msk.bf16.vlgmr.msra.gmra.mxu2 %vm91_vm0, %v7068_v14  ;;  %v6465_v46 = vld [vmem:[%s9556_s0 + $0xa4] sm:$0xf]  ;;  %v4416_v47 = vld [vmem:[%s9556_s0 + $0xa8] sm:$0xf0]  ;;  %v4466_v48 = vld [vmem:[%s9556_s0 + $0xf0] sm:$0xf]  ;;  %v4479_v49 = vor.u32 %v6477_v39, %v4476_v40  ;;  %v4415_v56 = vor.u32 %v6466_v43, %v4414_v42 }
  0x1b   :  { %4401 = vmatmul.msk.bf16.vlgmr.msra.gmra.mxu3 %vm91_vm0, %v7068_v14  ;;  %v6476_v50 = vld [vmem:[%s9556_s0 + $0xf4] sm:$0xf0]  ;;  %v6475_v51 = vld [vmem:[%s9556_s0 + $0xf4] sm:$0xf]  ;;  %v4468_v52 = vld [vmem:[%s9556_s0 + $0xf8] sm:$0xf0]  ;;  %v4419_v60 = vor.u32 %v6465_v46, %v4416_v47 }
  0x1c   :  { %275 = vmatpush.bf16.msrb.mxu0 %v4439_v17  ;;  %v4550_v53 = vld [vmem:[%s9556_s0 + $0x180] sm:$0xf]  ;;  %v6494_v54 = vld [vmem:[%s9556_s0 + $0x184] sm:$0xf0]  ;;  %v6493_v55 = vld [vmem:[%s9556_s0 + $0x184] sm:$0xf]  ;;  %v4467_v61 = vor.u32 %v6476_v50, %v4466_v48  ;;  %v4471_v0 = vor.u32 %v6475_v51, %v4468_v52 }
  0x1d   :  { %288 = vmatpush.bf16.msrb.mxu1 %v4443_v18  ;;  %364 = vmatpush.bf16.msrb.mxu2 %v4491_v19  ;;  %v4552_v57 = vld [vmem:[%s9556_s0 + $0x188] sm:$0xf0]  ;;  %v4602_v58 = vld [vmem:[%s9556_s0 + $0x1d0] sm:$0xf]  ;;  %v6504_v59 = vld [vmem:[%s9556_s0 + $0x1d4] sm:$0xf0]  ;;  %v4551_v1 = vor.u32 %v6494_v54, %v4550_v53 }
  0x1e   :  { %377 = vmatpush.bf16.msrb.mxu3 %v4495_v23  ;;  %v6503_v62 = vld [vmem:[%s9556_s0 + $0x1d4] sm:$0xf]  ;;  %v4604_v63 = vld [vmem:[%s9556_s0 + $0x1d8] sm:$0xf0]  ;;  %v4555_v2 = vor.u32 %v6493_v55, %v4552_v57  ;;  %v4603_v3 = vor.u32 %v6504_v59, %v4602_v58  ;;  %v4542_v4 = vld [vmem:[%s9556_s0 + $0x170] sm:$0xf] }
  0x1f   :  { %v6492_v5 = vld [vmem:[%s9556_s0 + $0x174] sm:$0xf0]  ;;  %v6491_v6 = vld [vmem:[%s9556_s0 + $0x174] sm:$0xf]  ;;  %v4607_v7 = vor.u32 %v6503_v62, %v4604_v63  ;;  %v4544_v8 = vld [vmem:[%s9556_s0 + $0x178] sm:$0xf0] }
  0x20   :  { %276 = vmatpush.bf16.msrb.mxu0 %v4431_v29  ;;  %v4594_v9 = vld [vmem:[%s9556_s0 + $0x1c0] sm:$0xf]  ;;  %v6502_v10 = vld [vmem:[%s9556_s0 + $0x1c4] sm:$0xf0]  ;;  %v6501_v11 = vld [vmem:[%s9556_s0 + $0x1c4] sm:$0xf]  ;;  %v4543_v13 = vor.u32 %v6492_v5, %v4542_v4  ;;  %v4547_v15 = vor.u32 %v6491_v6, %v4544_v8 }
  0x21   :  { %289 = vmatpush.bf16.msrb.mxu1 %v4435_v30  ;;  %365 = vmatpush.bf16.msrb.mxu2 %v4483_v31  ;;  %v4596_v12 = vld [vmem:[%s9556_s0 + $0x1c8] sm:$0xf0]  ;;  %v4595_v16 = vor.u32 %v6502_v10, %v4594_v9  ;;  %v4534_v17 = vld [vmem:[%s9556_s0 + $0x160] sm:$0xf]  ;;  %v6490_v18 = vld [vmem:[%s9556_s0 + $0x164] sm:$0xf0] }
  0x22   :  { %378 = vmatpush.bf16.msrb.mxu3 %v4487_v35  ;;  %v6489_v19 = vld [vmem:[%s9556_s0 + $0x164] sm:$0xf]  ;;  %v4599_v20 = vor.u32 %v6501_v11, %v4596_v12  ;;  %v4536_v21 = vld [vmem:[%s9556_s0 + $0x168] sm:$0xf0]  ;;  %v4586_v22 = vld [vmem:[%s9556_s0 + $0x1b0] sm:$0xf]  ;;  %v4535_v26 = vor.u32 %v6490_v18, %v4534_v17 }
  0x23   :  { %v6500_v23 = vld [vmem:[%s9556_s0 + $0x1b4] sm:$0xf0]  ;;  %v6499_v24 = vld [vmem:[%s9556_s0 + $0x1b4] sm:$0xf]  ;;  %v4588_v25 = vld [vmem:[%s9556_s0 + $0x1b8] sm:$0xf0]  ;;  %v4539_v27 = vor.u32 %v6489_v19, %v4536_v21 }
  0x24   :  { %277 = vmatpush.bf16.msrb.mxu0 %v4423_v41  ;;  %v4587_v28 = vor.u32 %v6500_v23, %v4586_v22  ;;  %v4526_v29 = vld [vmem:[%s9556_s0 + $0x150] sm:$0xf]  ;;  %v6488_v30 = vld [vmem:[%s9556_s0 + $0x154] sm:$0xf0]  ;;  %v6487_v31 = vld [vmem:[%s9556_s0 + $0x154] sm:$0xf]  ;;  %v4591_v32 = vor.u32 %v6499_v24, %v4588_v25 }
  0x25   :  { %290 = vmatpush.bf16.msrb.mxu1 %v4427_v44  ;;  %366 = vmatpush.bf16.msrb.mxu2 %v4475_v45  ;;  %v4528_v33 = vld [vmem:[%s9556_s0 + $0x158] sm:$0xf0]  ;;  %v4578_v34 = vld [vmem:[%s9556_s0 + $0x1a0] sm:$0xf]  ;;  %v6498_v35 = vld [vmem:[%s9556_s0 + $0x1a4] sm:$0xf0]  ;;  %v4527_v38 = vor.u32 %v6488_v30, %v4526_v29 }
  0x26   :  { %379 = vmatpush.bf16.msrb.mxu3 %v4479_v49  ;;  %v6497_v36 = vld [vmem:[%s9556_s0 + $0x1a4] sm:$0xf]  ;;  %v4580_v37 = vld [vmem:[%s9556_s0 + $0x1a8] sm:$0xf0]  ;;  %v4518_v39 = vld [vmem:[%s9556_s0 + $0x140] sm:$0xf]  ;;  %v4531_v41 = vor.u32 %v6487_v31, %v4528_v33  ;;  %v4579_v42 = vor.u32 %v6498_v35, %v4578_v34 }
  0x27   :  { %v6486_v40 = vld [vmem:[%s9556_s0 + $0x144] sm:$0xf0]  ;;  %v6485_v43 = vld [vmem:[%s9556_s0 + $0x144] sm:$0xf]  ;;  %v4520_v44 = vld [vmem:[%s9556_s0 + $0x148] sm:$0xf0]  ;;  %v4583_v46 = vor.u32 %v6497_v36, %v4580_v37 }
  0x28   :  { %278 = vmatpush.bf16.msrb.mxu0 %v4415_v56  ;;  %v4570_v45 = vld [vmem:[%s9556_s0 + $0x190] sm:$0xf]  ;;  %v6496_v47 = vld [vmem:[%s9556_s0 + $0x194] sm:$0xf0]  ;;  %v6495_v48 = vld [vmem:[%s9556_s0 + $0x194] sm:$0xf]  ;;  %v4519_v53 = vor.u32 %v6486_v40, %v4518_v39  ;;  %v4523_v57 = vor.u32 %v6485_v43, %v4520_v44 }
  0x29   :  { %291 = vmatpush.bf16.msrb.mxu1 %v4419_v60  ;;  %367 = vmatpush.bf16.msrb.mxu2 %v4467_v61  ;;  %v4572_v49 = vld [vmem:[%s9556_s0 + $0x198] sm:$0xf0]  ;;  %v4654_v50 = vld [vmem:[%s9556_s0 + $0x220] sm:$0xf]  ;;  %v6514_v51 = vld [vmem:[%s9556_s0 + $0x224] sm:$0xf0]  ;;  %v4571_v58 = vor.u32 %v6496_v47, %v4570_v45 }
  0x2a   :  { %380 = vmatpush.bf16.msrb.mxu3 %v4471_v0  ;;  %v6513_v52 = vld [vmem:[%s9556_s0 + $0x224] sm:$0xf]  ;;  %v4656_v54 = vld [vmem:[%s9556_s0 + $0x228] sm:$0xf0]  ;;  %v4706_v55 = vld [vmem:[%s9556_s0 + $0x270] sm:$0xf]  ;;  %v4575_v61 = vor.u32 %v6495_v48, %v4572_v49  ;;  %v4655_v62 = vor.u32 %v6514_v51, %v4654_v50 }
  0x2b   :  { %4452 = vmatmul.msk.bf16.vlgmr.msrb.gmra.mxu0 %vm91_vm0, %v7068_v14  ;;  %v6524_v56 = vld [vmem:[%s9556_s0 + $0x274] sm:$0xf0]  ;;  %v6523_v59 = vld [vmem:[%s9556_s0 + $0x274] sm:$0xf]  ;;  %v4708_v60 = vld [vmem:[%s9556_s0 + $0x278] sm:$0xf0]  ;;  %v4659_v63 = vor.u32 %v6513_v52, %v4656_v54 }
  0x2c   :  { %506 = vmatpush.bf16.msra.mxu0 %v4551_v1  ;;  %4453 = vmatmul.msk.bf16.vlgmr.msrb.gmra.mxu1 %vm91_vm0, %v7068_v14  ;;  %v4707_v0 = vor.u32 %v6524_v56, %v4706_v55  ;;  %v4646_v1 = vld [vmem:[%s9556_s0 + $0x210] sm:$0xf]  ;;  %v4711_v4 = vor.u32 %v6523_v59, %v4708_v60  ;;  %v4648_v5 = vld [vmem:[%s9556_s0 + $0x218] sm:$0xf0]  ;;  %v4698_v6 = vld [vmem:[%s9556_s0 + $0x260] sm:$0xf] }
  0x2d   :  { %519 = vmatpush.bf16.msra.mxu1 %v4555_v2  ;;  %593 = vmatpush.bf16.msra.mxu2 %v4603_v3  ;;  %v6512_v2 = vld [vmem:[%s9556_s0 + $0x214] sm:$0xf0]  ;;  %v6511_v3 = vld [vmem:[%s9556_s0 + $0x214] sm:$0xf]  ;;  %v6521_v8 = vld [vmem:[%s9556_s0 + $0x264] sm:$0xf] }
  0x2e   :  { %606 = vmatpush.bf16.msra.mxu3 %v4607_v7  ;;  %4504 = vmatmul.msk.bf16.vlgmr.msrb.gmra.mxu2 %vm91_vm0, %v7068_v14  ;;  %v6522_v7 = vld [vmem:[%s9556_s0 + $0x264] sm:$0xf0]  ;;  %v4700_v9 = vld [vmem:[%s9556_s0 + $0x268] sm:$0xf0]  ;;  %v4647_v10 = vor.u32 %v6512_v2, %v4646_v1  ;;  %v4651_v11 = vor.u32 %v6511_v3, %v4648_v5  ;;  %v4690_v19 = vld [vmem:[%s9556_s0 + $0x250] sm:$0xf] }
  0x2f   :  { %4505 = vmatmul.msk.bf16.vlgmr.msrb.gmra.mxu3 %vm91_vm0, %v7068_v14  ;;  %v4699_v12 = vor.u32 %v6522_v7, %v4698_v6  ;;  %v4703_v17 = vor.u32 %v6521_v8, %v4700_v9  ;;  %v4640_v18 = vld [vmem:[%s9556_s0 + $0x208] sm:$0xf0]  ;;  %v6519_v21 = vld [vmem:[%s9556_s0 + $0x254] sm:$0xf]  ;;  %v4692_v22 = vld [vmem:[%s9556_s0 + $0x258] sm:$0xf0] }
  0x30   :  { %507 = vmatpush.bf16.msra.mxu0 %v4543_v13  ;;  %v4638_v13 = vld [vmem:[%s9556_s0 + $0x200] sm:$0xf]  ;;  %v4695_v29 = vor.u32 %v6519_v21, %v4692_v22  ;;  %v4632_v30 = vld [vmem:[%s9556_s0 + $0x1f8] sm:$0xf0]  ;;  %v6517_v33 = vld [vmem:[%s9556_s0 + $0x244] sm:$0xf] }
  0x31   :  { %520 = vmatpush.bf16.msra.mxu1 %v4547_v15  ;;  %594 = vmatpush.bf16.msra.mxu2 %v4595_v16  ;;  %v6510_v15 = vld [vmem:[%s9556_s0 + $0x204] sm:$0xf0]  ;;  %v6509_v16 = vld [vmem:[%s9556_s0 + $0x204] sm:$0xf]  ;;  %v4682_v31 = vld [vmem:[%s9556_s0 + $0x240] sm:$0xf] }
  0x32   :  { %607 = vmatpush.bf16.msra.mxu3 %v4599_v20  ;;  %v6520_v20 = vld [vmem:[%s9556_s0 + $0x254] sm:$0xf0]  ;;  %v4639_v23 = vor.u32 %v6510_v15, %v4638_v13  ;;  %v4643_v24 = vor.u32 %v6509_v16, %v4640_v18  ;;  %v4684_v34 = vld [vmem:[%s9556_s0 + $0x248] sm:$0xf0]  ;;  %v4622_v36 = vld [vmem:[%s9556_s0 + $0x1e0] sm:$0xf] }
  0x33   :  { %v4691_v25 = vor.u32 %v6520_v20, %v4690_v19  ;;  %v6506_v39 = vld [vmem:[%s9556_s0 + $0x1e4] sm:$0xf0]  ;;  %v6505_v40 = vld [vmem:[%s9556_s0 + $0x1e4] sm:$0xf]  ;;  %v4674_v43 = vld [vmem:[%s9556_s0 + $0x230] sm:$0xf] }
  0x34   :  { %508 = vmatpush.bf16.msra.mxu0 %v4535_v26  ;;  %v4630_v26 = vld [vmem:[%s9556_s0 + $0x1f0] sm:$0xf]  ;;  %v6516_v44 = vld [vmem:[%s9556_s0 + $0x234] sm:$0xf0]  ;;  %v6515_v45 = vld [vmem:[%s9556_s0 + $0x234] sm:$0xf]  ;;  %v4623_v49 = vor.u32 %v6506_v39, %v4622_v36 }
  0x35   :  { %521 = vmatpush.bf16.msra.mxu1 %v4539_v27  ;;  %595 = vmatpush.bf16.msra.mxu2 %v4587_v28  ;;  %v6508_v27 = vld [vmem:[%s9556_s0 + $0x1f4] sm:$0xf0]  ;;  %v6507_v28 = vld [vmem:[%s9556_s0 + $0x1f4] sm:$0xf]  ;;  %v4810_v47 = vld [vmem:[%s9556_s0 + $0x310] sm:$0xf] }
  0x36   :  { %608 = vmatpush.bf16.msra.mxu3 %v4591_v32  ;;  %v6518_v32 = vld [vmem:[%s9556_s0 + $0x244] sm:$0xf0]  ;;  %v4631_v35 = vor.u32 %v6508_v27, %v4630_v26  ;;  %v4635_v37 = vor.u32 %v6507_v28, %v4632_v30  ;;  %v6544_v48 = vld [vmem:[%s9556_s0 + $0x314] sm:$0xf0]  ;;  %v6543_v50 = vld [vmem:[%s9556_s0 + $0x314] sm:$0xf] }
  0x37   :  { %v4812_v51 = vld [vmem:[%s9556_s0 + $0x318] sm:$0xf0]  ;;  %v4811_v55 = vor.u32 %v6544_v48, %v4810_v47  ;;  %v4758_v56 = vld [vmem:[%s9556_s0 + $0x2c0] sm:$0xf]  ;;  %v4760_v60 = vld [vmem:[%s9556_s0 + $0x2c8] sm:$0xf0] }
  0x38   :  { %509 = vmatpush.bf16.msra.mxu0 %v4527_v38  ;;  %v4683_v38 = vor.u32 %v6518_v32, %v4682_v31  ;;  %v4815_v59 = vor.u32 %v6543_v50, %v4812_v51  ;;  %v6532_v5 = vld [vmem:[%s9556_s0 + $0x2b4] sm:$0xf0]  ;;  %v6531_v6 = vld [vmem:[%s9556_s0 + $0x2b4] sm:$0xf]  ;;  %v4752_v8 = vld [vmem:[%s9556_s0 + $0x2b8] sm:$0xf0] }
  0x39   :  { %522 = vmatpush.bf16.msra.mxu1 %v4531_v41  ;;  %596 = vmatpush.bf16.msra.mxu2 %v4579_v42  ;;  %v4624_v41 = vld [vmem:[%s9556_s0 + $0x1e8] sm:$0xf0]  ;;  %v4687_v42 = vor.u32 %v6517_v33, %v4684_v34  ;;  %v4794_v9 = vld [vmem:[%s9556_s0 + $0x2f0] sm:$0xf]  ;;  %v4755_v15 = vor.u32 %v6531_v6, %v4752_v8  ;;  %v6530_v18 = vld [vmem:[%s9556_s0 + $0x2a4] sm:$0xf0] }
  0x3a   :  { %609 = vmatpush.bf16.msra.mxu3 %v4583_v46  ;;  %v4676_v46 = vld [vmem:[%s9556_s0 + $0x238] sm:$0xf0]  ;;  %v4627_v52 = vor.u32 %v6505_v40, %v4624_v41  ;;  %v6529_v19 = vld [vmem:[%s9556_s0 + $0x2a4] sm:$0xf]  ;;  %v4744_v21 = vld [vmem:[%s9556_s0 + $0x2a8] sm:$0xf0] }
  0x3b   :  { %v4679_v54 = vor.u32 %v6515_v45, %v4676_v46  ;;  %v4786_v22 = vld [vmem:[%s9556_s0 + $0x2e0] sm:$0xf]  ;;  %v4734_v27 = vld [vmem:[%s9556_s0 + $0x290] sm:$0xf]  ;;  %v4747_v28 = vor.u32 %v6529_v19, %v4744_v21  ;;  %v6528_v30 = vld [vmem:[%s9556_s0 + $0x294] sm:$0xf0] }
  0x3c   :  { %510 = vmatpush.bf16.msra.mxu0 %v4519_v53  ;;  %v4675_v53 = vor.u32 %v6516_v44, %v4674_v43  ;;  %v6527_v31 = vld [vmem:[%s9556_s0 + $0x294] sm:$0xf]  ;;  %v4736_v32 = vld [vmem:[%s9556_s0 + $0x298] sm:$0xf0]  ;;  %v4778_v34 = vld [vmem:[%s9556_s0 + $0x2d0] sm:$0xf]  ;;  %v4735_v40 = vor.u32 %v6528_v30, %v4734_v27 }
  0x3d   :  { %523 = vmatpush.bf16.msra.mxu1 %v4523_v57  ;;  %597 = vmatpush.bf16.msra.mxu2 %v4571_v58  ;;  %v6534_v57 = vld [vmem:[%s9556_s0 + $0x2c4] sm:$0xf0]  ;;  %v6533_v58 = vld [vmem:[%s9556_s0 + $0x2c4] sm:$0xf]  ;;  %v6535_v36 = vld [vmem:[%s9556_s0 + $0x2d4] sm:$0xf]  ;;  %v4739_v43 = vor.u32 %v6527_v31, %v4736_v32 }
  0x3e   :  { %610 = vmatpush.bf16.msra.mxu3 %v4575_v61  ;;  %v4802_v61 = vld [vmem:[%s9556_s0 + $0x300] sm:$0xf]  ;;  %v4759_v1 = vor.u32 %v6534_v57, %v4758_v56  ;;  %v4763_v2 = vor.u32 %v6533_v58, %v4760_v60  ;;  %v6564_v39 = vld [vmem:[%s9556_s0 + $0x3b4] sm:$0xf0]  ;;  %v6563_v41 = vld [vmem:[%s9556_s0 + $0x3b4] sm:$0xf] }
  0x3f   :  { %4556 = vmatmul.msk.bf16.vlgmr.msra.gmra.mxu0 %vm91_vm0, %v7068_v14  ;;  %v4726_v45 = vld [vmem:[%s9556_s0 + $0x280] sm:$0xf]  ;;  %v6526_v46 = vld [vmem:[%s9556_s0 + $0x284] sm:$0xf0]  ;;  %v6525_v47 = vld [vmem:[%s9556_s0 + $0x284] sm:$0xf] }
  0x40   :  { %682 = vmatpush.bf16.msrb.mxu0 %v4655_v62  ;;  %4608 = vmatmul.msk.bf16.vlgmr.msra.gmra.mxu2 %vm91_vm0, %v7068_v14  ;;  %v6542_v62 = vld [vmem:[%s9556_s0 + $0x304] sm:$0xf0]  ;;  %v4728_v50 = vld [vmem:[%s9556_s0 + $0x288] sm:$0xf0]  ;;  %v4862_v51 = vld [vmem:[%s9556_s0 + $0x360] sm:$0xf]  ;;  %v4727_v57 = vor.u32 %v6526_v46, %v4726_v45 }
  0x41   :  { %695 = vmatpush.bf16.msrb.mxu1 %v4659_v63  ;;  %771 = vmatpush.bf16.msrb.mxu2 %v4707_v0  ;;  %v6541_v63 = vld [vmem:[%s9556_s0 + $0x304] sm:$0xf]  ;;  %v4804_v0 = vld [vmem:[%s9556_s0 + $0x308] sm:$0xf0]  ;;  %v4803_v3 = vor.u32 %v6542_v62, %v4802_v61  ;;  %v4906_v56 = vld [vmem:[%s9556_s0 + $0x3a0] sm:$0xf]  ;;  %v4731_v61 = vor.u32 %v6525_v47, %v4728_v50 }
  0x42   :  { %784 = vmatpush.bf16.msrb.mxu3 %v4711_v4  ;;  %4557 = vmatmul.msk.bf16.vlgmr.msra.gmra.mxu1 %vm91_vm0, %v7068_v14  ;;  %v4750_v4 = vld [vmem:[%s9556_s0 + $0x2b0] sm:$0xf]  ;;  %v4807_v7 = vor.u32 %v6541_v63, %v4804_v0  ;;  %v6562_v58 = vld [vmem:[%s9556_s0 + $0x3a4] sm:$0xf0]  ;;  %v4908_v60 = vld [vmem:[%s9556_s0 + $0x3a8] sm:$0xf0] }
  0x43   :  { %4609 = vmatmul.msk.bf16.vlgmr.msra.gmra.mxu3 %vm91_vm0, %v7068_v14  ;;  %v4751_v13 = vor.u32 %v6532_v5, %v4750_v4  ;;  %v4854_v0 = vld [vmem:[%s9556_s0 + $0x350] sm:$0xf]  ;;  %v6551_v4 = vld [vmem:[%s9556_s0 + $0x354] sm:$0xf]  ;;  %v4856_v5 = vld [vmem:[%s9556_s0 + $0x358] sm:$0xf0] }
  0x44   :  { %683 = vmatpush.bf16.msrb.mxu0 %v4647_v10  ;;  %v6540_v10 = vld [vmem:[%s9556_s0 + $0x2f4] sm:$0xf0]  ;;  %v4898_v6 = vld [vmem:[%s9556_s0 + $0x390] sm:$0xf]  ;;  %v6559_v8 = vld [vmem:[%s9556_s0 + $0x394] sm:$0xf] }
  0x45   :  { %696 = vmatpush.bf16.msrb.mxu1 %v4651_v11  ;;  %772 = vmatpush.bf16.msrb.mxu2 %v4699_v12  ;;  %v6539_v11 = vld [vmem:[%s9556_s0 + $0x2f4] sm:$0xf]  ;;  %v4796_v12 = vld [vmem:[%s9556_s0 + $0x2f8] sm:$0xf0]  ;;  %v4795_v16 = vor.u32 %v6540_v10, %v4794_v9  ;;  %v4890_v19 = vld [vmem:[%s9556_s0 + $0x380] sm:$0xf] }
  0x46   :  { %785 = vmatpush.bf16.msrb.mxu3 %v4703_v17  ;;  %v4742_v17 = vld [vmem:[%s9556_s0 + $0x2a0] sm:$0xf]  ;;  %v4799_v20 = vor.u32 %v6539_v11, %v4796_v12  ;;  %v4900_v9 = vld [vmem:[%s9556_s0 + $0x398] sm:$0xf0]  ;;  %v4859_v11 = vor.u32 %v6551_v4, %v4856_v5  ;;  %v6557_v21 = vld [vmem:[%s9556_s0 + $0x384] sm:$0xf] }
  0x47   :  { %v4743_v26 = vor.u32 %v6530_v18, %v4742_v17  ;;  %v4846_v12 = vld [vmem:[%s9556_s0 + $0x340] sm:$0xf]  ;;  %v6549_v17 = vld [vmem:[%s9556_s0 + $0x344] sm:$0xf]  ;;  %v4848_v18 = vld [vmem:[%s9556_s0 + $0x348] sm:$0xf0] }
  0x48   :  { %684 = vmatpush.bf16.msrb.mxu0 %v4639_v23  ;;  %v6538_v23 = vld [vmem:[%s9556_s0 + $0x2e4] sm:$0xf0]  ;;  %v6547_v27 = vld [vmem:[%s9556_s0 + $0x334] sm:$0xf]  ;;  %v4840_v30 = vld [vmem:[%s9556_s0 + $0x338] sm:$0xf0] }
  0x49   :  { %697 = vmatpush.bf16.msrb.mxu1 %v4643_v24  ;;  %773 = vmatpush.bf16.msrb.mxu2 %v4691_v25  ;;  %v6537_v24 = vld [vmem:[%s9556_s0 + $0x2e4] sm:$0xf]  ;;  %v4788_v25 = vld [vmem:[%s9556_s0 + $0x2e8] sm:$0xf0]  ;;  %v4882_v31 = vld [vmem:[%s9556_s0 + $0x370] sm:$0xf] }
  0x4a   :  { %786 = vmatpush.bf16.msrb.mxu3 %v4695_v29  ;;  %v4787_v29 = vor.u32 %v6538_v23, %v4786_v22  ;;  %v4791_v33 = vor.u32 %v6537_v24, %v4788_v25  ;;  %v4892_v22 = vld [vmem:[%s9556_s0 + $0x388] sm:$0xf0]  ;;  %v4851_v24 = vor.u32 %v6549_v17, %v4848_v18  ;;  %v4838_v25 = vld [vmem:[%s9556_s0 + $0x330] sm:$0xf]  ;;  %v6556_v32 = vld [vmem:[%s9556_s0 + $0x374] sm:$0xf0] }
  0x4b   :  { %v6545_v45 = vld [vmem:[%s9556_s0 + $0x324] sm:$0xf]  ;;  %v4832_v46 = vld [vmem:[%s9556_s0 + $0x328] sm:$0xf0]  ;;  %v6572_v4 = vld [vmem:[%s9556_s0 + $0x3f4] sm:$0xf0] }
  0x4c   :  { %685 = vmatpush.bf16.msrb.mxu0 %v4631_v35  ;;  %v6536_v35 = vld [vmem:[%s9556_s0 + $0x2d4] sm:$0xf0]  ;;  %v4968_v50 = vld [vmem:[%s9556_s0 + $0x408] sm:$0xf0]  ;;  %v4994_v18 = vld [vmem:[%s9556_s0 + $0x420] sm:$0xf] }
  0x4d   :  { %698 = vmatpush.bf16.msrb.mxu1 %v4635_v37  ;;  %774 = vmatpush.bf16.msrb.mxu2 %v4683_v38  ;;  %v4780_v37 = vld [vmem:[%s9556_s0 + $0x2d8] sm:$0xf0]  ;;  %v4914_v38 = vld [vmem:[%s9556_s0 + $0x3b0] sm:$0xf]  ;;  %v4779_v44 = vor.u32 %v6536_v35, %v4778_v34  ;;  %v6583_v35 = vld [vmem:[%s9556_s0 + $0x454] sm:$0xf] }
  0x4e   :  { %787 = vmatpush.bf16.msrb.mxu3 %v4687_v42  ;;  %v4916_v42 = vld [vmem:[%s9556_s0 + $0x3b8] sm:$0xf0]  ;;  %v4783_v48 = vor.u32 %v6535_v36, %v4780_v37 }
  0x4f   :  { %v4884_v34 = vld [vmem:[%s9556_s0 + $0x378] sm:$0xf0] }
  0x50   :  { %686 = vmatpush.bf16.msrb.mxu0 %v4623_v49  ;;  %v4915_v49 = vor.u32 %v6564_v39, %v4914_v38  ;;  %v5020_v37 = vld [vmem:[%s9556_s0 + $0x458] sm:$0xf0]  ;;  %v5018_v38 = vld [vmem:[%s9556_s0 + $0x450] sm:$0xf]  ;;  %v6584_v39 = vld [vmem:[%s9556_s0 + $0x454] sm:$0xf0] }
  0x51   :  { %699 = vmatpush.bf16.msrb.mxu1 %v4627_v52  ;;  %775 = vmatpush.bf16.msrb.mxu2 %v4675_v53  ;;  %v6554_v52 = vld [vmem:[%s9556_s0 + $0x364] sm:$0xf0]  ;;  %v4919_v53 = vor.u32 %v6563_v41, %v4916_v42  ;;  %v4830_v41 = vld [vmem:[%s9556_s0 + $0x320] sm:$0xf]  ;;  %v5023_v47 = vor.u32 %v6583_v35, %v5020_v37  ;;  %v6565_v37 = vld [vmem:[%s9556_s0 + $0x3c4] sm:$0xf] }
  0x52   :  { %788 = vmatpush.bf16.msrb.mxu3 %v4679_v54  ;;  %v6553_v54 = vld [vmem:[%s9556_s0 + $0x364] sm:$0xf]  ;;  %v4863_v62 = vor.u32 %v6554_v52, %v4862_v51  ;;  %v6546_v42 = vld [vmem:[%s9556_s0 + $0x324] sm:$0xf0] }
  0x53   :  { %4660 = vmatmul.msk.bf16.vlgmr.msrb.gmra.mxu0 %vm91_vm0, %v7068_v14  ;;  %v4831_v51 = vor.u32 %v6546_v42, %v4830_v41  ;;  %v6581_v52 = vld [vmem:[%s9556_s0 + $0x444] sm:$0xf]  ;;  %v5072_v42 = vld [vmem:[%s9556_s0 + $0x4a8] sm:$0xf0] }
  0x54   :  { %4661 = vmatmul.msk.bf16.vlgmr.msrb.gmra.mxu1 %vm91_vm0, %v7068_v14  ;;  %4712 = vmatmul.msk.bf16.vlgmr.msrb.gmra.mxu2 %vm91_vm0, %v7068_v14  ;;  %v6593_v41 = vld [vmem:[%s9556_s0 + $0x4a4] sm:$0xf] }
  0x55   :  { %997 = vmatpush.bf16.msra.mxu2 %v4811_v55  ;;  %4713 = vmatmul.msk.bf16.vlgmr.msrb.gmra.mxu3 %vm91_vm0, %v7068_v14  ;;  %v4864_v55 = vld [vmem:[%s9556_s0 + $0x368] sm:$0xf0] }
  0x56   :  { %1010 = vmatpush.bf16.msra.mxu3 %v4815_v59  ;;  %910 = vmatpush.bf16.msra.mxu0 %v4759_v1  ;;  %v6561_v59 = vld [vmem:[%s9556_s0 + $0x3a4] sm:$0xf]  ;;  %v4867_v63 = vor.u32 %v6553_v54, %v4864_v55  ;;  %v6552_v1 = vld [vmem:[%s9556_s0 + $0x354] sm:$0xf0]  ;;  %v4835_v54 = vor.u32 %v6545_v45, %v4832_v46  ;;  %v4966_v55 = vld [vmem:[%s9556_s0 + $0x400] sm:$0xf] }
  0x57   :  { %923 = vmatpush.bf16.msra.mxu1 %v4763_v2  ;;  %v4907_v2 = vor.u32 %v6562_v58, %v4906_v56  ;;  %v4855_v10 = vor.u32 %v6552_v1, %v4854_v0  ;;  %v6574_v56 = vld [vmem:[%s9556_s0 + $0x404] sm:$0xf0]  ;;  %v5010_v58 = vld [vmem:[%s9556_s0 + $0x440] sm:$0xf]  ;;  %v6579_v0 = vld [vmem:[%s9556_s0 + $0x434] sm:$0xf] }
  0x58   :  { %v5004_v1 = vld [vmem:[%s9556_s0 + $0x438] sm:$0xf0]  ;;  %v5116_v45 = vld [vmem:[%s9556_s0 + $0x4e8] sm:$0xf0]  ;;  %v4934_v46 = vld [vmem:[%s9556_s0 + $0x3c0] sm:$0xf] }
  0x59   :  { %998 = vmatpush.bf16.msra.mxu2 %v4803_v3  ;;  %v4911_v3 = vor.u32 %v6561_v59, %v4908_v60  ;;  %v6582_v59 = vld [vmem:[%s9556_s0 + $0x444] sm:$0xf0] }
  0x5a   :  { %1011 = vmatpush.bf16.msra.mxu3 %v4807_v7  ;;  %911 = vmatpush.bf16.msra.mxu0 %v4751_v13  ;;  %v6560_v7 = vld [vmem:[%s9556_s0 + $0x394] sm:$0xf0]  ;;  %v6550_v13 = vld [vmem:[%s9556_s0 + $0x344] sm:$0xf0] }
  0x5b   :  { %924 = vmatpush.bf16.msra.mxu1 %v4755_v15  ;;  %v4899_v15 = vor.u32 %v6560_v7, %v4898_v6  ;;  %v4847_v23 = vor.u32 %v6550_v13, %v4846_v12  ;;  %v5002_v6 = vld [vmem:[%s9556_s0 + $0x430] sm:$0xf]  ;;  %v6580_v7 = vld [vmem:[%s9556_s0 + $0x434] sm:$0xf0]  ;;  %v6577_v12 = vld [vmem:[%s9556_s0 + $0x424] sm:$0xf] }
  0x5c   :  { %v4996_v13 = vld [vmem:[%s9556_s0 + $0x428] sm:$0xf0] }
  0x5d   :  { %999 = vmatpush.bf16.msra.mxu2 %v4795_v16  ;;  %v4903_v16 = vor.u32 %v6559_v8, %v4900_v9  ;;  %v5007_v8 = vor.u32 %v6579_v0, %v5004_v1  ;;  %v6569_v9 = vld [vmem:[%s9556_s0 + $0x3e4] sm:$0xf]  ;;  %v6592_v0 = vld [vmem:[%s9556_s0 + $0x494] sm:$0xf0]  ;;  %v7853_v1 = vld [vmem:[%s9557_s1] sm:$0xf] }
  0x5e   :  { %1012 = vmatpush.bf16.msra.mxu3 %v4799_v20  ;;  %912 = vmatpush.bf16.msra.mxu0 %v4743_v26  ;;  %v6558_v20 = vld [vmem:[%s9556_s0 + $0x384] sm:$0xf0]  ;;  %v6548_v26 = vld [vmem:[%s9556_s0 + $0x334] sm:$0xf0] }
  0x5f   :  { %925 = vmatpush.bf16.msra.mxu1 %v4747_v28  ;;  %v4891_v28 = vor.u32 %v6558_v20, %v4890_v19  ;;  %v4839_v36 = vor.u32 %v6548_v26, %v4838_v25  ;;  %v6578_v19 = vld [vmem:[%s9556_s0 + $0x424] sm:$0xf0]  ;;  %v4999_v20 = vor.u32 %v6577_v12, %v4996_v13  ;;  %v4988_v25 = vld [vmem:[%s9556_s0 + $0x418] sm:$0xf0]  ;;  %v6603_v26 = vld [vmem:[%s9556_s0 + $0x4f4] sm:$0xf] }
  0x60   :  { %v5054_v12 = vld [vmem:[%s9556_s0 + $0x480] sm:$0xf]  ;;  %v6590_v13 = vld [vmem:[%s9556_s0 + $0x484] sm:$0xf0] }
  0x61   :  { %1000 = vmatpush.bf16.msra.mxu2 %v4787_v29  ;;  %v4895_v29 = vor.u32 %v6557_v21, %v4892_v22  ;;  %v6567_v21 = vld [vmem:[%s9556_s0 + $0x3d4] sm:$0xf]  ;;  %v4944_v22 = vld [vmem:[%s9556_s0 + $0x3d8] sm:$0xf0] }
  0x62   :  { %1013 = vmatpush.bf16.msra.mxu3 %v4791_v33  ;;  %913 = vmatpush.bf16.msra.mxu0 %v4735_v40  ;;  %v6555_v33 = vld [vmem:[%s9556_s0 + $0x374] sm:$0xf]  ;;  %v4843_v40 = vor.u32 %v6547_v27, %v4840_v30  ;;  %v4995_v27 = vor.u32 %v6578_v19, %v4994_v18  ;;  %v6568_v30 = vld [vmem:[%s9556_s0 + $0x3d4] sm:$0xf0]  ;;  %v5048_v19 = vld [vmem:[%s9556_s0 + $0x478] sm:$0xf0] }
  0x63   :  { %926 = vmatpush.bf16.msra.mxu1 %v4739_v43  ;;  %v4883_v43 = vor.u32 %v6556_v32, %v4882_v31  ;;  %v4947_v31 = vor.u32 %v6567_v21, %v4944_v22  ;;  %v4986_v32 = vld [vmem:[%s9556_s0 + $0x410] sm:$0xf]  ;;  %v6587_v18 = vld [vmem:[%s9556_s0 + $0x474] sm:$0xf]  ;;  %v5092_v22 = vld [vmem:[%s9556_s0 + $0x4b8] sm:$0xf0] }
  0x64   :  { %v6595_v21 = vld [vmem:[%s9556_s0 + $0x4b4] sm:$0xf] }
  0x65   :  { %1001 = vmatpush.bf16.msra.mxu2 %v4779_v44  ;;  %v4887_v44 = vor.u32 %v6555_v33, %v4884_v34  ;;  %v6576_v33 = vld [vmem:[%s9556_s0 + $0x414] sm:$0xf0]  ;;  %v5122_v34 = vld [vmem:[%s9556_s0 + $0x4f0] sm:$0xf] }
  0x66   :  { %1014 = vmatpush.bf16.msra.mxu3 %v4783_v48  ;;  %914 = vmatpush.bf16.msra.mxu0 %v4727_v57  ;;  %v5019_v48 = vor.u32 %v6584_v39, %v5018_v38  ;;  %v4936_v38 = vld [vmem:[%s9556_s0 + $0x3c8] sm:$0xf0] }
  0x67   :  { %927 = vmatpush.bf16.msra.mxu1 %v4731_v61  ;;  %v6571_v61 = vld [vmem:[%s9556_s0 + $0x3f4] sm:$0xf] }
  0x68   :  { %4816 = vmatmul.msk.bf16.vlgmr.msra.gmra.mxu2 %vm91_vm0, %v7068_v14 }
  0x69   :  { %1175 = vmatpush.bf16.msrb.mxu2 %v4915_v49  ;;  %4817 = vmatmul.msk.bf16.vlgmr.msra.gmra.mxu3 %vm91_vm0, %v7068_v14  ;;  %v6573_v49 = vld [vmem:[%s9556_s0 + $0x404] sm:$0xf] }
  0x6a   :  { %1188 = vmatpush.bf16.msrb.mxu3 %v4919_v53  ;;  %1086 = vmatpush.bf16.msrb.mxu0 %v4863_v62  ;;  %v5012_v53 = vld [vmem:[%s9556_s0 + $0x448] sm:$0xf0]  ;;  %v4971_v57 = vor.u32 %v6573_v49, %v4968_v50  ;;  %v4960_v62 = vld [vmem:[%s9556_s0 + $0x3f8] sm:$0xf0]  ;;  %v4939_v49 = vor.u32 %v6565_v37, %v4936_v38  ;;  %v5070_v50 = vld [vmem:[%s9556_s0 + $0x4a0] sm:$0xf] }
  0x6b   :  { %1099 = vmatpush.bf16.msrb.mxu1 %v4867_v63  ;;  %4764 = vmatmul.msk.bf16.vlgmr.msra.gmra.mxu0 %vm91_vm0, %v7068_v14  ;;  %v5015_v60 = vor.u32 %v6581_v52, %v5012_v53  ;;  %v4967_v63 = vor.u32 %v6574_v56, %v4966_v55  ;;  %v4963_v5 = vor.u32 %v6571_v61, %v4960_v62  ;;  %v5114_v53 = vld [vmem:[%s9556_s0 + $0x4e0] sm:$0xf]  ;;  %v5108_v61 = vld [vmem:[%s9556_s0 + $0x4d8] sm:$0xf0]  ;;  %v6613_v38 = vld [vmem:[%s9556_s0 + $0x544] sm:$0xf] }
  0x6c   :  { %4765 = vmatmul.msk.bf16.vlgmr.msra.gmra.mxu1 %vm91_vm0, %v7068_v14  ;;  %v5075_v52 = vor.u32 %v6593_v41, %v5072_v42  ;;  %v5220_v42 = vld [vmem:[%s9556_s0 + $0x588] sm:$0xf0] }
  0x6d   :  { %1176 = vmatpush.bf16.msrb.mxu2 %v4907_v2  ;;  %v5011_v2 = vor.u32 %v6582_v59, %v5010_v58  ;;  %v5064_v58 = vld [vmem:[%s9556_s0 + $0x498] sm:$0xf0] }
  0x6e   :  { %1189 = vmatpush.bf16.msrb.mxu3 %v4911_v3  ;;  %1087 = vmatpush.bf16.msrb.mxu0 %v4855_v10  ;;  %v4958_v3 = vld [vmem:[%s9556_s0 + $0x3f0] sm:$0xf]  ;;  %v4952_v10 = vld [vmem:[%s9556_s0 + $0x3e8] sm:$0xf0] }
  0x6f   :  { %1100 = vmatpush.bf16.msrb.mxu1 %v4859_v11  ;;  %v4959_v11 = vor.u32 %v6572_v4, %v4958_v3  ;;  %v4955_v17 = vor.u32 %v6569_v9, %v4952_v10  ;;  %v5106_v3 = vld [vmem:[%s9556_s0 + $0x4d0] sm:$0xf]  ;;  %v6600_v4 = vld [vmem:[%s9556_s0 + $0x4d4] sm:$0xf0]  ;;  %v6597_v9 = vld [vmem:[%s9556_s0 + $0x4c4] sm:$0xf] }
  0x70   :  { %v5100_v10 = vld [vmem:[%s9556_s0 + $0x4c8] sm:$0xf0] }
  0x71   :  { %1177 = vmatpush.bf16.msrb.mxu2 %v4899_v15  ;;  %v5003_v15 = vor.u32 %v6580_v7, %v5002_v6  ;;  %v6589_v6 = vld [vmem:[%s9556_s0 + $0x484] sm:$0xf]  ;;  %v5056_v7 = vld [vmem:[%s9556_s0 + $0x488] sm:$0xf0] }
  0x72   :  { %1190 = vmatpush.bf16.msrb.mxu3 %v4903_v16  ;;  %1088 = vmatpush.bf16.msrb.mxu0 %v4847_v23  ;;  %v4950_v16 = vld [vmem:[%s9556_s0 + $0x3e0] sm:$0xf] }
  0x73   :  { %1101 = vmatpush.bf16.msrb.mxu1 %v4851_v24  ;;  %v6575_v24 = vld [vmem:[%s9556_s0 + $0x414] sm:$0xf] }
  0x74   :  { %v4991_v35 = vor.u32 %v6575_v24, %v4988_v25  ;;  %v5228_v25 = vld [vmem:[%s9556_s0 + $0x598] sm:$0xf0] }
  0x75   :  { %1178 = vmatpush.bf16.msrb.mxu2 %v4891_v28  ;;  %v5124_v28 = vld [vmem:[%s9556_s0 + $0x4f8] sm:$0xf0] }
  0x76   :  { %1191 = vmatpush.bf16.msrb.mxu3 %v4895_v29  ;;  %1089 = vmatpush.bf16.msrb.mxu0 %v4839_v36  ;;  %v4942_v29 = vld [vmem:[%s9556_s0 + $0x3d0] sm:$0xf]  ;;  %v6604_v36 = vld [vmem:[%s9556_s0 + $0x4f4] sm:$0xf0]  ;;  %v5127_v39 = vor.u32 %v6603_v26, %v5124_v28  ;;  %v5051_v28 = vor.u32 %v6587_v18, %v5048_v19  ;;  %v5152_v18 = vld [vmem:[%s9556_s0 + $0x518] sm:$0xf0] }
  0x77   :  { %1102 = vmatpush.bf16.msrb.mxu1 %v4843_v40  ;;  %v4943_v40 = vor.u32 %v6568_v30, %v4942_v29  ;;  %v5046_v26 = vld [vmem:[%s9556_s0 + $0x470] sm:$0xf]  ;;  %v6596_v30 = vld [vmem:[%s9556_s0 + $0x4b4] sm:$0xf0] }
  0x78   :  { %v5090_v29 = vld [vmem:[%s9556_s0 + $0x4b0] sm:$0xf] }
  0x79   :  { %1179 = vmatpush.bf16.msrb.mxu2 %v4883_v43  ;;  %v6601_v43 = vld [vmem:[%s9556_s0 + $0x4e4] sm:$0xf]  ;;  %v5091_v41 = vor.u32 %v6596_v30, %v5090_v29  ;;  %v5194_v29 = vld [vmem:[%s9556_s0 + $0x550] sm:$0xf]  ;;  %v6616_v30 = vld [vmem:[%s9556_s0 + $0x554] sm:$0xf0] }
  0x7a   :  { %1192 = vmatpush.bf16.msrb.mxu3 %v4887_v44  ;;  %1090 = vmatpush.bf16.msrb.mxu0 %v4831_v51  ;;  %v4987_v44 = vor.u32 %v6576_v33, %v4986_v32  ;;  %v6594_v51 = vld [vmem:[%s9556_s0 + $0x4a4] sm:$0xf0]  ;;  %v5119_v55 = vor.u32 %v6601_v43, %v5116_v45  ;;  %v5095_v32 = vor.u32 %v6595_v21, %v5092_v22  ;;  %v6624_v33 = vld [vmem:[%s9556_s0 + $0x594] sm:$0xf0]  ;;  %v5038_v43 = vld [vmem:[%s9556_s0 + $0x460] sm:$0xf] }
  0x7b   :  { %1103 = vmatpush.bf16.msrb.mxu1 %v4835_v54  ;;  %v6602_v54 = vld [vmem:[%s9556_s0 + $0x4e4] sm:$0xf0]  ;;  %v5071_v59 = vor.u32 %v6594_v51, %v5070_v50  ;;  %v5218_v50 = vld [vmem:[%s9556_s0 + $0x580] sm:$0xf]  ;;  %v5196_v21 = vld [vmem:[%s9556_s0 + $0x558] sm:$0xf0] }
  0x7c   :  { %4920 = vmatmul.msk.bf16.vlgmr.msrb.gmra.mxu2 %vm91_vm0, %v7068_v14  ;;  %v5115_v62 = vor.u32 %v6602_v54, %v5114_v53  ;;  %v6622_v51 = vld [vmem:[%s9556_s0 + $0x584] sm:$0xf0]  ;;  %v6611_v54 = vld [vmem:[%s9556_s0 + $0x534] sm:$0xf] }
  0x7d   :  { %1401 = vmatpush.bf16.msra.mxu2 %v5019_v48  ;;  %4921 = vmatmul.msk.bf16.vlgmr.msrb.gmra.mxu3 %vm91_vm0, %v7068_v14  ;;  %v5123_v48 = vor.u32 %v6604_v36, %v5122_v34  ;;  %v6585_v34 = vld [vmem:[%s9556_s0 + $0x464] sm:$0xf]  ;;  %v6643_v22 = vld [vmem:[%s9556_s0 + $0x634] sm:$0xf] }
  0x7e   :  { %1414 = vmatpush.bf16.msra.mxu3 %v5023_v47  ;;  %4868 = vmatmul.msk.bf16.vlgmr.msrb.gmra.mxu0 %vm91_vm0, %v7068_v14  ;;  %v6566_v47 = vld [vmem:[%s9556_s0 + $0x3c4] sm:$0xf0] }
  0x7f   :  { %1327 = vmatpush.bf16.msra.mxu1 %v4971_v57  ;;  %1314 = vmatpush.bf16.msra.mxu0 %v4967_v63  ;;  %v4935_v56 = vor.u32 %v6566_v47, %v4934_v46  ;;  %v6591_v57 = vld [vmem:[%s9556_s0 + $0x494] sm:$0xf]  ;;  %v5062_v63 = vld [vmem:[%s9556_s0 + $0x490] sm:$0xf]  ;;  %v5174_v47 = vld [vmem:[%s9556_s0 + $0x540] sm:$0xf] }
  0x80   :  { %4869 = vmatmul.msk.bf16.vlgmr.msrb.gmra.mxu1 %vm91_vm0, %v7068_v14  ;;  %v6570_v14 = vld [vmem:[%s9556_s0 + $0x3e4] sm:$0xf0] }
  0x81   :  { %1402 = vmatpush.bf16.msra.mxu2 %v5011_v2  ;;  %v4951_v23 = vor.u32 %v6570_v14, %v4950_v16  ;;  %v5067_v2 = vor.u32 %v6591_v57, %v5064_v58  ;;  %v5098_v16 = vld [vmem:[%s9556_s0 + $0x4c0] sm:$0xf]  ;;  %v6598_v14 = vld [vmem:[%s9556_s0 + $0x4c4] sm:$0xf0]  ;;  %v6619_v57 = vld [vmem:[%s9556_s0 + $0x574] sm:$0xf] }
  0x82   :  { %1415 = vmatpush.bf16.msra.mxu3 %v5015_v60  ;;  %v6599_v60 = vld [vmem:[%s9556_s0 + $0x4d4] sm:$0xf]  ;;  %v5099_v24 = vor.u32 %v6598_v14, %v5098_v16  ;;  %v5212_v58 = vld [vmem:[%s9556_s0 + $0x578] sm:$0xf0]  ;;  %v6618_v16 = vld [vmem:[%s9556_s0 + $0x564] sm:$0xf0] }
  0x83   :  { %1328 = vmatpush.bf16.msra.mxu1 %v4963_v5  ;;  %1315 = vmatpush.bf16.msra.mxu0 %v4959_v11  ;;  %v5111_v5 = vor.u32 %v6599_v60, %v5108_v61  ;;  %v5107_v11 = vor.u32 %v6600_v4, %v5106_v3  ;;  %v5166_v60 = vld [vmem:[%s9556_s0 + $0x530] sm:$0xf]  ;;  %v6612_v61 = vld [vmem:[%s9556_s0 + $0x534] sm:$0xf0]  ;;  %v5215_v3 = vor.u32 %v6619_v57, %v5212_v58  ;;  %v6609_v4 = vld [vmem:[%s9556_s0 + $0x524] sm:$0xf] }
  0x84   :  { %v6631_v57 = vld [vmem:[%s9556_s0 + $0x5d4] sm:$0xf]  ;;  %v5272_v58 = vld [vmem:[%s9556_s0 + $0x5d8] sm:$0xf0] }
  0x85   :  { %1403 = vmatpush.bf16.msra.mxu2 %v5003_v15  ;;  %v5059_v15 = vor.u32 %v6589_v6, %v5056_v7  ;;  %v5167_v7 = vor.u32 %v6612_v61, %v5166_v60  ;;  %v6639_v60 = vld [vmem:[%s9556_s0 + $0x614] sm:$0xf]  ;;  %v5316_v61 = vld [vmem:[%s9556_s0 + $0x618] sm:$0xf0] }
  0x86   :  { %1416 = vmatpush.bf16.msra.mxu3 %v5007_v8  ;;  %v5063_v8 = vor.u32 %v6592_v0, %v5062_v63  ;;  %v5210_v63 = vld [vmem:[%s9556_s0 + $0x570] sm:$0xf]  ;;  %v6620_v0 = vld [vmem:[%s9556_s0 + $0x574] sm:$0xf0] }
  0x87   :  { %1329 = vmatpush.bf16.msra.mxu1 %v4955_v17  ;;  %1316 = vmatpush.bf16.msra.mxu0 %v4951_v23  ;;  %v5103_v17 = vor.u32 %v6597_v9, %v5100_v10  ;;  %v6623_v23 = vld [vmem:[%s9556_s0 + $0x594] sm:$0xf]  ;;  %v5204_v9 = vld [vmem:[%s9556_s0 + $0x568] sm:$0xf0]  ;;  %v5211_v10 = vor.u32 %v6620_v0, %v5210_v63  ;;  %v5270_v0 = vld [vmem:[%s9556_s0 + $0x5d0] sm:$0xf] }
  0x88   :  { %v5231_v36 = vor.u32 %v6623_v23, %v5228_v25  ;;  %v5150_v25 = vld [vmem:[%s9556_s0 + $0x510] sm:$0xf] }
  0x89   :  { %1404 = vmatpush.bf16.msra.mxu2 %v4995_v27  ;;  %v6588_v27 = vld [vmem:[%s9556_s0 + $0x474] sm:$0xf0] }
  0x8a   :  { %1417 = vmatpush.bf16.msra.mxu3 %v4999_v20  ;;  %v5055_v20 = vor.u32 %v6590_v13, %v5054_v12  ;;  %v5047_v37 = vor.u32 %v6588_v27, %v5046_v26  ;;  %v6610_v12 = vld [vmem:[%s9556_s0 + $0x524] sm:$0xf0]  ;;  %v6608_v26 = vld [vmem:[%s9556_s0 + $0x514] sm:$0xf0] }
  0x8b   :  { %1330 = vmatpush.bf16.msra.mxu1 %v4947_v31  ;;  %1317 = vmatpush.bf16.msra.mxu0 %v4943_v40  ;;  %v5226_v31 = vld [vmem:[%s9556_s0 + $0x590] sm:$0xf]  ;;  %v6621_v40 = vld [vmem:[%s9556_s0 + $0x584] sm:$0xf] }
  0x8c   :  { %v5227_v45 = vor.u32 %v6624_v33, %v5226_v31  ;;  %v5330_v31 = vld [vmem:[%s9556_s0 + $0x630] sm:$0xf] }
  0x8d   :  { %1405 = vmatpush.bf16.msra.mxu2 %v4987_v44  ;;  %v6586_v44 = vld [vmem:[%s9556_s0 + $0x464] sm:$0xf0] }
  0x8e   :  { %1418 = vmatpush.bf16.msra.mxu3 %v4991_v35  ;;  %v5040_v35 = vld [vmem:[%s9556_s0 + $0x468] sm:$0xf0]  ;;  %v5039_v53 = vor.u32 %v6586_v44, %v5038_v43  ;;  %v6641_v43 = vld [vmem:[%s9556_s0 + $0x624] sm:$0xf]  ;;  %v5195_v44 = vor.u32 %v6616_v30, %v5194_v29  ;;  %v6635_v29 = vld [vmem:[%s9556_s0 + $0x5f4] sm:$0xf] }
  0x8f   :  { %1331 = vmatpush.bf16.msra.mxu1 %v4939_v49  ;;  %1318 = vmatpush.bf16.msra.mxu0 %v4935_v56  ;;  %v5043_v46 = vor.u32 %v6585_v34, %v5040_v35  ;;  %v6644_v35 = vld [vmem:[%s9556_s0 + $0x634] sm:$0xf0]  ;;  %v5300_v30 = vld [vmem:[%s9556_s0 + $0x5f8] sm:$0xf0] }
  0x90   :  { %5024 = vmatmul.msk.bf16.vlgmr.msra.gmra.mxu2 %vm91_vm0, %v7853_v1 }
  0x91   :  { %1579 = vmatpush.bf16.msrb.mxu2 %v5123_v48  ;;  %5025 = vmatmul.msk.bf16.vlgmr.msra.gmra.mxu3 %vm91_vm0, %v7853_v1  ;;  %v6614_v48 = vld [vmem:[%s9556_s0 + $0x544] sm:$0xf0] }
  0x92   :  { %1592 = vmatpush.bf16.msrb.mxu3 %v5127_v39  ;;  %4973 = vmatmul.msk.bf16.vlgmr.msra.gmra.mxu1 %vm91_vm0, %v7853_v1  ;;  %v5176_v39 = vld [vmem:[%s9556_s0 + $0x548] sm:$0xf0]  ;;  %v5175_v56 = vor.u32 %v6614_v48, %v5174_v47  ;;  %v6606_v47 = vld [vmem:[%s9556_s0 + $0x504] sm:$0xf0]  ;;  %v5331_v48 = vor.u32 %v6644_v35, %v5330_v31  ;;  %v6663_v31 = vld [vmem:[%s9556_s0 + $0x6d4] sm:$0xf] }
  0x93   :  { %1503 = vmatpush.bf16.msrb.mxu1 %v5075_v52  ;;  %1490 = vmatpush.bf16.msrb.mxu0 %v5071_v59  ;;  %v5179_v49 = vor.u32 %v6613_v38, %v5176_v39  ;;  %v5223_v52 = vor.u32 %v6621_v40, %v5220_v42  ;;  %v5219_v59 = vor.u32 %v6622_v51, %v5218_v50  ;;  %v5280_v42 = vld [vmem:[%s9556_s0 + $0x5e8] sm:$0xf0]  ;;  %v5278_v50 = vld [vmem:[%s9556_s0 + $0x5e0] sm:$0xf]  ;;  %v6634_v51 = vld [vmem:[%s9556_s0 + $0x5e4] sm:$0xf0] }
  0x94   :  { %4972 = vmatmul.msk.bf16.vlgmr.msra.gmra.mxu0 %vm91_vm0, %v7853_v1  ;;  %v5151_v40 = vor.u32 %v6608_v26, %v5150_v25  ;;  %v5256_v25 = vld [vmem:[%s9556_s0 + $0x5b8] sm:$0xf0]  ;;  %v6628_v35 = vld [vmem:[%s9556_s0 + $0x5b4] sm:$0xf0] }
  0x95   :  { %1580 = vmatpush.bf16.msrb.mxu2 %v5115_v62  ;;  %v8001_v6 = vpop.f32.mrf.mxu1 }
  0x96   :  { %1593 = vmatpush.bf16.msrb.mxu3 %v5119_v55  ;;  %v5168_v55 = vld [vmem:[%s9556_s0 + $0x538] sm:$0xf0] }
  0x97   :  { %1504 = vmatpush.bf16.msrb.mxu1 %v5067_v2  ;;  %1491 = vmatpush.bf16.msrb.mxu0 %v5063_v8  ;;  %v5171_v62 = vor.u32 %v6611_v54, %v5168_v55  ;;  %v7991_v2 = vpop.f32.mrf.mxu0  ;;  %v6617_v8 = vld [vmem:[%s9556_s0 + $0x564] sm:$0xf]  ;;  %v6642_v54 = vld [vmem:[%s9556_s0 + $0x624] sm:$0xf0] }
  0x98   :  { %v5207_v14 = vor.u32 %v6617_v8, %v5204_v9  ;;  %v6640_v8 = vld [vmem:[%s9556_s0 + $0x614] sm:$0xf0]  ;;  %v5319_v9 = vor.u32 %v6639_v60, %v5316_v61 }
  0x99   :  { %1581 = vmatpush.bf16.msrb.mxu2 %v5107_v11  ;;  %v5158_v11 = vld [vmem:[%s9556_s0 + $0x520] sm:$0xf] }
  0x9a   :  { %1594 = vmatpush.bf16.msrb.mxu3 %v5111_v5  ;;  %v5160_v5 = vld [vmem:[%s9556_s0 + $0x528] sm:$0xf0]  ;;  %v5159_v19 = vor.u32 %v6610_v12, %v5158_v11 }
  0x9b   :  { %1505 = vmatpush.bf16.msrb.mxu1 %v5059_v15  ;;  %1492 = vmatpush.bf16.msrb.mxu0 %v5055_v20  ;;  %v5163_v13 = vor.u32 %v6609_v4, %v5160_v5  ;;  %v5202_v15 = vld [vmem:[%s9556_s0 + $0x560] sm:$0xf]  ;;  %v6615_v20 = vld [vmem:[%s9556_s0 + $0x554] sm:$0xf]  ;;  %v5275_v5 = vor.u32 %v6631_v57, %v5272_v58  ;;  %v5264_v11 = vld [vmem:[%s9556_s0 + $0x5c8] sm:$0xf0] }
  0x9c   :  { %v5203_v23 = vor.u32 %v6618_v16, %v5202_v15  ;;  %v5199_v34 = vor.u32 %v6615_v20, %v5196_v21  ;;  %v6637_v15 = vld [vmem:[%s9556_s0 + $0x604] sm:$0xf]  ;;  %v5308_v16 = vld [vmem:[%s9556_s0 + $0x608] sm:$0xf0]  ;;  %v5306_v21 = vld [vmem:[%s9556_s0 + $0x600] sm:$0xf] }
  0x9d   :  { %1582 = vmatpush.bf16.msrb.mxu2 %v5099_v24  ;;  %v5332_v24 = vld [vmem:[%s9556_s0 + $0x638] sm:$0xf0]  ;;  %v8049_v27 = vpop.f32.mrf.mxu2  ;;  %v119_v38 = vpop.f32.mrf.mxu1  ;;  %v5428_v57 = vld [vmem:[%s9556_s0 + $0x6c8] sm:$0xf0]  ;;  %v5246_v58 = vld [vmem:[%s9556_s0 + $0x5a0] sm:$0xf] }
  0x9e   :  { %1595 = vmatpush.bf16.msrb.mxu3 %v5103_v17  ;;  %v6607_v17 = vld [vmem:[%s9556_s0 + $0x514] sm:$0xf]  ;;  %v5335_v39 = vor.u32 %v6643_v22, %v5332_v24  ;;  %v6638_v22 = vld [vmem:[%s9556_s0 + $0x604] sm:$0xf0]  ;;  %v208_v26 = vmax.f32 %v7991_v2, %v8049_v27  ;;  %v5436_v2 = vld [vmem:[%s9556_s0 + $0x6d8] sm:$0xf0] }
  0x9f   :  { %1506 = vmatpush.bf16.msrb.mxu1 %v5051_v28  ;;  %1493 = vmatpush.bf16.msrb.mxu0 %v5047_v37  ;;  %v5155_v28 = vor.u32 %v6607_v17, %v5152_v18  ;;  %v106_v33 = vpop.f32.mrf.mxu0  ;;  %v5144_v37 = vld [vmem:[%s9556_s0 + $0x508] sm:$0xf0]  ;;  %v5262_v18 = vld [vmem:[%s9556_s0 + $0x5c0] sm:$0xf]  ;;  %v6627_v24 = vld [vmem:[%s9556_s0 + $0x5b4] sm:$0xf] }
  0xa0   :  { %v5254_v27 = vld [vmem:[%s9556_s0 + $0x5b0] sm:$0xf] }
  0xa1   :  { %1583 = vmatpush.bf16.msrb.mxu2 %v5091_v41  ;;  %v6633_v41 = vld [vmem:[%s9556_s0 + $0x5e4] sm:$0xf]  ;;  %v5434_v38 = vld [vmem:[%s9556_s0 + $0x6d0] sm:$0xf] }
  0xa2   :  { %1596 = vmatpush.bf16.msrb.mxu3 %v5095_v32  ;;  %v8060_v32 = vpop.f32.mrf.mxu3 }
  0xa3   :  { %1507 = vmatpush.bf16.msrb.mxu1 %v5043_v46  ;;  %1494 = vmatpush.bf16.msrb.mxu0 %v5039_v53  ;;  %v5142_v46 = vld [vmem:[%s9556_s0 + $0x500] sm:$0xf]  ;;  %v209_v33 = vmax.f32 %v8001_v6, %v8060_v32  ;;  %v5298_v6 = vld [vmem:[%s9556_s0 + $0x5f0] sm:$0xf]  ;;  %v6636_v32 = vld [vmem:[%s9556_s0 + $0x5f4] sm:$0xf0] }
  0xa4   :  { %5128 = vmatmul.msk.bf16.vlgmr.msrb.gmra.mxu2 %vm91_vm0, %v7853_v1  ;;  %v5322_v53 = vld [vmem:[%s9556_s0 + $0x620] sm:$0xf] }
  0xa5   :  { %1805 = vmatpush.bf16.msra.mxu2 %v5227_v45  ;;  %5129 = vmatmul.msk.bf16.vlgmr.msrb.gmra.mxu3 %vm91_vm0, %v7853_v1  ;;  %v5324_v45 = vld [vmem:[%s9556_s0 + $0x628] sm:$0xf0]  ;;  %v5323_v63 = vor.u32 %v6642_v54, %v5322_v53  ;;  %v6661_v53 = vld [vmem:[%s9556_s0 + $0x6c4] sm:$0xf] }
  0xa6   :  { %1818 = vmatpush.bf16.msra.mxu3 %v5231_v36  ;;  %5077 = vmatmul.msk.bf16.vlgmr.msrb.gmra.mxu1 %vm91_vm0, %v7853_v1  ;;  %v6605_v36 = vld [vmem:[%s9556_s0 + $0x504] sm:$0xf]  ;;  %v5327_v55 = vor.u32 %v6641_v43, %v5324_v45 }
  0xa7   :  { %1731 = vmatpush.bf16.msra.mxu1 %v5179_v49  ;;  %1718 = vmatpush.bf16.msra.mxu0 %v5175_v56  ;;  %v5147_v49 = vor.u32 %v6605_v36, %v5144_v37  ;;  %v5143_v56 = vor.u32 %v6606_v47, %v5142_v46  ;;  %v5259_v37 = vor.u32 %v6627_v24, %v5256_v25  ;;  %v6625_v43 = vld [vmem:[%s9556_s0 + $0x5a4] sm:$0xf]  ;;  %v396_v47 = vlaneseq  ;;  %v6660_v24 = vld [vmem:[%s9556_s0 + $0x6b4] sm:$0xf0] }
  0xa8   :  { %5076 = vmatmul.msk.bf16.vlgmr.msrb.gmra.mxu0 %vm91_vm0, %v7853_v1  ;;  %v280_v12 = vpop.f32.mrf.mxu0  ;;  %v6649_v25 = vld [vmem:[%s9556_s0 + $0x664] sm:$0xf] }
  0xa9   :  { %1806 = vmatpush.bf16.msra.mxu2 %v5219_v59  ;;  %v5279_v59 = vor.u32 %v6634_v51, %v5278_v50  ;;  %v297_v36 = vmax.f32 %v208_v26, %v280_v12  ;;  %v5255_v50 = vor.u32 %v6628_v35, %v5254_v27  ;;  %v6653_v51 = vld [vmem:[%s9556_s0 + $0x684] sm:$0xf]  ;;  %vm8238_vm2 = vcmp.lt.s32.totalorder %v396_v47, 196  ;;  %v5376_v12 = vld [vmem:[%s9556_s0 + $0x678] sm:$0xf0] }
  0xaa   :  { %1819 = vmatpush.bf16.msra.mxu3 %v5223_v52  ;;  %v5283_v52 = vor.u32 %v6633_v41, %v5280_v42  ;;  %v206_v4 = vpop.f32.mrf.mxu3  ;;  %v5303_v41 = vor.u32 %v6635_v29, %v5300_v30  ;;  %v6664_v42 = vld [vmem:[%s9556_s0 + $0x6d4] sm:$0xf0]  ;;  %v5368_v26 = vld [vmem:[%s9556_s0 + $0x668] sm:$0xf0]  ;;  %v6657_v30 = vld [vmem:[%s9556_s0 + $0x6a4] sm:$0xf] }
  0xab   :  { %1732 = vmatpush.bf16.msra.mxu1 %v5171_v62  ;;  %1719 = vmatpush.bf16.msra.mxu0 %v5167_v7  ;;  %v193_v62 = vpop.f32.mrf.mxu2  ;;  %v5314_v7 = vld [vmem:[%s9556_s0 + $0x610] sm:$0xf]  ;;  %v5435_v61 = vor.u32 %v6664_v42, %v5434_v38  ;;  %v5410_v35 = vld [vmem:[%s9556_s0 + $0x6a0] sm:$0xf]  ;;  %v5360_v38 = vld [vmem:[%s9556_s0 + $0x658] sm:$0xf0] }
  0xac   :  { %v5315_v17 = vor.u32 %v6640_v8, %v5314_v7  ;;  %v6662_v7 = vld [vmem:[%s9556_s0 + $0x6c4] sm:$0xf0]  ;;  %v5358_v47 = vld [vmem:[%s9556_s0 + $0x650] sm:$0xf] }
  0xad   :  { %1807 = vmatpush.bf16.msra.mxu2 %v5211_v10  ;;  %v6629_v10 = vld [vmem:[%s9556_s0 + $0x5c4] sm:$0xf]  ;;  %v6843_v8 = vld [vmem:[%s9561_s4 + $0x30] sm:$0xff] }
  0xae   :  { %1820 = vmatpush.bf16.msra.mxu3 %v5215_v3  ;;  %v6632_v3 = vld [vmem:[%s9556_s0 + $0x5d4] sm:$0xf0]  ;;  %v5267_v20 = vor.u32 %v6629_v10, %v5264_v11  ;;  %v6651_v11 = vld [vmem:[%s9556_s0 + $0x674] sm:$0xf] }
  0xaf   :  { %1733 = vmatpush.bf16.msra.mxu1 %v5163_v13  ;;  %1720 = vmatpush.bf16.msra.mxu0 %v5159_v19  ;;  %v5271_v13 = vor.u32 %v6632_v3, %v5270_v0  ;;  %v6630_v19 = vld [vmem:[%s9556_s0 + $0x5c4] sm:$0xf0] }
  0xb0   :  { %v6654_v0 = vld [vmem:[%s9556_s0 + $0x684] sm:$0xf0] }
  0xb1   :  { %1808 = vmatpush.bf16.msra.mxu2 %v5203_v23  ;;  %v5311_v23 = vor.u32 %v6637_v15, %v5308_v16  ;;  %v6659_v16 = vld [vmem:[%s9556_s0 + $0x6b4] sm:$0xf] }
  0xb2   :  { %1821 = vmatpush.bf16.msra.mxu3 %v5207_v14  ;;  %v293_v14 = vpop.f32.mrf.mxu1  ;;  %v382_v46 = vpop.f32.mrf.mxu3 }
  0xb3   :  { %1734 = vmatpush.bf16.msra.mxu1 %v5155_v28  ;;  %1721 = vmatpush.bf16.msra.mxu0 %v5151_v40  ;;  %v5263_v28 = vor.u32 %v6630_v19, %v5262_v18  ;;  %v369_v40 = vpop.f32.mrf.mxu2  ;;  %v5374_v18 = vld [vmem:[%s9556_s0 + $0x670] sm:$0xf]  ;;  %v6652_v19 = vld [vmem:[%s9556_s0 + $0x674] sm:$0xf0] }
  0xb4   :  { %v386_v45 = vmax.f32 %v297_v36, %v369_v40  ;;  %v6658_v36 = vld [vmem:[%s9556_s0 + $0x6a4] sm:$0xf0]  ;;  %v5404_v40 = vld [vmem:[%s9556_s0 + $0x698] sm:$0xf0] }
  0xb5   :  { %1809 = vmatpush.bf16.msra.mxu2 %v5195_v44  ;;  %v5248_v44 = vld [vmem:[%s9556_s0 + $0x5a8] sm:$0xf0] }
  0xb6   :  { %1822 = vmatpush.bf16.msra.mxu3 %v5199_v34  ;;  %v5307_v34 = vor.u32 %v6638_v22, %v5306_v21  ;;  %v8221_v60 = vmax.f32 %v386_v45, 0.0  ;;  %v5251_v62 = vor.u32 %v6625_v43, %v5248_v44  ;;  %v6683_v44 = vld [vmem:[%s9556_s0 + $0x774] sm:$0xf]  ;;  %v5540_v45 = vld [vmem:[%s9556_s0 + $0x778] sm:$0xf0] }
  0xb7   :  { %1735 = vmatpush.bf16.msra.mxu1 %v5147_v49  ;;  %1722 = vmatpush.bf16.msra.mxu0 %v5143_v56  ;;  %v5439_v49 = vor.u32 %v6663_v31, %v5436_v2  ;;  %v5299_v56 = vor.u32 %v6636_v32, %v5298_v6  ;;  %v5375_v31 = vor.u32 %v6652_v19, %v5374_v18  ;;  %v6650_v2 = vld [vmem:[%s9556_s0 + $0x664] sm:$0xf0]  ;;  %v5530_v18 = vld [vmem:[%s9556_s0 + $0x760] sm:$0xf] }
  0xb8   :  { %5232 = vmatmul.msk.bf16.vlgmr.msra.gmra.mxu2 %vm91_vm0, %v7853_v1  ;;  %402 = vst [vmem:[#allocation1] sm:$0xff] %v8221_v60  ;;  %v5371_v32 = vor.u32 %v6649_v25, %v5368_v26  ;;  %v6682_v19 = vld [vmem:[%s9556_s0 + $0x764] sm:$0xf0]  ;;  %v6679_v25 = vld [vmem:[%s9556_s0 + $0x754] sm:$0xf] }
  0xb9   :  { %1983 = vmatpush.bf16.msrb.mxu2 %v5331_v48  ;;  %5233 = vmatmul.msk.bf16.vlgmr.msra.gmra.mxu3 %vm91_vm0, %v7853_v1  ;;  %v282_v48 = vpop.f32.mrf.mxu0 }
  0xba   :  { %1996 = vmatpush.bf16.msrb.mxu3 %v5335_v39  ;;  %5181 = vmatmul.msk.bf16.vlgmr.msra.gmra.mxu1 %vm91_vm0, %v7853_v1  ;;  %v298_v39 = vmax.f32 %v209_v33, %v293_v14  ;;  %v5420_v14 = vld [vmem:[%s9556_s0 + $0x6b8] sm:$0xf0]  ;;  %v5412_v33 = vld [vmem:[%s9556_s0 + $0x6a8] sm:$0xf0]  ;;  %v6648_v48 = vld [vmem:[%s9556_s0 + $0x654] sm:$0xf0] }
  0xbb   :  { %1907 = vmatpush.bf16.msrb.mxu1 %v5283_v52  ;;  %1894 = vmatpush.bf16.msrb.mxu0 %v5279_v59  ;;  %v5384_v52 = vld [vmem:[%s9556_s0 + $0x688] sm:$0xf0]  ;;  %v6626_v59 = vld [vmem:[%s9556_s0 + $0x5a4] sm:$0xf0]  ;;  %v371_v22 = vpop.f32.mrf.mxu2  ;;  %v5423_v29 = vor.u32 %v6659_v16, %v5420_v14  ;;  %v5415_v43 = vor.u32 %v6657_v30, %v5412_v33  ;;  %v5531_v30 = vor.u32 %v6682_v19, %v5530_v18  ;;  %v5522_v33 = vld [vmem:[%s9556_s0 + $0x750] sm:$0xf] }
  0xbc   :  { %5180 = vmatmul.msk.bf16.vlgmr.msra.gmra.mxu0 %vm91_vm0, %v7853_v1  ;;  %v387_v54 = vmax.f32 %v298_v39, %v382_v46  ;;  %v5387_v4 = vor.u32 %v6653_v51, %v5384_v52  ;;  %v5247_v10 = vor.u32 %v6626_v59, %v5246_v58  ;;  %v6655_v39 = vld [vmem:[%s9556_s0 + $0x694] sm:$0xf]  ;;  %v6656_v51 = vld [vmem:[%s9556_s0 + $0x694] sm:$0xf0]  ;;  %v5352_v58 = vld [vmem:[%s9556_s0 + $0x648] sm:$0xf0] }
  0xbd   :  { %1984 = vmatpush.bf16.msrb.mxu2 %v5323_v63  ;;  %v5382_v63 = vld [vmem:[%s9556_s0 + $0x680] sm:$0xf]  ;;  %v6674_v16 = vld [vmem:[%s9556_s0 + $0x724] sm:$0xf0]  ;;  %v6701_v19 = vld [vmem:[%s9556_s0 + $0x804] sm:$0xf] }
  0xbe   :  { %1997 = vmatpush.bf16.msrb.mxu3 %v5327_v55  ;;  %v295_v55 = vpop.f32.mrf.mxu1  ;;  %v8229_v3 = vmax.f32 %v387_v54, 0.0  ;;  %v5383_v15 = vor.u32 %v6654_v0, %v5382_v63  ;;  %v6673_v63 = vld [vmem:[%s9556_s0 + $0x724] sm:$0xf]  ;;  %v5488_v0 = vld [vmem:[%s9556_s0 + $0x728] sm:$0xf0] }
  0xbf   :  { %1908 = vmatpush.bf16.msrb.mxu1 %v5275_v5  ;;  %1895 = vmatpush.bf16.msrb.mxu0 %v5271_v13  ;;  %v5426_v5 = vld [vmem:[%s9556_s0 + $0x6c0] sm:$0xf]  ;;  %v5407_v55 = vor.u32 %v6655_v39, %v5404_v40  ;;  %v5516_v40 = vld [vmem:[%s9556_s0 + $0x748] sm:$0xf0] }
  0xc0   :  { %v392_v13 = vrot.slane %v8229_v3, 7  ;;  %403 = vst [vmem:[#allocation1 + $0x9] sm:$0xff] %v8229_v3 }
  0xc1   :  { %1985 = vmatpush.bf16.msrb.mxu2 %v5315_v17  ;;  %v5427_v17 = vor.u32 %v6662_v7, %v5426_v5  ;;  %v8305_v6 = vpop.f32.mrf.mxu0  ;;  %v5532_v7 = vld [vmem:[%s9556_s0 + $0x768] sm:$0xf0] }
  0xc2   :  { %1998 = vmatpush.bf16.msrb.mxu3 %v5319_v9  ;;  %v5431_v9 = vor.u32 %v6661_v53, %v5428_v57  ;;  %v394_v21 = vsel %vm393_vm1, %v8221_v60, %v392_v13  ;;  %v5538_v53 = vld [vmem:[%s9556_s0 + $0x770] sm:$0xf]  ;;  %v6645_v57 = vld [vmem:[%s9556_s0 + $0x644] sm:$0xf] }
  0xc3   :  { %1909 = vmatpush.bf16.msrb.mxu1 %v5267_v20  ;;  %1896 = vmatpush.bf16.msrb.mxu0 %v5263_v28  ;;  %v5418_v20 = vld [vmem:[%s9556_s0 + $0x6b0] sm:$0xf]  ;;  %400 = vst.msk [vmem:[#allocation2] ss:$8 sm:$0x3] %vm8238_vm2, %v394_v21  ;;  %v384_v28 = vpop.f32.mrf.mxu3  ;;  %v8345_v54 = vpop.f32.mrf.mxu2  ;;  %v5355_v13 = vor.u32 %v6645_v57, %v5352_v58 }
  0xc4   :  { %v5419_v27 = vor.u32 %v6660_v24, %v5418_v20  ;;  %v6671_v20 = vld [vmem:[%s9556_s0 + $0x714] sm:$0xf]  ;;  %v5480_v24 = vld [vmem:[%s9556_s0 + $0x718] sm:$0xf0]  ;;  %v5462_v58 = vld [vmem:[%s9556_s0 + $0x6f0] sm:$0xf] }
  0xc5   :  { %1986 = vmatpush.bf16.msrb.mxu2 %v5307_v34  ;;  %v5366_v34 = vld [vmem:[%s9556_s0 + $0x660] sm:$0xf]  ;;  %v5524_v28 = vld [vmem:[%s9556_s0 + $0x758] sm:$0xf0] }
  0xc6   :  { %1999 = vmatpush.bf16.msrb.mxu3 %v5311_v23  ;;  %v5379_v23 = vor.u32 %v6651_v11, %v5376_v12  ;;  %v8318_v42 = vpop.f32.mrf.mxu1  ;;  %v5367_v46 = vor.u32 %v6650_v2, %v5366_v34  ;;  %v5483_v2 = vor.u32 %v6671_v20, %v5480_v24  ;;  %v5644_v57 = vld [vmem:[%s9556_s0 + $0x818] sm:$0xf0]  ;;  %v5636_v20 = vld [vmem:[%s9556_s0 + $0x808] sm:$0xf0] }
  0xc7   :  { %1910 = vmatpush.bf16.msrb.mxu1 %v5259_v37  ;;  %1897 = vmatpush.bf16.msrb.mxu0 %v5255_v50  ;;  %v6647_v37 = vld [vmem:[%s9556_s0 + $0x654] sm:$0xf]  ;;  %v5402_v50 = vld [vmem:[%s9556_s0 + $0x690] sm:$0xf] }
  0xc8   :  { %v5363_v52 = vor.u32 %v6647_v37, %v5360_v38  ;;  %v5403_v5 = vor.u32 %v6656_v51, %v5402_v50  ;;  %v6669_v37 = vld [vmem:[%s9556_s0 + $0x704] sm:$0xf]  ;;  %v5464_v51 = vld [vmem:[%s9556_s0 + $0x6f8] sm:$0xf0] }
  0xc9   :  { %1987 = vmatpush.bf16.msrb.mxu2 %v5299_v56  ;;  %v6684_v56 = vld [vmem:[%s9556_s0 + $0x774] sm:$0xf0]  ;;  %v514_v11 = vpop.f32.mrf.mxu0  ;;  %v6677_v38 = vld [vmem:[%s9556_s0 + $0x744] sm:$0xf] }
  0xca   :  { %2000 = vmatpush.bf16.msrb.mxu3 %v5303_v41  ;;  %v405_v41 = vld [vmem:[#allocation1 + $0x1] ss:$9 sm:$0xff]  ;;  %v5539_v12 = vor.u32 %v6684_v56, %v5538_v53  ;;  %v616_v11 = vmax.f32 %v8305_v6, %v8345_v54 }
  0xcb   :  { %1911 = vmatpush.bf16.msrb.mxu1 %v5251_v62  ;;  %1898 = vmatpush.bf16.msrb.mxu0 %v5247_v10  ;;  %410 = vst [vmem:[#allocation1] sm:$0xff] %v8221_v60  ;;  %v8356_v59 = vpop.f32.mrf.mxu3  ;;  %v5359_v62 = vor.u32 %v6648_v48, %v5358_v47  ;;  %v6646_v10 = vld [vmem:[%s9556_s0 + $0x644] sm:$0xf0]  ;;  %v601_v34 = vpop.f32.mrf.mxu2  ;;  %v6667_v48 = vld [vmem:[%s9556_s0 + $0x6f4] sm:$0xf] }
  0xcc   :  { %5336 = vmatmul.msk.bf16.vlgmr.msrb.gmra.mxu2 %vm91_vm0, %v7853_v1  ;;  %411 = vst [vmem:[#allocation1 + $0x9] sm:$0xff] %v8229_v3  ;;  %v6678_v47 = vld [vmem:[%s9556_s0 + $0x744] sm:$0xf0]  ;;  %v5508_v53 = vld [vmem:[%s9556_s0 + $0x738] sm:$0xf0] }
  0xcd   :  { %2209 = vmatpush.bf16.msra.mxu2 %v5435_v61  ;;  %5337 = vmatmul.msk.bf16.vlgmr.msrb.gmra.mxu3 %vm91_vm0, %v7853_v1  ;;  %408 = vst.msk [vmem:[#allocation2 + $0x10] ss:$8 sm:$0x3] %vm8238_vm2, %v405_v41  ;;  %v5543_v61 = vor.u32 %v6683_v44, %v5540_v45  ;;  %v5470_v41 = vld [vmem:[%s9556_s0 + $0x700] sm:$0xf] }
  0xce   :  { %2222 = vmatpush.bf16.msra.mxu3 %v5439_v49  ;;  %5285 = vmatmul.msk.bf16.vlgmr.msrb.gmra.mxu1 %vm91_vm0, %v7853_v1  ;;  %v5411_v49 = vor.u32 %v6658_v36, %v5410_v35  ;;  %v527_v14 = vpop.f32.mrf.mxu1  ;;  %v5527_v36 = vor.u32 %v6679_v25, %v5524_v28  ;;  %v6703_v56 = vld [vmem:[%s9556_s0 + $0x814] sm:$0xf]  ;;  %v5592_v6 = vld [vmem:[%s9556_s0 + $0x7c8] sm:$0xf0]  ;;  %v6666_v25 = vld [vmem:[%s9556_s0 + $0x6e4] sm:$0xf0] }
  0xcf   :  { %2135 = vmatpush.bf16.msra.mxu1 %v5387_v4  ;;  %2122 = vmatpush.bf16.msra.mxu0 %v5383_v15  ;;  %v6681_v4 = vld [vmem:[%s9556_s0 + $0x764] sm:$0xf]  ;;  %v5486_v15 = vld [vmem:[%s9556_s0 + $0x720] sm:$0xf]  ;;  %v6694_v28 = vld [vmem:[%s9556_s0 + $0x7c4] sm:$0xf0] }
  0xd0   :  { %5284 = vmatmul.msk.bf16.vlgmr.msrb.gmra.mxu0 %vm91_vm0, %v7853_v1  ;;  %v5535_v22 = vor.u32 %v6681_v4, %v5532_v7  ;;  %v5487_v26 = vor.u32 %v6674_v16, %v5486_v15  ;;  %v6676_v4 = vld [vmem:[%s9556_s0 + $0x734] sm:$0xf0]  ;;  %v5642_v7 = vld [vmem:[%s9556_s0 + $0x810] sm:$0xf]  ;;  %v5456_v15 = vld [vmem:[%s9556_s0 + $0x6e8] sm:$0xf0] }
  0xd1   :  { %2210 = vmatpush.bf16.msra.mxu2 %v5427_v17  ;;  %v5491_v17 = vor.u32 %v6673_v63, %v5488_v0  ;;  %v688_v44 = vpop.f32.mrf.mxu0  ;;  %v5506_v0 = vld [vmem:[%s9556_s0 + $0x730] sm:$0xf]  ;;  %v6693_v16 = vld [vmem:[%s9556_s0 + $0x7c4] sm:$0xf] }
  0xd2   :  { %2223 = vmatpush.bf16.msra.mxu3 %v5431_v9  ;;  %v5350_v9 = vld [vmem:[%s9556_s0 + $0x640] sm:$0xf]  ;;  %v5507_v24 = vor.u32 %v6676_v4, %v5506_v0  ;;  %v6690_v0 = vld [vmem:[%s9556_s0 + $0x7a4] sm:$0xf0] }
  0xd3   :  { %2136 = vmatpush.bf16.msra.mxu1 %v5379_v23  ;;  %2123 = vmatpush.bf16.msra.mxu0 %v5375_v31  ;;  %v413_v21 = vld [vmem:[#allocation1 + $0x2] ss:$9 sm:$0xff]  ;;  %v5351_v23 = vor.u32 %v6646_v10, %v5350_v9  ;;  %v614_v35 = vpop.f32.mrf.mxu3 }
  0xd4   :  { %418 = vst [vmem:[#allocation1] sm:$0xff] %v8221_v60  ;;  %v6672_v31 = vld [vmem:[%s9556_s0 + $0x714] sm:$0xf0]  ;;  %v6665_v10 = vld [vmem:[%s9556_s0 + $0x6e4] sm:$0xf] }
  0xd5   :  { %2211 = vmatpush.bf16.msra.mxu2 %v5419_v27  ;;  %419 = vst [vmem:[#allocation1 + $0x9] sm:$0xff] %v8229_v3  ;;  %v6680_v27 = vld [vmem:[%s9556_s0 + $0x754] sm:$0xf0]  ;;  %v5459_v34 = vor.u32 %v6665_v10, %v5456_v15  ;;  %v6691_v35 = vld [vmem:[%s9556_s0 + $0x7b4] sm:$0xf] }
  0xd6   :  { %2224 = vmatpush.bf16.msra.mxu3 %v5423_v29  ;;  %v5478_v29 = vld [vmem:[%s9556_s0 + $0x710] sm:$0xf]  ;;  %416 = vst.msk [vmem:[#allocation2 + $0x20] ss:$8 sm:$0x3] %vm8238_vm2, %v413_v21  ;;  %v5523_v45 = vor.u32 %v6680_v27, %v5522_v33 }
  0xd7   :  { %2137 = vmatpush.bf16.msra.mxu1 %v5371_v32  ;;  %2124 = vmatpush.bf16.msra.mxu0 %v5367_v46  ;;  %v5472_v32 = vld [vmem:[%s9556_s0 + $0x708] sm:$0xf0]  ;;  %v5479_v39 = vor.u32 %v6672_v31, %v5478_v29  ;;  %v5514_v46 = vld [vmem:[%s9556_s0 + $0x740] sm:$0xf]  ;;  %v6704_v9 = vld [vmem:[%s9556_s0 + $0x814] sm:$0xf0] }
  0xd8   :  { %v5475_v50 = vor.u32 %v6669_v37, %v5472_v32  ;;  %v5454_v21 = vld [vmem:[%s9556_s0 + $0x6e0] sm:$0xf]  ;;  %v5643_v33 = vor.u32 %v6704_v9, %v5642_v7  ;;  %v6702_v27 = vld [vmem:[%s9556_s0 + $0x804] sm:$0xf0]  ;;  %v5584_v37 = vld [vmem:[%s9556_s0 + $0x7b8] sm:$0xf0] }
  0xd9   :  { %2212 = vmatpush.bf16.msra.mxu2 %v5411_v49  ;;  %v701_v49 = vpop.f32.mrf.mxu1  ;;  %v6699_v32 = vld [vmem:[%s9556_s0 + $0x7f4] sm:$0xf]  ;;  %v8590_v4 = vld [vmem:[%s9557_s1] sm:$0xf] }
  0xda   :  { %2225 = vmatpush.bf16.msra.mxu3 %v5415_v43  ;;  %v6670_v43 = vld [vmem:[%s9556_s0 + $0x704] sm:$0xf0]  ;;  %v5618_v7 = vld [vmem:[%s9556_s0 + $0x7e0] sm:$0xf]  ;;  %v6687_v9 = vld [vmem:[%s9556_s0 + $0x794] sm:$0xf] }
  0xdb   :  { %2138 = vmatpush.bf16.msra.mxu1 %v5363_v52  ;;  %2125 = vmatpush.bf16.msra.mxu0 %v5359_v62  ;;  %v6675_v52 = vld [vmem:[%s9556_s0 + $0x734] sm:$0xf]  ;;  %v5471_v63 = vor.u32 %v6670_v43, %v5470_v41  ;;  %v5455_v41 = vor.u32 %v6666_v25, %v5454_v21  ;;  %v5582_v43 = vld [vmem:[%s9556_s0 + $0x7b0] sm:$0xf]  ;;  %v6724_v21 = vld [vmem:[%s9556_s0 + $0x8b4] sm:$0xf0] }
  0xdc   :  { %v421_v62 = vld [vmem:[#allocation1 + $0x3] ss:$9 sm:$0xff]  ;;  %v5511_v14 = vor.u32 %v6675_v52, %v5508_v53 }
  0xdd   :  { %2213 = vmatpush.bf16.msra.mxu2 %v5403_v5  ;;  %426 = vst [vmem:[#allocation1] sm:$0xff] %v8221_v60  ;;  %v5515_v5 = vor.u32 %v6678_v47, %v5514_v46  ;;  %v5626_v47 = vld [vmem:[%s9556_s0 + $0x7f0] sm:$0xf]  ;;  %v6689_v52 = vld [vmem:[%s9556_s0 + $0x7a4] sm:$0xf] }
  0xde   :  { %2226 = vmatpush.bf16.msra.mxu3 %v5407_v55  ;;  %v5519_v55 = vor.u32 %v6677_v38, %v5516_v40  ;;  %427 = vst [vmem:[#allocation1 + $0x9] sm:$0xff] %v8229_v3  ;;  %v5628_v38 = vld [vmem:[%s9556_s0 + $0x7f8] sm:$0xf0]  ;;  %v5639_v40 = vor.u32 %v6701_v19, %v5636_v20  ;;  %v5576_v53 = vld [vmem:[%s9556_s0 + $0x7a8] sm:$0xf0] }
  0xdf   :  { %2139 = vmatpush.bf16.msra.mxu1 %v5355_v13  ;;  %2126 = vmatpush.bf16.msra.mxu0 %v5351_v23  ;;  %v5467_v13 = vor.u32 %v6667_v48, %v5464_v51  ;;  %424 = vst.msk [vmem:[#allocation2 + $0x30] ss:$8 sm:$0x3] %vm8238_vm2, %v421_v62  ;;  %v690_v23 = vpop.f32.mrf.mxu0  ;;  %v6700_v48 = vld [vmem:[%s9556_s0 + $0x7f4] sm:$0xf0]  ;;  %v5579_v10 = vor.u32 %v6689_v52, %v5576_v53 }
  0xe0   :  { %5440 = vmatmul.msk.bf16.vlgmr.msra.gmra.mxu2 %vm91_vm0, %v7853_v1  ;;  %v5746_v20 = vld [vmem:[%s9556_s0 + $0x8b0] sm:$0xf]  ;;  %v6685_v25 = vld [vmem:[%s9556_s0 + $0x784] sm:$0xf]  ;;  %v6719_v52 = vld [vmem:[%s9556_s0 + $0x894] sm:$0xf] }
  0xe1   :  { %2387 = vmatpush.bf16.msrb.mxu2 %v5539_v12  ;;  %5441 = vmatmul.msk.bf16.vlgmr.msra.gmra.mxu3 %vm91_vm0, %v7853_v1  ;;  %v617_v12 = vmax.f32 %v8318_v42, %v8356_v59  ;;  %v705_v42 = vmax.f32 %v616_v11, %v688_v44  ;;  %v777_v59 = vpop.f32.mrf.mxu2  ;;  %v703_v31 = vpop.f32.mrf.mxu1  ;;  %v6692_v44 = vld [vmem:[%s9556_s0 + $0x7b4] sm:$0xf0]  ;;  %v5568_v11 = vld [vmem:[%s9556_s0 + $0x798] sm:$0xf0] }
  0xe2   :  { %2400 = vmatpush.bf16.msrb.mxu3 %v5543_v61  ;;  %5389 = vmatmul.msk.bf16.vlgmr.msra.gmra.mxu1 %vm91_vm0, %v7853_v1  ;;  %v6668_v61 = vld [vmem:[%s9556_s0 + $0x6f4] sm:$0xf0]  ;;  %v5732_v53 = vld [vmem:[%s9556_s0 + $0x898] sm:$0xf0] }
  0xe3   :  { %2311 = vmatpush.bf16.msrb.mxu1 %v5491_v17  ;;  %2298 = vmatpush.bf16.msrb.mxu0 %v5487_v26  ;;  %v706_v54 = vmax.f32 %v617_v12, %v701_v49  ;;  %v5647_v17 = vor.u32 %v6703_v56, %v5644_v57  ;;  %v5463_v18 = vor.u32 %v6668_v61, %v5462_v58  ;;  %v5590_v26 = vld [vmem:[%s9556_s0 + $0x7c0] sm:$0xf]  ;;  %v5620_v56 = vld [vmem:[%s9556_s0 + $0x7e8] sm:$0xf0]  ;;  %v6695_v12 = vld [vmem:[%s9556_s0 + $0x7d4] sm:$0xf] }
  0xe4   :  { %5388 = vmatmul.msk.bf16.vlgmr.msra.gmra.mxu0 %vm91_vm0, %v7853_v1  ;;  %v794_v29 = vmax.f32 %v705_v42, %v777_v59  ;;  %v5591_v46 = vor.u32 %v6694_v28, %v5590_v26  ;;  %v5631_v58 = vor.u32 %v6699_v32, %v5628_v38  ;;  %v5574_v61 = vld [vmem:[%s9556_s0 + $0x7a0] sm:$0xf]  ;;  %v5610_v59 = vld [vmem:[%s9556_s0 + $0x7d0] sm:$0xf]  ;;  %v5560_v28 = vld [vmem:[%s9556_s0 + $0x788] sm:$0xf0]  ;;  %v5747_v38 = vor.u32 %v6724_v21, %v5746_v20 }
  0xe5   :  { %2388 = vmatpush.bf16.msrb.mxu2 %v5531_v30  ;;  %v5575_v42 = vor.u32 %v6690_v0, %v5574_v61  ;;  %v5680_v0 = vld [vmem:[%s9556_s0 + $0x848] sm:$0xf0]  ;;  %v6743_v21 = vld [vmem:[%s9556_s0 + $0x954] sm:$0xf] }
  0xe6   :  { %2401 = vmatpush.bf16.msrb.mxu3 %v5535_v22  ;;  %v790_v22 = vpop.f32.mrf.mxu3  ;;  %v8555_v49 = vmax.f32 %v794_v29, 0.0  ;;  %v6713_v29 = vld [vmem:[%s9556_s0 + $0x864] sm:$0xf] }
  0xe7   :  { %2312 = vmatpush.bf16.msrb.mxu1 %v5483_v2  ;;  %2299 = vmatpush.bf16.msrb.mxu0 %v5479_v39  ;;  %v795_v30 = vmax.f32 %v706_v54, %v790_v22  ;;  %v5634_v2 = vld [vmem:[%s9556_s0 + $0x800] sm:$0xf]  ;;  %v6688_v54 = vld [vmem:[%s9556_s0 + $0x794] sm:$0xf0] }
  0xe8   :  { %v5635_v51 = vor.u32 %v6702_v27, %v5634_v2  ;;  %v8640_v22 = vpop.f32.mrf.mxu0  ;;  %v6721_v2 = vld [vmem:[%s9556_s0 + $0x8a4] sm:$0xf] }
  0xe9   :  { %2389 = vmatpush.bf16.msrb.mxu2 %v5523_v45  ;;  %v8540_v39 = vmax.f32 %v795_v30, 0.0  ;;  %v429_v45 = vld [vmem:[#allocation1 + $0x4] ss:$9 sm:$0xff]  ;;  %v8642_v23 = vpop.f32.mrf.mxu1 }
  0xea   :  { %2402 = vmatpush.bf16.msrb.mxu3 %v5527_v36  ;;  %v5595_v36 = vor.u32 %v6693_v16, %v5592_v6  ;;  %434 = vst [vmem:[#allocation1] sm:$0xff] %v8221_v60  ;;  %v5587_v60 = vor.u32 %v6691_v35, %v5584_v37  ;;  %v6723_v16 = vld [vmem:[%s9556_s0 + $0x8b4] sm:$0xf]  ;;  %v5566_v6 = vld [vmem:[%s9556_s0 + $0x790] sm:$0xf] }
  0xeb   :  { %2313 = vmatpush.bf16.msrb.mxu1 %v5475_v50  ;;  %2300 = vmatpush.bf16.msrb.mxu0 %v5471_v63  ;;  %v800_v50 = vrot.slane %v8540_v39, 7  ;;  %435 = vst [vmem:[#allocation1 + $0x9] sm:$0xff] %v8229_v3  ;;  %v779_v3 = vpop.f32.mrf.mxu2  ;;  %v5583_v63 = vor.u32 %v6692_v44, %v5582_v43  ;;  %v5740_v35 = vld [vmem:[%s9556_s0 + $0x8a8] sm:$0xf0]  ;;  %v6686_v37 = vld [vmem:[%s9556_s0 + $0x784] sm:$0xf0] }
  0xec   :  { %432 = vst.msk [vmem:[#allocation2 + $0x40] ss:$8 sm:$0x3] %vm8238_vm2, %v429_v45  ;;  %v6714_v43 = vld [vmem:[%s9556_s0 + $0x864] sm:$0xf0] }
  0xed   :  { %2390 = vmatpush.bf16.msrb.mxu2 %v5515_v5  ;;  %v801_v57 = vsel %vm393_vm1, %v8555_v49, %v800_v50  ;;  %v5627_v5 = vor.u32 %v6700_v48, %v5626_v47  ;;  %v5738_v45 = vld [vmem:[%s9556_s0 + $0x8a0] sm:$0xf]  ;;  %v6711_v47 = vld [vmem:[%s9556_s0 + $0x854] sm:$0xf]  ;;  %v5743_v48 = vor.u32 %v6721_v2, %v5740_v35  ;;  %v5850_v35 = vld [vmem:[%s9556_s0 + $0x950] sm:$0xf] }
  0xee   :  { %2403 = vmatpush.bf16.msrb.mxu3 %v5519_v55  ;;  %v6697_v55 = vld [vmem:[%s9556_s0 + $0x7e4] sm:$0xf]  ;;  %804 = vst.msk [vmem:[#allocation2 + $0x1] ss:$8 sm:$0x3] %vm8238_vm2, %v801_v57  ;;  %v792_v62 = vpop.f32.mrf.mxu3 }
  0xef   :  { %2314 = vmatpush.bf16.msrb.mxu1 %v5467_v13  ;;  %2301 = vmatpush.bf16.msrb.mxu0 %v5463_v18  ;;  %v5612_v13 = vld [vmem:[%s9556_s0 + $0x7d8] sm:$0xf0]  ;;  %v5623_v15 = vor.u32 %v6697_v55, %v5620_v56  ;;  %v5686_v55 = vld [vmem:[%s9556_s0 + $0x850] sm:$0xf]  ;;  %v6712_v56 = vld [vmem:[%s9556_s0 + $0x854] sm:$0xf0] }
  0xf0   :  { %v5615_v26 = vor.u32 %v6695_v12, %v5612_v13  ;;  %v5730_v57 = vld [vmem:[%s9556_s0 + $0x890] sm:$0xf]  ;;  %v918_v3 = vpop.f32.mrf.mxu0  ;;  %v6720_v62 = vld [vmem:[%s9556_s0 + $0x894] sm:$0xf0]  ;;  %v5678_v12 = vld [vmem:[%s9556_s0 + $0x840] sm:$0xf] }
  0xf1   :  { %2391 = vmatpush.bf16.msrb.mxu2 %v5507_v24  ;;  %v5571_v24 = vor.u32 %v6687_v9, %v5568_v11  ;;  %v5724_v9 = vld [vmem:[%s9556_s0 + $0x888] sm:$0xf0]  ;;  %v5735_v11 = vor.u32 %v6719_v52, %v5732_v53  ;;  %v6710_v13 = vld [vmem:[%s9556_s0 + $0x844] sm:$0xf0] }
  0xf2   :  { %2404 = vmatpush.bf16.msrb.mxu3 %v5511_v14  ;;  %v5748_v14 = vld [vmem:[%s9556_s0 + $0x8b8] sm:$0xf0]  ;;  %v437_v18 = vld [vmem:[#allocation1 + $0x5] ss:$9 sm:$0xff] }
  0xf3   :  { %2315 = vmatpush.bf16.msrb.mxu1 %v5459_v34  ;;  %2302 = vmatpush.bf16.msrb.mxu0 %v5455_v41  ;;  %440 = vst.msk [vmem:[#allocation2 + $0x50] ss:$8 sm:$0x3] %vm8238_vm2, %v437_v18  ;;  %v8655_v30 = vpop.f32.mrf.mxu2  ;;  %v5751_v31 = vor.u32 %v6723_v16, %v5748_v14  ;;  %v5696_v34 = vld [vmem:[%s9556_s0 + $0x868] sm:$0xf0] }
  0xf4   :  { %5544 = vmatmul.msk.bf16.vlgmr.msrb.gmra.mxu2 %vm91_vm0, %v7853_v1  ;;  %806 = vst [vmem:[#allocation1] sm:$0xff] %v8555_v49  ;;  %v5694_v41 = vld [vmem:[%s9556_s0 + $0x860] sm:$0xf]  ;;  %v5699_v44 = vor.u32 %v6713_v29, %v5696_v34  ;;  %v6718_v14 = vld [vmem:[%s9556_s0 + $0x884] sm:$0xf0] }
  0xf5   :  { %2613 = vmatpush.bf16.msra.mxu2 %v5643_v33  ;;  %5545 = vmatmul.msk.bf16.vlgmr.msrb.gmra.mxu3 %vm91_vm0, %v7853_v1  ;;  %v6698_v1 = vld [vmem:[%s9556_s0 + $0x7e4] sm:$0xf0]  ;;  %807 = vst [vmem:[#allocation1 + $0x9] sm:$0xff] %v8540_v39  ;;  %v5567_v33 = vor.u32 %v6688_v54, %v5566_v6  ;;  %v5722_v16 = vld [vmem:[%s9556_s0 + $0x880] sm:$0xf] }
  0xf6   :  { %2626 = vmatpush.bf16.msra.mxu3 %v5647_v17  ;;  %5493 = vmatmul.msk.bf16.vlgmr.msrb.gmra.mxu1 %vm91_vm0, %v8590_v4  ;;  %v6696_v17 = vld [vmem:[%s9556_s0 + $0x7d4] sm:$0xf0]  ;;  %v5619_v19 = vor.u32 %v6698_v1, %v5618_v7  ;;  %v8672_v32 = vpop.f32.mrf.mxu3  ;;  %v6717_v1 = vld [vmem:[%s9556_s0 + $0x884] sm:$0xf]  ;;  %v6707_v54 = vld [vmem:[%s9556_s0 + $0x834] sm:$0xf] }
  0xf7   :  { %2539 = vmatpush.bf16.msra.mxu1 %v5595_v36  ;;  %2526 = vmatpush.bf16.msra.mxu0 %v5591_v46  ;;  %v5611_v27 = vor.u32 %v6696_v17, %v5610_v59  ;;  %v5558_v36 = vld [vmem:[%s9556_s0 + $0x780] sm:$0xf]  ;;  %v6722_v46 = vld [vmem:[%s9556_s0 + $0x8a4] sm:$0xf0]  ;;  %v5672_v17 = vld [vmem:[%s9556_s0 + $0x838] sm:$0xf0]  ;;  %v5727_v20 = vor.u32 %v6717_v1, %v5724_v9  ;;  %v1021_v34 = vmax.f32 %v8642_v23, %v8672_v32 }
  0xf8   :  { %5492 = vmatmul.msk.bf16.vlgmr.msrb.gmra.mxu0 %vm91_vm0, %v8590_v4  ;;  %v5559_v50 = vor.u32 %v6686_v37, %v5558_v36  ;;  %v5739_v61 = vor.u32 %v6722_v46, %v5738_v45  ;;  %v6715_v18 = vld [vmem:[%s9556_s0 + $0x874] sm:$0xf]  ;;  %v5714_v29 = vld [vmem:[%s9556_s0 + $0x870] sm:$0xf]  ;;  %v6744_v36 = vld [vmem:[%s9556_s0 + $0x954] sm:$0xf0] }
  0xf9   :  { %2614 = vmatpush.bf16.msra.mxu2 %v5635_v51  ;;  %v5688_v51 = vld [vmem:[%s9556_s0 + $0x858] sm:$0xf0]  ;;  %v6705_v37 = vld [vmem:[%s9556_s0 + $0x824] sm:$0xf]  ;;  %v5664_v23 = vld [vmem:[%s9556_s0 + $0x828] sm:$0xf0] }
  0xfa   :  { %2627 = vmatpush.bf16.msra.mxu3 %v5639_v40  ;;  %v5563_v40 = vor.u32 %v6685_v25, %v5560_v28  ;;  %v5691_v7 = vor.u32 %v6711_v47, %v5688_v51  ;;  %v5670_v25 = vld [vmem:[%s9556_s0 + $0x830] sm:$0xf]  ;;  %v6708_v28 = vld [vmem:[%s9556_s0 + $0x834] sm:$0xf0]  ;;  %v5800_v32 = vld [vmem:[%s9556_s0 + $0x908] sm:$0xf0]  ;;  %v5667_v3 = vor.u32 %v6705_v37, %v5664_v23 }
  0xfb   :  { %2540 = vmatpush.bf16.msra.mxu1 %v5587_v60  ;;  %2527 = vmatpush.bf16.msra.mxu0 %v5583_v63  ;;  %v5695_v60 = vor.u32 %v6714_v43, %v5694_v41  ;;  %v6709_v63 = vld [vmem:[%s9556_s0 + $0x844] sm:$0xf]  ;;  %v1092_v2 = vpop.f32.mrf.mxu0  ;;  %v5671_v46 = vor.u32 %v6708_v28, %v5670_v25  ;;  %v5662_v47 = vld [vmem:[%s9556_s0 + $0x820] sm:$0xf]  ;;  %v5828_v25 = vld [vmem:[%s9556_s0 + $0x928] sm:$0xf0] }
  0xfc   :  { %v5683_v59 = vor.u32 %v6709_v63, %v5680_v0  ;;  %v6741_v43 = vld [vmem:[%s9556_s0 + $0x944] sm:$0xf]  ;;  %v6742_v0 = vld [vmem:[%s9556_s0 + $0x944] sm:$0xf0] }
  0xfd   :  { %2615 = vmatpush.bf16.msra.mxu2 %v5627_v5  ;;  %v809_v5 = vld [vmem:[#allocation1 + $0x1] ss:$9 sm:$0xff] }
  0xfe   :  { %2628 = vmatpush.bf16.msra.mxu3 %v5631_v58  ;;  %v931_v58 = vpop.f32.mrf.mxu1  ;;  %814 = vst [vmem:[#allocation1] sm:$0xff] %v8555_v49  ;;  %v1018_v6 = vpop.f32.mrf.mxu3 }
  0xff   :  { %2541 = vmatpush.bf16.msra.mxu1 %v5579_v10  ;;  %2528 = vmatpush.bf16.msra.mxu0 %v5575_v42  ;;  %v1005_v10 = vpop.f32.mrf.mxu2  ;;  %815 = vst [vmem:[#allocation1 + $0x9] sm:$0xff] %v8540_v39  ;;  %v5731_v42 = vor.u32 %v6720_v62, %v5730_v57  ;;  %v5851_v57 = vor.u32 %v6744_v36, %v5850_v35  ;;  %v5842_v58 = vld [vmem:[%s9556_s0 + $0x940] sm:$0xf]  ;;  %v5834_v6 = vld [vmem:[%s9556_s0 + $0x930] sm:$0xf] }
 0x100   :  { %812 = vst.msk [vmem:[#allocation2 + $0x11] ss:$8 sm:$0x3] %vm8238_vm2, %v809_v5  ;;  %v6731_v5 = vld [vmem:[%s9556_s0 + $0x8f4] sm:$0xf] }
 0x101   :  { %2616 = vmatpush.bf16.msra.mxu2 %v5619_v19  ;;  %v5716_v19 = vld [vmem:[%s9556_s0 + $0x878] sm:$0xf0]  ;;  %v6739_v10 = vld [vmem:[%s9556_s0 + $0x934] sm:$0xf]  ;;  %v6738_v35 = vld [vmem:[%s9556_s0 + $0x924] sm:$0xf0] }
 0x102   :  { %2629 = vmatpush.bf16.msra.mxu3 %v5623_v15  ;;  %v5687_v15 = vor.u32 %v6712_v56, %v5686_v55  ;;  %v5719_v41 = vor.u32 %v6715_v18, %v5716_v19  ;;  %v6734_v55 = vld [vmem:[%s9556_s0 + $0x904] sm:$0xf0]  ;;  %v5784_v18 = vld [vmem:[%s9556_s0 + $0x8e8] sm:$0xf0] }
 0x103   :  { %2542 = vmatpush.bf16.msra.mxu1 %v5571_v24  ;;  %2529 = vmatpush.bf16.msra.mxu0 %v5567_v33  ;;  %v5852_v24 = vld [vmem:[%s9556_s0 + $0x958] sm:$0xf0]  ;;  %v1020_v33 = vmax.f32 %v8640_v22, %v8655_v30  ;;  %v5675_v22 = vor.u32 %v6707_v54, %v5672_v17  ;;  %v6733_v30 = vld [vmem:[%s9556_s0 + $0x904] sm:$0xf] }
 0x104   :  { %v5855_v45 = vor.u32 %v6743_v21, %v5852_v24  ;;  %v5803_v63 = vor.u32 %v6733_v30, %v5800_v32  ;;  %v6729_v17 = vld [vmem:[%s9556_s0 + $0x8e4] sm:$0xf]  ;;  %v6735_v30 = vld [vmem:[%s9556_s0 + $0x914] sm:$0xf]  ;;  %v5820_v32 = vld [vmem:[%s9556_s0 + $0x918] sm:$0xf0] }
 0x105   :  { %2617 = vmatpush.bf16.msra.mxu2 %v5611_v27  ;;  %v5723_v27 = vor.u32 %v6718_v14, %v5722_v16  ;;  %v1094_v16 = vpop.f32.mrf.mxu0  ;;  %v6732_v14 = vld [vmem:[%s9556_s0 + $0x8f4] sm:$0xf0]  ;;  %v6737_v24 = vld [vmem:[%s9556_s0 + $0x924] sm:$0xf]  ;;  %v5787_v23 = vor.u32 %v6729_v17, %v5784_v18  ;;  %v6751_v17 = vld [vmem:[%s9556_s0 + $0x994] sm:$0xf] }
 0x106   :  { %2630 = vmatpush.bf16.msra.mxu3 %v5615_v26  ;;  %v5679_v26 = vor.u32 %v6710_v13, %v5678_v12  ;;  %v1194_v56 = vpop.f32.mrf.mxu3  ;;  %v5790_v12 = vld [vmem:[%s9556_s0 + $0x8f0] sm:$0xf]  ;;  %v5896_v18 = vld [vmem:[%s9556_s0 + $0x998] sm:$0xf0] }
 0x107   :  { %2543 = vmatpush.bf16.msra.mxu1 %v5563_v40  ;;  %2530 = vmatpush.bf16.msra.mxu0 %v5559_v50  ;;  %v817_v40 = vld [vmem:[#allocation1 + $0x2] ss:$9 sm:$0xff]  ;;  %v1109_v50 = vmax.f32 %v1020_v33, %v1092_v2  ;;  %v1181_v52 = vpop.f32.mrf.mxu2  ;;  %v5791_v2 = vor.u32 %v6732_v14, %v5790_v12 }
 0x108   :  { %5648 = vmatmul.msk.bf16.vlgmr.msra.gmra.mxu2 %vm91_vm0, %v8590_v4  ;;  %822 = vst [vmem:[#allocation1] sm:$0xff] %v8555_v49  ;;  %v5946_v14 = vld [vmem:[%s9556_s0 + $0x9e0] sm:$0xf] }
 0x109   :  { %2791 = vmatpush.bf16.msrb.mxu2 %v5747_v38  ;;  %5649 = vmatmul.msk.bf16.vlgmr.msra.gmra.mxu3 %vm91_vm0, %v8590_v4  ;;  %v1105_v38 = vpop.f32.mrf.mxu1  ;;  %823 = vst [vmem:[#allocation1 + $0x9] sm:$0xff] %v8540_v39 }
 0x10a   :  { %2804 = vmatpush.bf16.msrb.mxu3 %v5751_v31  ;;  %5597 = vmatmul.msk.bf16.vlgmr.msra.gmra.mxu1 %vm91_vm0, %v8590_v4  ;;  %v6716_v31 = vld [vmem:[%s9556_s0 + $0x874] sm:$0xf0]  ;;  %v1110_v51 = vmax.f32 %v1021_v34, %v1105_v38  ;;  %820 = vst.msk [vmem:[#allocation2 + $0x21] ss:$8 sm:$0x3] %vm8238_vm2, %v817_v40  ;;  %v5831_v40 = vor.u32 %v6737_v24, %v5828_v25 }
 0x10b   :  { %2715 = vmatpush.bf16.msrb.mxu1 %v5699_v44  ;;  %2702 = vmatpush.bf16.msrb.mxu0 %v5695_v60  ;;  %v5844_v44 = vld [vmem:[%s9556_s0 + $0x948] sm:$0xf0]  ;;  %v5715_v53 = vor.u32 %v6716_v31, %v5714_v29  ;;  %v5798_v60 = vld [vmem:[%s9556_s0 + $0x900] sm:$0xf]  ;;  %v6730_v31 = vld [vmem:[%s9556_s0 + $0x8e4] sm:$0xf0] }
 0x10c   :  { %5596 = vmatmul.msk.bf16.vlgmr.msra.gmra.mxu0 %vm91_vm0, %v8590_v4  ;;  %v1199_v62 = vmax.f32 %v1110_v51, %v1194_v56  ;;  %v5847_v1 = vor.u32 %v6741_v43, %v5844_v44  ;;  %v5782_v29 = vld [vmem:[%s9556_s0 + $0x8e0] sm:$0xf]  ;;  %v6727_v38 = vld [vmem:[%s9556_s0 + $0x8d4] sm:$0xf]  ;;  %v5956_v44 = vld [vmem:[%s9556_s0 + $0x9f8] sm:$0xf0] }
 0x10d   :  { %2792 = vmatpush.bf16.msrb.mxu2 %v5739_v61  ;;  %v1198_v61 = vmax.f32 %v1109_v50, %v1181_v52  ;;  %v5783_v43 = vor.u32 %v6730_v31, %v5782_v29  ;;  %v6736_v50 = vld [vmem:[%s9556_s0 + $0x914] sm:$0xf0]  ;;  %v5954_v51 = vld [vmem:[%s9556_s0 + $0x9f0] sm:$0xf]  ;;  %v5940_v24 = vld [vmem:[%s9556_s0 + $0x9d8] sm:$0xf0]  ;;  %v5899_v31 = vor.u32 %v6751_v17, %v5896_v18 }
 0x10e   :  { %2805 = vmatpush.bf16.msrb.mxu3 %v5743_v48  ;;  %v6706_v48 = vld [vmem:[%s9556_s0 + $0x824] sm:$0xf0]  ;;  %v8841_v13 = vmax.f32 %v1199_v62, 0.0  ;;  %v1196_v36 = vpop.f32.mrf.mxu3 }
 0x10f   :  { %2716 = vmatpush.bf16.msrb.mxu1 %v5691_v7  ;;  %2703 = vmatpush.bf16.msrb.mxu0 %v5687_v15  ;;  %v5792_v7 = vld [vmem:[%s9556_s0 + $0x8f8] sm:$0xf0]  ;;  %v5663_v9 = vor.u32 %v6706_v48, %v5662_v47  ;;  %v5799_v15 = vor.u32 %v6734_v55, %v5798_v60  ;;  %v8858_v19 = vmax.f32 %v1198_v61, 0.0  ;;  %v1183_v34 = vpop.f32.mrf.mxu2  ;;  %v5818_v48 = vld [vmem:[%s9556_s0 + $0x910] sm:$0xf] }
 0x110   :  { %v5795_v21 = vor.u32 %v6731_v5, %v5792_v7  ;;  %v6725_v60 = vld [vmem:[%s9556_s0 + $0x8c4] sm:$0xf]  ;;  %v5768_v55 = vld [vmem:[%s9556_s0 + $0x8c8] sm:$0xf0]  ;;  %v6760_v34 = vld [vmem:[%s9556_s0 + $0x9d4] sm:$0xf0] }
 0x111   :  { %2793 = vmatpush.bf16.msrb.mxu2 %v5731_v42  ;;  %v5843_v42 = vor.u32 %v6742_v0, %v5842_v58  ;;  %v1107_v54 = vpop.f32.mrf.mxu1  ;;  %v5904_v58 = vld [vmem:[%s9556_s0 + $0x9a8] sm:$0xf0]  ;;  %v6761_v61 = vld [vmem:[%s9556_s0 + $0x9e4] sm:$0xf]  ;;  %v5771_v16 = vor.u32 %v6725_v60, %v5768_v55  ;;  %v5924_v60 = vld [vmem:[%s9556_s0 + $0x9b8] sm:$0xf0] }
 0x112   :  { %2806 = vmatpush.bf16.msrb.mxu3 %v5735_v11  ;;  %v5836_v11 = vld [vmem:[%s9556_s0 + $0x938] sm:$0xf0]  ;;  %v5948_v7 = vld [vmem:[%s9556_s0 + $0x9e8] sm:$0xf0] }
 0x113   :  { %2717 = vmatpush.bf16.msrb.mxu1 %v5683_v59  ;;  %2704 = vmatpush.bf16.msrb.mxu0 %v5679_v26  ;;  %v6740_v59 = vld [vmem:[%s9556_s0 + $0x934] sm:$0xf0]  ;;  %v5839_v28 = vor.u32 %v6739_v10, %v5836_v11  ;;  %v6726_v10 = vld [vmem:[%s9556_s0 + $0x8c4] sm:$0xf0]  ;;  %v5902_v11 = vld [vmem:[%s9556_s0 + $0x9a0] sm:$0xf]  ;;  %v5951_v54 = vor.u32 %v6761_v61, %v5948_v7 }
 0x114   :  { %v825_v26 = vld [vmem:[#allocation1 + $0x3] ss:$9 sm:$0xff]  ;;  %v5835_v37 = vor.u32 %v6740_v59, %v5834_v6 }
 0x115   :  { %2794 = vmatpush.bf16.msrb.mxu2 %v5723_v27  ;;  %830 = vst [vmem:[#allocation1] sm:$0xff] %v8555_v49  ;;  %v5826_v27 = vld [vmem:[%s9556_s0 + $0x920] sm:$0xf]  ;;  %v5888_v36 = vld [vmem:[%s9556_s0 + $0x988] sm:$0xf0] }
 0x116   :  { %2807 = vmatpush.bf16.msrb.mxu3 %v5727_v20  ;;  %v1204_v20 = vrot.slane %v8841_v13, 7  ;;  %831 = vst [vmem:[#allocation1 + $0x9] sm:$0xff] %v8540_v39  ;;  %v5827_v47 = vor.u32 %v6738_v35, %v5826_v27  ;;  %v8964_v12 = vpop.f32.mrf.mxu3  ;;  %v6749_v35 = vld [vmem:[%s9556_s0 + $0x984] sm:$0xf]  ;;  %v5922_v61 = vld [vmem:[%s9556_s0 + $0x9b0] sm:$0xf] }
 0x117   :  { %2718 = vmatpush.bf16.msrb.mxu1 %v5675_v22  ;;  %2705 = vmatpush.bf16.msrb.mxu0 %v5671_v46  ;;  %v5776_v22 = vld [vmem:[%s9556_s0 + $0x8d8] sm:$0xf0]  ;;  %828 = vst.msk [vmem:[#allocation2 + $0x31] ss:$8 sm:$0x3] %vm8238_vm2, %v825_v26 }
 0x118   :  { %v1205_v33 = vsel %vm393_vm1, %v8858_v19, %v1204_v20  ;;  %v6728_v46 = vld [vmem:[%s9556_s0 + $0x8d4] sm:$0xf0]  ;;  %v5779_v52 = vor.u32 %v6727_v38, %v5776_v22  ;;  %v5894_v26 = vld [vmem:[%s9556_s0 + $0x990] sm:$0xf]  ;;  %v5872_v7 = vld [vmem:[%s9556_s0 + $0x968] sm:$0xf0] }
 0x119   :  { %2795 = vmatpush.bf16.msrb.mxu2 %v5715_v53  ;;  %1208 = vst.msk [vmem:[#allocation2 + $0x2] ss:$8 sm:$0x3] %vm8238_vm2, %v1205_v33  ;;  %v6764_v53 = vld [vmem:[%s9556_s0 + $0x9f4] sm:$0xf0]  ;;  %v8937_v56 = vpop.f32.mrf.mxu1 }
 0x11a   :  { %2808 = vmatpush.bf16.msrb.mxu3 %v5719_v41  ;;  %v6763_v41 = vld [vmem:[%s9556_s0 + $0x9f4] sm:$0xf]  ;;  %v5938_v33 = vld [vmem:[%s9556_s0 + $0x9d0] sm:$0xf] }
 0x11b   :  { %2719 = vmatpush.bf16.msrb.mxu1 %v5667_v3  ;;  %2706 = vmatpush.bf16.msrb.mxu0 %v5663_v9  ;;  %v6753_v3 = vld [vmem:[%s9556_s0 + $0x9a4] sm:$0xf]  ;;  %v5959_v0 = vor.u32 %v6763_v41, %v5956_v44  ;;  %v5819_v9 = vor.u32 %v6736_v50, %v5818_v48  ;;  %v6750_v41 = vld [vmem:[%s9556_s0 + $0x984] sm:$0xf0]  ;;  %v5930_v44 = vld [vmem:[%s9556_s0 + $0x9c0] sm:$0xf] }
 0x11c   :  { %5752 = vmatmul.msk.bf16.vlgmr.msrb.gmra.mxu2 %vm91_vm0, %v8590_v4  ;;  %v5907_v6 = vor.u32 %v6753_v3, %v5904_v58  ;;  %v6747_v48 = vld [vmem:[%s9556_s0 + $0x974] sm:$0xf]  ;;  %v5880_v50 = vld [vmem:[%s9556_s0 + $0x978] sm:$0xf0]  ;;  %v5878_v3 = vld [vmem:[%s9556_s0 + $0x970] sm:$0xf] }
 0x11d   :  { %3017 = vmatpush.bf16.msra.mxu2 %v5851_v57  ;;  %5753 = vmatmul.msk.bf16.vlgmr.msrb.gmra.mxu3 %vm91_vm0, %v8590_v4  ;;  %v5823_v57 = vor.u32 %v6735_v30, %v5820_v32  ;;  %v833_v62 = vld [vmem:[#allocation1 + $0x4] ss:$9 sm:$0xff]  ;;  %v5883_v58 = vor.u32 %v6747_v48, %v5880_v50 }
 0x11e   :  { %3030 = vmatpush.bf16.msra.mxu3 %v5855_v45  ;;  %5701 = vmatmul.msk.bf16.vlgmr.msrb.gmra.mxu1 %vm91_vm0, %v8590_v4  ;;  %v5774_v45 = vld [vmem:[%s9556_s0 + $0x8d0] sm:$0xf]  ;;  %838 = vst [vmem:[#allocation1] sm:$0xff] %v8555_v49  ;;  %v6754_v49 = vld [vmem:[%s9556_s0 + $0x9a4] sm:$0xf0]  ;;  %v1422_v32 = vpop.f32.mrf.mxu3 }
 0x11f   :  { %2943 = vmatpush.bf16.msra.mxu1 %v5803_v63  ;;  %2930 = vmatpush.bf16.msra.mxu0 %v5799_v15  ;;  %v8948_v63 = vpop.f32.mrf.mxu0  ;;  %v5775_v5 = vor.u32 %v6728_v46, %v5774_v45  ;;  %839 = vst [vmem:[#allocation1 + $0x9] sm:$0xff] %v8540_v39  ;;  %v5955_v15 = vor.u32 %v6764_v53, %v5954_v51  ;;  %v6762_v39 = vld [vmem:[%s9556_s0 + $0x9e4] sm:$0xf0]  ;;  %v5886_v30 = vld [vmem:[%s9556_s0 + $0x980] sm:$0xf] }
 0x120   :  { %5700 = vmatmul.msk.bf16.vlgmr.msrb.gmra.mxu0 %vm91_vm0, %v8590_v4  ;;  %836 = vst.msk [vmem:[#allocation2 + $0x41] ss:$8 sm:$0x3] %vm8238_vm2, %v833_v62  ;;  %v5903_v20 = vor.u32 %v6754_v49, %v5902_v11  ;;  %v5947_v25 = vor.u32 %v6762_v39, %v5946_v14  ;;  %v6758_v45 = vld [vmem:[%s9556_s0 + $0x9c4] sm:$0xf0]  ;;  %v1425_v51 = vmax.f32 %v8937_v56, %v8964_v12 }
 0x121   :  { %3018 = vmatpush.bf16.msra.mxu2 %v5843_v42  ;;  %v8977_v42 = vpop.f32.mrf.mxu2  ;;  %v1335_v29 = vpop.f32.mrf.mxu1  ;;  %v6755_v53 = vld [vmem:[%s9556_s0 + $0x9b4] sm:$0xf]  ;;  %v6748_v56 = vld [vmem:[%s9556_s0 + $0x974] sm:$0xf0] }
 0x122   :  { %3031 = vmatpush.bf16.msra.mxu3 %v5847_v1  ;;  %v5766_v1 = vld [vmem:[%s9556_s0 + $0x8c0] sm:$0xf]  ;;  %v1424_v55 = vmax.f32 %v8948_v63, %v8977_v42  ;;  %v6756_v62 = vld [vmem:[%s9556_s0 + $0x9b4] sm:$0xf0] }
 0x123   :  { %2944 = vmatpush.bf16.msra.mxu1 %v5795_v21  ;;  %2931 = vmatpush.bf16.msra.mxu0 %v5791_v2  ;;  %v5767_v59 = vor.u32 %v6726_v10, %v5766_v1  ;;  %v6759_v21 = vld [vmem:[%s9556_s0 + $0x9d4] sm:$0xf]  ;;  %v5879_v10 = vor.u32 %v6748_v56, %v5878_v3  ;;  %v5923_v12 = vor.u32 %v6756_v62, %v5922_v61 }
 0x124   :  { %v5943_v27 = vor.u32 %v6759_v21, %v5940_v24 }
 0x125   :  { %3019 = vmatpush.bf16.msra.mxu2 %v5835_v37  ;;  %v6757_v37 = vld [vmem:[%s9556_s0 + $0x9c4] sm:$0xf] }
 0x126   :  { %3032 = vmatpush.bf16.msra.mxu3 %v5839_v28  ;;  %v6752_v28 = vld [vmem:[%s9556_s0 + $0x994] sm:$0xf0] }
 0x127   :  { %2945 = vmatpush.bf16.msra.mxu1 %v5787_v23  ;;  %2932 = vmatpush.bf16.msra.mxu0 %v5783_v43  ;;  %v1322_v2 = vpop.f32.mrf.mxu0  ;;  %v841_v38 = vld [vmem:[#allocation1 + $0x5] ss:$9 sm:$0xff]  ;;  %v5895_v22 = vor.u32 %v6752_v28, %v5894_v26  ;;  %v5891_v43 = vor.u32 %v6749_v35, %v5888_v36 }
 0x128   :  { %v5932_v23 = vld [vmem:[%s9556_s0 + $0x9c8] sm:$0xf0]  ;;  %844 = vst.msk [vmem:[#allocation2 + $0x51] ss:$8 sm:$0x3] %vm8238_vm2, %v841_v38  ;;  %v1598_v14 = vpop.f32.mrf.mxu3 }
 0x129   :  { %3020 = vmatpush.bf16.msra.mxu2 %v5827_v47  ;;  %1210 = vst [vmem:[#allocation1] sm:$0xff] %v8858_v19  ;;  %v1409_v46 = vpop.f32.mrf.mxu2  ;;  %v5935_v47 = vor.u32 %v6757_v37, %v5932_v23  ;;  %v1509_v63 = vpop.f32.mrf.mxu1 }
 0x12a   :  { %3033 = vmatpush.bf16.msra.mxu3 %v5831_v40  ;;  %v5939_v40 = vor.u32 %v6760_v34, %v5938_v33  ;;  %1211 = vst [vmem:[#allocation1 + $0x9] sm:$0xff] %v8841_v13  ;;  %v1514_v1 = vmax.f32 %v1425_v51, %v1509_v63 }
 0x12b   :  { %2946 = vmatpush.bf16.msra.mxu1 %v5779_v52  ;;  %2933 = vmatpush.bf16.msra.mxu0 %v5775_v5  ;;  %v5887_v52 = vor.u32 %v6750_v41, %v5886_v30  ;;  %v6745_v5 = vld [vmem:[%s9556_s0 + $0x964] sm:$0xf] }
 0x12c   :  { %v1603_v39 = vmax.f32 %v1514_v1, %v1598_v14 }
 0x12d   :  { %3021 = vmatpush.bf16.msra.mxu2 %v5819_v9 }
 0x12e   :  { %3034 = vmatpush.bf16.msra.mxu3 %v5823_v57  ;;  %v5931_v57 = vor.u32 %v6758_v45, %v5930_v44 }
 0x12f   :  { %2947 = vmatpush.bf16.msra.mxu1 %v5771_v16  ;;  %2934 = vmatpush.bf16.msra.mxu0 %v5767_v59  ;;  %v1496_v9 = vpop.f32.mrf.mxu0  ;;  %v6746_v16 = vld [vmem:[%s9556_s0 + $0x964] sm:$0xf0]  ;;  %v9083_v59 = vmax.f32 %v1603_v39, 0.0 }
 0x130   :  { %5856 = vmatmul.msk.bf16.vlgmr.msra.gmra.mxu2 %vm91_vm0, %v8590_v4  ;;  %v1513_v11 = vmax.f32 %v1424_v55, %v1496_v9  ;;  %v1600_v26 = vpop.f32.mrf.mxu3 }
 0x131   :  { %3195 = vmatpush.bf16.msrb.mxu2 %v5955_v15  ;;  %5857 = vmatmul.msk.bf16.vlgmr.msra.gmra.mxu3 %vm91_vm0, %v8590_v4  ;;  %v5870_v15 = vld [vmem:[%s9556_s0 + $0x960] sm:$0xf]  ;;  %v1585_v42 = vpop.f32.mrf.mxu2  ;;  %v1608_v18 = vrot.slane %v9083_v59, 7  ;;  %v1511_v21 = vpop.f32.mrf.mxu1 }
 0x132   :  { %3208 = vmatpush.bf16.msrb.mxu3 %v5959_v0  ;;  %5805 = vmatmul.msk.bf16.vlgmr.msra.gmra.mxu1 %vm91_vm0, %v8590_v4  ;;  %v5927_v0 = vor.u32 %v6755_v53, %v5924_v60  ;;  %v1213_v49 = vld [vmem:[#allocation1 + $0x1] ss:$9 sm:$0xff]  ;;  %v1602_v17 = vmax.f32 %v1513_v11, %v1585_v42 }
 0x133   :  { %3119 = vmatpush.bf16.msrb.mxu1 %v5907_v6  ;;  %3106 = vmatpush.bf16.msrb.mxu0 %v5903_v20  ;;  %v5875_v6 = vor.u32 %v6745_v5, %v5872_v7  ;;  %1218 = vst [vmem:[#allocation1] sm:$0xff] %v8858_v19 }
 0x134   :  { %5804 = vmatmul.msk.bf16.vlgmr.msra.gmra.mxu0 %vm91_vm0, %v8590_v4  ;;  %1219 = vst [vmem:[#allocation1 + $0x9] sm:$0xff] %v8841_v13  ;;  %v9088_v20 = vmax.f32 %v1602_v17, 0.0 }
 0x135   :  { %3196 = vmatpush.bf16.msrb.mxu2 %v5947_v25  ;;  %1216 = vst.msk [vmem:[#allocation2 + $0x12] ss:$8 sm:$0x3] %vm8238_vm2, %v1213_v49 }
 0x136   :  { %3209 = vmatpush.bf16.msrb.mxu3 %v5951_v54  ;;  %v5871_v54 = vor.u32 %v6746_v16, %v5870_v15  ;;  %v1609_v25 = vsel %vm393_vm1, %v9088_v20, %v1608_v18 }
 0x137   :  { %3120 = vmatpush.bf16.msrb.mxu1 %v5899_v31  ;;  %3107 = vmatpush.bf16.msrb.mxu0 %v5895_v22  ;;  %v1498_v24 = vpop.f32.mrf.mxu0  ;;  %1612 = vst.msk [vmem:[#allocation2 + $0x3] ss:$8 sm:$0x3] %vm8238_vm2, %v1609_v25 }
 0x139   :  { %3197 = vmatpush.bf16.msrb.mxu2 %v5939_v40  ;;  %v1587_v29 = vpop.f32.mrf.mxu2  ;;  %v1737_v31 = vpop.f32.mrf.mxu1 }
 0x13a   :  { %3210 = vmatpush.bf16.msrb.mxu3 %v5943_v27 }
 0x13b   :  { %3121 = vmatpush.bf16.msrb.mxu1 %v5891_v43  ;;  %3108 = vmatpush.bf16.msrb.mxu0 %v5887_v52  ;;  %v1221_v28 = vld [vmem:[#allocation1 + $0x2] ss:$9 sm:$0xff] }
 0x13c   :  { %1226 = vst [vmem:[#allocation1] sm:$0xff] %v8858_v19  ;;  %v1824_v34 = vpop.f32.mrf.mxu3 }
 0x13d   :  { %3198 = vmatpush.bf16.msrb.mxu2 %v5931_v57  ;;  %1227 = vst [vmem:[#allocation1 + $0x9] sm:$0xff] %v8841_v13  ;;  %v1829_v22 = vmax.f32 %v1737_v31, %v1824_v34 }
 0x13e   :  { %3211 = vmatpush.bf16.msrb.mxu3 %v5935_v47  ;;  %1224 = vst.msk [vmem:[#allocation2 + $0x22] ss:$8 sm:$0x3] %vm8238_vm2, %v1221_v28 }
 0x13f   :  { %3122 = vmatpush.bf16.msrb.mxu1 %v5883_v58  ;;  %3109 = vmatpush.bf16.msrb.mxu0 %v5879_v10  ;;  %v1724_v33 = vpop.f32.mrf.mxu0 }
 0x141   :  { %3199 = vmatpush.bf16.msrb.mxu2 %v5923_v12  ;;  %v1811_v27 = vpop.f32.mrf.mxu2 }
 0x142   :  { %3212 = vmatpush.bf16.msrb.mxu3 %v5927_v0  ;;  %v1828_v23 = vmax.f32 %v1724_v33, %v1811_v27 }
 0x143   :  { %3123 = vmatpush.bf16.msrb.mxu1 %v5875_v6  ;;  %3110 = vmatpush.bf16.msrb.mxu0 %v5871_v54 }
 0x144   :  { %5960 = vmatmul.msk.bf16.vlgmr.msrb.gmra.mxu2 %vm91_vm0, %v8590_v4  ;;  %v1229_v2 = vld [vmem:[#allocation1 + $0x3] ss:$9 sm:$0xff]  ;;  %v1826_v36 = vpop.f32.mrf.mxu3 }
 0x145   :  { %5961 = vmatmul.msk.bf16.vlgmr.msrb.gmra.mxu3 %vm91_vm0, %v8590_v4  ;;  %1234 = vst [vmem:[#allocation1] sm:$0xff] %v8858_v19 }
 0x146   :  { %5909 = vmatmul.msk.bf16.vlgmr.msrb.gmra.mxu1 %vm91_vm0, %v8590_v4  ;;  %5908 = vmatmul.msk.bf16.vlgmr.msrb.gmra.mxu0 %vm91_vm0, %v8590_v4  ;;  %1235 = vst [vmem:[#allocation1 + $0x9] sm:$0xff] %v8841_v13  ;;  %v1739_v4 = vpop.f32.mrf.mxu1 }
 0x147   :  { %1232 = vst.msk [vmem:[#allocation2 + $0x32] ss:$8 sm:$0x3] %vm8238_vm2, %v1229_v2  ;;  %v1726_v35 = vpop.f32.mrf.mxu0 }
 0x149   :  { %v1813_v38 = vpop.f32.mrf.mxu2 }
 0x14a   :  { %v6772_v38 = vld [vmem:[%s9558_s2 + $0x38] sm:$0xff] }
 0x14b   :  { %3519 = vmatpush.bf16.msra.mxu2 %v6772_v38  ;;  %v6781_v38 = vld [vmem:[%s9558_s2 + $0x84] sm:$0xff] }
 0x14d   :  { %v1237_v37 = vld [vmem:[#allocation1 + $0x4] ss:$9 sm:$0xff] }
 0x14e   :  { %1242 = vst [vmem:[#allocation1] sm:$0xff] %v8858_v19  ;;  %v1913_v30 = vpop.f32.mrf.mxu1 }
 0x14f   :  { %1243 = vst [vmem:[#allocation1 + $0x9] sm:$0xff] %v8841_v13  ;;  %v1918_v32 = vmax.f32 %v1829_v22, %v1913_v30  ;;  %v1900_v40 = vpop.f32.mrf.mxu0 }
 0x150   :  { %1240 = vst.msk [vmem:[#allocation2 + $0x42] ss:$8 sm:$0x3] %vm8238_vm2, %v1237_v37  ;;  %v1917_v41 = vmax.f32 %v1828_v23, %v1900_v40  ;;  %v2002_v43 = vpop.f32.mrf.mxu3  ;;  %v6771_v40 = vld [vmem:[%s9558_s2 + $0x30] sm:$0xff] }
 0x151   :  { %v2007_v44 = vmax.f32 %v1918_v32, %v2002_v43  ;;  %v1989_v46 = vpop.f32.mrf.mxu2  ;;  %3520 = vmatpush.bf16.msra.mxu2 %v6771_v40  ;;  %v6812_v40 = vld [vmem:[%s9558_s2 + $0x184] sm:$0xff] }
 0x152   :  { %v2006_v19 = vmax.f32 %v1917_v41, %v1989_v46  ;;  %v3298_v41 = vld [vmem:[%s9558_s2 + $0x60] sm:$0x3] }
 0x153   :  { %v9114_v47 = vmax.f32 %v2007_v44, 0.0  ;;  %v3487_v44 = vunpack.c.l.b16 %v3298_v41 }
 0x154   :  { %v9119_v48 = vmax.f32 %v2006_v19, 0.0 }
 0x155   :  { %v2012_v13 = vrot.slane %v9114_v47, 7  ;;  %v3500_v19 = vpack.c.b16 %v3487_v44, %v3487_v44 }
 0x156   :  { %v1245_v45 = vld [vmem:[#allocation1 + $0x5] ss:$9 sm:$0xff]  ;;  %v1915_v50 = vpop.f32.mrf.mxu1 }
 0x157   :  { %1248 = vst.msk [vmem:[#allocation2 + $0x52] ss:$8 sm:$0x3] %vm8238_vm2, %v1245_v45  ;;  %v1902_v51 = vpop.f32.mrf.mxu0  ;;  %v2013_v52 = vsel %vm393_vm1, %v9119_v48, %v2012_v13 }
 0x158   :  { %1615 = vst [vmem:[#allocation1 + $0x9] sm:$0xff] %v9083_v59  ;;  %v2004_v53 = vpop.f32.mrf.mxu3  ;;  %v6770_v51 = vld [vmem:[%s9558_s2 + $0x28] sm:$0xff] }
 0x159   :  { %1614 = vst [vmem:[#allocation1] sm:$0xff] %v9088_v20  ;;  %v1991_v60 = vpop.f32.mrf.mxu2  ;;  %3521 = vmatpush.bf16.msra.mxu2 %v6770_v51 }
 0x15a   :  { %2016 = vst.msk [vmem:[#allocation2 + $0x4] ss:$8 sm:$0x3] %vm8238_vm2, %v2013_v52  ;;  %v3517_v52 = vsel %vm3408_vm3, %v3500_v19, 0 }
 0x15b   :  { %3535 = vmatpush.bf16.msra.mxu3 %v3517_v52  ;;  %v6811_v52 = vld [vmem:[%s9558_s2 + $0x17c] sm:$0xff] }
 0x15f   :  { %v2141_v57 = vpop.f32.mrf.mxu1 }
 0x160   :  { %v1617_v55 = vld [vmem:[#allocation1 + $0x1] ss:$9 sm:$0xff] }
 0x161   :  { %1622 = vst [vmem:[#allocation1] sm:$0xff] %v9088_v20  ;;  %v2128_v3 = vpop.f32.mrf.mxu0 }
 0x162   :  { %1623 = vst [vmem:[#allocation1 + $0x9] sm:$0xff] %v9083_v59 }
 0x163   :  { %1620 = vst.msk [vmem:[#allocation2 + $0x13] ss:$8 sm:$0x3] %vm8238_vm2, %v1617_v55  ;;  %v2215_v58 = vpop.f32.mrf.mxu2 }
 0x164   :  { %v2228_v56 = vpop.f32.mrf.mxu3  ;;  %v2232_v14 = vmax.f32 %v2128_v3, %v2215_v58 }
 0x165   :  { %v2233_v16 = vmax.f32 %v2141_v57, %v2228_v56  ;;  %v6769_v56 = vld [vmem:[%s9558_s2 + $0x20] sm:$0xff] }
 0x166   :  { %3522 = vmatpush.bf16.msra.mxu2 %v6769_v56  ;;  %v6779_v56 = vld [vmem:[%s9558_s2 + $0x74] sm:$0xff] }
 0x167   :  { %v2143_v62 = vpop.f32.mrf.mxu1 }
 0x168   :  { %v6776_v62 = vld [vmem:[%s9558_s2 + $0x58] sm:$0xff] }
 0x169   :  { %v1625_v61 = vld [vmem:[#allocation1 + $0x2] ss:$9 sm:$0xff]  ;;  %v2130_v63 = vpop.f32.mrf.mxu0  ;;  %3536 = vmatpush.bf16.msra.mxu3 %v6776_v62 }
 0x16a   :  { %1630 = vst [vmem:[#allocation1] sm:$0xff] %v9088_v20 }
 0x16b   :  { %1631 = vst [vmem:[#allocation1 + $0x9] sm:$0xff] %v9083_v59  ;;  %v2217_v5 = vpop.f32.mrf.mxu2 }
 0x16c   :  { %1628 = vst.msk [vmem:[#allocation2 + $0x23] ss:$8 sm:$0x3] %vm8238_vm2, %v1625_v61  ;;  %v2230_v0 = vpop.f32.mrf.mxu3  ;;  %v6775_v5 = vld [vmem:[%s9558_s2 + $0x50] sm:$0xff] }
 0x16d   :  { %v6768_v0 = vld [vmem:[%s9558_s2 + $0x18] sm:$0xff]  ;;  %3537 = vmatpush.bf16.msra.mxu3 %v6775_v5 }
 0x16e   :  { %3523 = vmatpush.bf16.msra.mxu2 %v6768_v0  ;;  %v6796_v0 = vld [vmem:[%s9558_s2 + $0x100] sm:$0xff]  ;;  %v6810_v5 = vld [vmem:[%s9558_s2 + $0x174] sm:$0xff] }
 0x172   :  { %v1633_v7 = vld [vmem:[#allocation1 + $0x3] ss:$9 sm:$0xff] }
 0x173   :  { %1638 = vst [vmem:[#allocation1] sm:$0xff] %v9088_v20  ;;  %v2317_v1 = vpop.f32.mrf.mxu1 }
 0x174   :  { %1639 = vst [vmem:[#allocation1 + $0x9] sm:$0xff] %v9083_v59  ;;  %v2322_v6 = vmax.f32 %v2233_v16, %v2317_v1  ;;  %v6766_v16 = vld [vmem:[%s9558_s2 + $0x8] sm:$0xff] }
 0x175   :  { %1636 = vst.msk [vmem:[#allocation2 + $0x33] ss:$8 sm:$0x3] %vm8238_vm2, %v1633_v7  ;;  %v2304_v9 = vpop.f32.mrf.mxu0 }
 0x176   :  { %v2321_v42 = vmax.f32 %v2232_v14, %v2304_v9  ;;  %v6767_v9 = vld [vmem:[%s9558_s2 + $0x10] sm:$0xff]  ;;  %v6784_v14 = vld [vmem:[%s9558_s2 + $0x9c] sm:$0xff] }
 0x177   :  { %v2393_v11 = vpop.f32.mrf.mxu2  ;;  %3524 = vmatpush.bf16.msra.mxu2 %v6767_v9  ;;  %3412 = vmatpush.bf16.msra.mxu0 %v6784_v14  ;;  %v6797_v9 = vld [vmem:[%s9558_s2 + $0x108] sm:$0xff] }
 0x178   :  { %v2406_v10 = vpop.f32.mrf.mxu3  ;;  %v2410_v21 = vmax.f32 %v2321_v42, %v2393_v11  ;;  %v6109_v42 = vld [vmem:[%s9558_s2 + $0x128] sm:$0x3] }
 0x179   :  { %v2411_v54 = vmax.f32 %v2322_v6, %v2406_v10  ;;  %v6774_v10 = vld [vmem:[%s9558_s2 + $0x48] sm:$0xff] }
 0x17a   :  { %3538 = vmatpush.bf16.msra.mxu3 %v6774_v10 }
 0x17b   :  { %v1641_v12 = vld [vmem:[#allocation1 + $0x4] ss:$9 sm:$0xff]  ;;  %v2319_v15 = vpop.f32.mrf.mxu1  ;;  %v9141_v18 = vmax.f32 %v2411_v54, 0.0  ;;  %3525 = vmatpush.bf16.msra.mxu2 %v6766_v16 }
 0x17c   :  { %1646 = vst [vmem:[#allocation1] sm:$0xff] %v9088_v20  ;;  %v9144_v20 = vmax.f32 %v2410_v21, 0.0  ;;  %v6777_v16 = vld [vmem:[%s9558_s2 + $0x64] sm:$0xff] }
 0x17d   :  { %1647 = vst [vmem:[#allocation1 + $0x9] sm:$0xff] %v9083_v59  ;;  %v2306_v49 = vpop.f32.mrf.mxu0  ;;  %v2416_v25 = vrot.slane %v9141_v18, 7 }
 0x17e   :  { %1644 = vst.msk [vmem:[#allocation2 + $0x43] ss:$8 sm:$0x3] %vm8238_vm2, %v1641_v12  ;;  %v6773_v49 = vld [vmem:[%s9558_s2 + $0x40] sm:$0xff] }
 0x17f   :  { %v2395_v17 = vpop.f32.mrf.mxu2  ;;  %v2417_v59 = vsel %vm393_vm1, %v9144_v20, %v2416_v25  ;;  %3539 = vmatpush.bf16.msra.mxu3 %v6773_v49  ;;  %v6808_v49 = vld [vmem:[%s9558_s2 + $0x164] sm:$0xff] }
 0x180   :  { %v2408_v39 = vpop.f32.mrf.mxu3  ;;  %2420 = vst.msk [vmem:[#allocation2 + $0x5] ss:$8 sm:$0x3] %vm8238_vm2, %v2417_v59  ;;  %v6765_v17 = vld [vmem:[%s9558_s2] sm:$0xff] }
 0x181   :  { %3526 = vmatpush.bf16.msra.mxu2 %v6765_v17  ;;  %v6807_v17 = vld [vmem:[%s9558_s2 + $0x15c] sm:$0xff] }
 0x184   :  { %v1649_v24 = vld [vmem:[#allocation1 + $0x5] ss:$9 sm:$0xff] }
 0x185   :  { %1652 = vst.msk [vmem:[#allocation2 + $0x53] ss:$8 sm:$0x3] %vm8238_vm2, %v1649_v24  ;;  %v3624_v24 = vunpack.c.l.b16 %v6109_v42 }
 0x186   :  { %2019 = vst [vmem:[#allocation1 + $0x9] sm:$0xff] %v9114_v47 }
 0x187   :  { %v2545_v26 = vpop.f32.mrf.mxu1  ;;  %2018 = vst [vmem:[#allocation1] sm:$0xff] %v9119_v48 }
 0x189   :  { %v2532_v28 = vpop.f32.mrf.mxu0 }
 0x18b   :  { %v2619_v31 = vpop.f32.mrf.mxu2 }
 0x18c   :  { %v2632_v29 = vpop.f32.mrf.mxu3  ;;  %v2636_v36 = vmax.f32 %v2532_v28, %v2619_v31  ;;  %v3637_v28 = vpack.c.b16 %v3624_v24, %v3624_v24  ;;  %v6819_v24 = vld [vmem:[%s9558_s2 + $0x1c0] sm:$0xff] }
 0x18d   :  { %v2637_v35 = vmax.f32 %v2545_v26, %v2632_v29  ;;  %v6782_v26 = vld [vmem:[%s9558_s2 + $0x8c] sm:$0xff] }
 0x18e   :  { %v2021_v34 = vld [vmem:[#allocation1 + $0x1] ss:$9 sm:$0xff]  ;;  %v6183_v29 = vld [vmem:[%s9558_s2 + $0x18c] sm:$0x3] }
 0x18f   :  { %v2547_v33 = vpop.f32.mrf.mxu1  ;;  %2026 = vst [vmem:[#allocation1] sm:$0xff] %v9119_v48 }
 0x190   :  { %2027 = vst [vmem:[#allocation1 + $0x9] sm:$0xff] %v9114_v47  ;;  %v6788_v33 = vld [vmem:[%s9558_s2 + $0xbc] sm:$0xff] }
 0x191   :  { %v2534_v2 = vpop.f32.mrf.mxu0  ;;  %2024 = vst.msk [vmem:[#allocation2 + $0x14] ss:$8 sm:$0x3] %vm8238_vm2, %v2021_v34  ;;  %v3762_v34 = vunpack.c.l.b16 %v6183_v29 }
 0x193   :  { %v2621_v4 = vpop.f32.mrf.mxu2 }
 0x194   :  { %v2634_v27 = vpop.f32.mrf.mxu3  ;;  %v3654_v4 = vsel %vm3408_vm3, %v3637_v28, 0 }
 0x195   :  { %3672 = vmatpush.bf16.msrb.mxu3 %v3654_v4  ;;  %v6832_v4 = vld [vmem:[%s9558_s2 + $0x22c] sm:$0xff] }
 0x197   :  { %v2029_v23 = vld [vmem:[#allocation1 + $0x2] ss:$9 sm:$0xff] }
 0x198   :  { %2034 = vst [vmem:[#allocation1] sm:$0xff] %v9119_v48 }
 0x199   :  { %2035 = vst [vmem:[#allocation1 + $0x9] sm:$0xff] %v9114_v47 }
 0x19a   :  { %2032 = vst.msk [vmem:[#allocation2 + $0x24] ss:$8 sm:$0x3] %vm8238_vm2, %v2029_v23  ;;  %v6787_v23 = vld [vmem:[%s9558_s2 + $0xb4] sm:$0xff] }
 0x19b   :  { %v2721_v37 = vpop.f32.mrf.mxu1 }
 0x19c   :  { %v2726_v30 = vmax.f32 %v2637_v35, %v2721_v37  ;;  %v6800_v35 = vld [vmem:[%s9558_s2 + $0x120] sm:$0xff] }
 0x19d   :  { %v2708_v22 = vpop.f32.mrf.mxu0  ;;  %3673 = vmatpush.bf16.msrb.mxu3 %v6800_v35  ;;  %v6791_v35 = vld [vmem:[%s9558_s2 + $0xd8] sm:$0xff] }
 0x19e   :  { %v2725_v32 = vmax.f32 %v2636_v36, %v2708_v22  ;;  %v3775_v36 = vpack.c.b16 %v3762_v34, %v3762_v34  ;;  %v6804_v34 = vld [vmem:[%s9558_s2 + $0x144] sm:$0xff] }
 0x19f   :  { %v2797_v46 = vpop.f32.mrf.mxu2 }
 0x1a0   :  { %v2810_v43 = vpop.f32.mrf.mxu3  ;;  %v2814_v50 = vmax.f32 %v2725_v32, %v2797_v46  ;;  %v2037_v58 = vld [vmem:[#allocation1 + $0x3] ss:$9 sm:$0xff] }
 0x1a1   :  { %v2815_v45 = vmax.f32 %v2726_v30, %v2810_v43  ;;  %2042 = vst [vmem:[#allocation1] sm:$0xff] %v9119_v48  ;;  %v3792_v30 = vsel %vm3408_vm3, %v3775_v36, 0  ;;  %v6799_v43 = vld [vmem:[%s9558_s2 + $0x118] sm:$0xff] }
 0x1a2   :  { %v9178_v60 = vmax.f32 %v2814_v50, 0.0  ;;  %2043 = vst [vmem:[#allocation1 + $0x9] sm:$0xff] %v9114_v47  ;;  %3810 = vmatpush.bf16.msrb.mxu2 %v3792_v30  ;;  %v6780_v46 = vld [vmem:[%s9558_s2 + $0x7c] sm:$0xff]  ;;  %v6786_v50 = vld [vmem:[%s9558_s2 + $0xac] sm:$0xff]  ;;  %3674 = vmatpush.bf16.msrb.mxu3 %v6799_v43 }
 0x1a3   :  { %v9171_v13 = vmax.f32 %v2815_v45, 0.0  ;;  %v2723_v55 = vpop.f32.mrf.mxu1  ;;  %2040 = vst.msk [vmem:[#allocation2 + $0x34] ss:$8 sm:$0x3] %vm8238_vm2, %v2037_v58  ;;  %v6803_v36 = vld [vmem:[%s9558_s2 + $0x13c] sm:$0xff] }
 0x1a4   :  { %v6830_v30 = vld [vmem:[%s9558_s2 + $0x21c] sm:$0xff] }
 0x1a5   :  { %v2820_v53 = vrot.slane %v9171_v13, 7  ;;  %v2710_v57 = vpop.f32.mrf.mxu0  ;;  %v6815_v43 = vld [vmem:[%s9558_s2 + $0x1a0] sm:$0xff] }
 0x1a6   :  { %3811 = vmatpush.bf16.msrb.mxu2 %v6812_v40  ;;  %v6798_v57 = vld [vmem:[%s9558_s2 + $0x110] sm:$0xff] }
 0x1a7   :  { %v2821_v3 = vsel %vm393_vm1, %v9178_v60, %v2820_v53  ;;  %v2799_v63 = vpop.f32.mrf.mxu2  ;;  %3675 = vmatpush.bf16.msrb.mxu3 %v6798_v57  ;;  %v6813_v57 = vld [vmem:[%s9558_s2 + $0x190] sm:$0xff] }
 0x1a8   :  { %2824 = vst.msk [vmem:[#allocation2 + $0x6] ss:$8 sm:$0x3] %vm8238_vm2, %v2821_v3  ;;  %v2812_v61 = vpop.f32.mrf.mxu3  ;;  %v6785_v63 = vld [vmem:[%s9558_s2 + $0xa4] sm:$0xff] }
 0x1a9   :  { %v2045_v11 = vld [vmem:[#allocation1 + $0x4] ss:$9 sm:$0xff] }
 0x1aa   :  { %2050 = vst [vmem:[#allocation1] sm:$0xff] %v9119_v48  ;;  %v6783_v48 = vld [vmem:[%s9558_s2 + $0x94] sm:$0xff]  ;;  %3812 = vmatpush.bf16.msrb.mxu2 %v6811_v52 }
 0x1ab   :  { %2051 = vst [vmem:[#allocation1 + $0x9] sm:$0xff] %v9114_v47  ;;  %v5986_v47 = vld [vmem:[%s9558_s2 + $0xc4] sm:$0x3]  ;;  %3413 = vmatpush.bf16.msra.mxu0 %v6783_v48  ;;  %3676 = vmatpush.bf16.msrb.mxu3 %v6797_v9  ;;  %v6826_v9 = vld [vmem:[%s9558_s2 + $0x1fc] sm:$0xff] }
 0x1ac   :  { %2048 = vst.msk [vmem:[#allocation2 + $0x44] ss:$8 sm:$0x3] %vm8238_vm2, %v2045_v11  ;;  %v3378_v6 = vunpack.c.l.b16 %v5986_v47  ;;  %v6778_v11 = vld [vmem:[%s9558_s2 + $0x6c] sm:$0xff] }
 0x1ad   :  { %v6794_v47 = vld [vmem:[%s9558_s2 + $0xf0] sm:$0xff] }
 0x1ae   :  { %v3391_v21 = vpack.c.b16 %v3378_v6, %v3378_v6  ;;  %3813 = vmatpush.bf16.msrb.mxu2 %v6810_v5 }
 0x1af   :  { %v2949_v7 = vpop.f32.mrf.mxu1  ;;  %3414 = vmatpush.bf16.msra.mxu0 %v6782_v26 }
 0x1b0   :  { %v3410_v59 = vsel %vm3408_vm3, %v3391_v21, 0  ;;  %v6793_v21 = vld [vmem:[%s9558_s2 + $0xe8] sm:$0xff] }
 0x1b1   :  { %v2936_v1 = vpop.f32.mrf.mxu0  ;;  %3428 = vmatpush.bf16.msra.mxu1 %v3410_v59  ;;  %v6805_v59 = vld [vmem:[%s9558_s2 + $0x14c] sm:$0xff] }
 0x1b2   :  { %v2053_v31 = vld [vmem:[#allocation1 + $0x5] ss:$9 sm:$0xff] }
 0x1b3   :  { %v3023_v15 = vpop.f32.mrf.mxu2  ;;  %2056 = vst.msk [vmem:[#allocation2 + $0x54] ss:$8 sm:$0x3] %vm8238_vm2, %v2053_v31  ;;  %3415 = vmatpush.bf16.msra.mxu0 %v6781_v38  ;;  %v6817_v38 = vld [vmem:[%s9558_s2 + $0x1b0] sm:$0xff] }
 0x1b4   :  { %v3036_v12 = vpop.f32.mrf.mxu3  ;;  %2423 = vst [vmem:[#allocation1 + $0x9] sm:$0xff] %v9141_v18  ;;  %v3040_v37 = vmax.f32 %v2936_v1, %v3023_v15  ;;  %v6795_v15 = vld [vmem:[%s9558_s2 + $0xf8] sm:$0xff] }
 0x1b5   :  { %v3041_v2 = vmax.f32 %v2949_v7, %v3036_v12  ;;  %2422 = vst [vmem:[#allocation1] sm:$0xff] %v9144_v20  ;;  %3429 = vmatpush.bf16.msra.mxu1 %v6788_v33  ;;  %v6792_v33 = vld [vmem:[%s9558_s2 + $0xe0] sm:$0xff] }
 0x1b7   :  { %v2951_v39 = vpop.f32.mrf.mxu1  ;;  %3416 = vmatpush.bf16.msra.mxu0 %v6780_v46  ;;  %v6331_v46 = vld [vmem:[%s9558_s2 + $0x254] sm:$0x3] }
 0x1b8   :  { %v6820_v39 = vld [vmem:[%s9558_s2 + $0x1c8] sm:$0xff] }
 0x1b9   :  { %v2938_v54 = vpop.f32.mrf.mxu0  ;;  %3430 = vmatpush.bf16.msra.mxu1 %v6787_v23  ;;  %v6790_v23 = vld [vmem:[%s9558_s2 + $0xd0] sm:$0xff] }
 0x1bb   :  { %v3025_v27 = vpop.f32.mrf.mxu2  ;;  %3417 = vmatpush.bf16.msra.mxu0 %v6779_v56 }
 0x1bc   :  { %v3038_v25 = vpop.f32.mrf.mxu3  ;;  %v2425_v3 = vld [vmem:[#allocation1 + $0x1] ss:$9 sm:$0xff] }
 0x1bd   :  { %2428 = vst.msk [vmem:[#allocation2 + $0x15] ss:$8 sm:$0x3] %vm8238_vm2, %v2425_v3  ;;  %3431 = vmatpush.bf16.msra.mxu1 %v6786_v50  ;;  %v6806_v25 = vld [vmem:[%s9558_s2 + $0x154] sm:$0xff]  ;;  %v6828_v50 = vld [vmem:[%s9558_s2 + $0x20c] sm:$0xff]  ;;  %v6827_v3 = vld [vmem:[%s9558_s2 + $0x204] sm:$0xff] }
 0x1be   :  { %2430 = vst [vmem:[#allocation1] sm:$0xff] %v9144_v20  ;;  %v6818_v27 = vld [vmem:[%s9558_s2 + $0x1b8] sm:$0xff] }
 0x1bf   :  { %2431 = vst [vmem:[#allocation1 + $0x9] sm:$0xff] %v9141_v18  ;;  %3418 = vmatpush.bf16.msra.mxu0 %v6778_v11  ;;  %v6824_v11 = vld [vmem:[%s9558_s2 + $0x1e8] sm:$0xff] }
 0x1c1   :  { %3432 = vmatpush.bf16.msra.mxu1 %v6785_v63 }
 0x1c3   :  { %v3125_v22 = vpop.f32.mrf.mxu1  ;;  %v3112_v41 = vpop.f32.mrf.mxu0  ;;  %3419 = vmatpush.bf16.msra.mxu0 %v6777_v16  ;;  %v6823_v16 = vld [vmem:[%s9558_s2 + $0x1e0] sm:$0xff] }
 0x1c4   :  { %v3130_v32 = vmax.f32 %v3041_v2, %v3125_v22  ;;  %v3129_v44 = vmax.f32 %v3040_v37, %v3112_v41  ;;  %v6809_v2 = vld [vmem:[%s9558_s2 + $0x16c] sm:$0xff]  ;;  %v6831_v22 = vld [vmem:[%s9558_s2 + $0x224] sm:$0xff] }
 0x1c5   :  { %3656 = vmatpush.bf16.msrb.mxu1 %v6796_v0  ;;  %3814 = vmatpush.bf16.msrb.mxu2 %v6809_v2  ;;  %v6801_v41 = vld [vmem:[%s9558_s2 + $0x12c] sm:$0xff] }
 0x1c6   :  { %v2433_v14 = vld [vmem:[#allocation1 + $0x2] ss:$9 sm:$0xff] }
 0x1c7   :  { %v3201_v51 = vpop.f32.mrf.mxu2  ;;  %2438 = vst [vmem:[#allocation1] sm:$0xff] %v9144_v20  ;;  %3794 = vmatpush.bf16.msrb.mxu0 %v6808_v49  ;;  %v6835_v49 = vld [vmem:[%s9558_s2 + $0x244] sm:$0xff] }
 0x1c8   :  { %v3214_v45 = vpop.f32.mrf.mxu3  ;;  %v3218_v55 = vmax.f32 %v3129_v44, %v3201_v51  ;;  %2439 = vst [vmem:[#allocation1 + $0x9] sm:$0xff] %v9141_v18  ;;  %v6829_v44 = vld [vmem:[%s9558_s2 + $0x214] sm:$0xff] }
 0x1c9   :  { %v3219_v19 = vmax.f32 %v3130_v32, %v3214_v45  ;;  %3657 = vmatpush.bf16.msrb.mxu1 %v6795_v15  ;;  %2436 = vst.msk [vmem:[#allocation2 + $0x25] ss:$8 sm:$0x3] %vm8238_vm2, %v2433_v14  ;;  %v6789_v32 = vld [vmem:[%s9558_s2 + $0xc8] sm:$0xff]  ;;  %v6257_v45 = vld [vmem:[%s9558_s2 + $0x1f0] sm:$0x3] }
 0x1ca   :  { %v9282_v61 = vmax.f32 %v3218_v55, 0.0  ;;  %v3900_v52 = vunpack.c.l.b16 %v6257_v45  ;;  %v4038_v55 = vunpack.c.l.b16 %v6331_v46  ;;  %v6825_v15 = vld [vmem:[%s9558_s2 + $0x1f4] sm:$0xff]  ;;  %v6837_v46 = vld [vmem:[%s9561_s4] sm:$0xff] }
 0x1cb   :  { %v9271_v53 = vmax.f32 %v3219_v19, 0.0  ;;  %v3127_v62 = vpop.f32.mrf.mxu1  ;;  %v3114_v1 = vpop.f32.mrf.mxu0  ;;  %3795 = vmatpush.bf16.msrb.mxu0 %v6807_v17  ;;  %v6814_v19 = vld [vmem:[%s9558_s2 + $0x198] sm:$0xff] }
 0x1cc   :  { %v3913_v56 = vpack.c.b16 %v3900_v52, %v3900_v52  ;;  %v6833_v17 = vld [vmem:[%s9558_s2 + $0x234] sm:$0xff] }
 0x1cd   :  { %v3224_v58 = vrot.slane %v9271_v53, 7  ;;  %3658 = vmatpush.bf16.msrb.mxu1 %v6794_v47 }
 0x1cf   :  { %v3225_v7 = vsel %vm393_vm1, %v9282_v61, %v3224_v58  ;;  %v3203_v12 = vpop.f32.mrf.mxu2  ;;  %v2441_v26 = vld [vmem:[#allocation1 + $0x3] ss:$9 sm:$0xff]  ;;  %3796 = vmatpush.bf16.msrb.mxu0 %v6806_v25  ;;  %v4051_v58 = vpack.c.b16 %v4038_v55, %v4038_v55 }
 0x1d0   :  { %3228 = vst.msk [vmem:[#allocation2 + $0x7] ss:$8 sm:$0x3] %vm8238_vm2, %v3225_v7  ;;  %v3216_v10 = vpop.f32.mrf.mxu3  ;;  %v3930_v7 = vsel %vm3408_vm3, %v3913_v56, 0  ;;  %v6836_v12 = vld [vmem:[%s9558_s2 + $0x24c] sm:$0xff] }
 0x1d1   :  { %3659 = vmatpush.bf16.msrb.mxu1 %v6793_v21  ;;  %2446 = vst [vmem:[#allocation1] sm:$0xff] %v9144_v20  ;;  %v4068_v1 = vsel %vm3408_vm3, %v4051_v58, 0  ;;  %v6851_v55 = vld [vmem:[%s9562_s6 + $0x30] sm:$0xff] }
 0x1d2   :  { %2447 = vst [vmem:[#allocation1 + $0x9] sm:$0xff] %v9141_v18 }
 0x1d3   :  { %2444 = vst.msk [vmem:[#allocation2 + $0x35] ss:$8 sm:$0x3] %vm8238_vm2, %v2441_v26  ;;  %3797 = vmatpush.bf16.msrb.mxu0 %v6805_v59 }
 0x1d5   :  { %3660 = vmatpush.bf16.msrb.mxu1 %v6792_v33 }
 0x1d7   :  { %v3270_v48 = vld [vmem:[#allocation2] sm:$0xff]  ;;  %v3271_v6 = vld [vmem:[#allocation2 + $0x8] sm:$0xff]  ;;  %3798 = vmatpush.bf16.msrb.mxu0 %v6804_v34 }
 0x1d8   :  { %v3272_v42 = vpack.c.bf16 %v3270_v48, %v3270_v48  ;;  %v3273_v54 = vpack.c.bf16 %v3271_v6, %v3271_v6  ;;  %v6822_v6 = vld [vmem:[%s9558_s2 + $0x1d8] sm:$0xff] }
 0x1d9   :  { %v2449_v28 = vld [vmem:[#allocation1 + $0x4] ss:$9 sm:$0xff]  ;;  %3661 = vmatpush.bf16.msrb.mxu1 %v6791_v35 }
 0x1da   :  { %3527 = vmatmul.bf16.vlgmr.msra.gmra.mxu2 %v3272_v42  ;;  %6084 = vmatmul.msk.bf16.vlgmr.msra.gmra.mxu3 %vm3404_vm4, %v3273_v54  ;;  %2454 = vst [vmem:[#allocation1] sm:$0xff] %v9144_v20  ;;  %v6821_v54 = vld [vmem:[%s9558_s2 + $0x1d0] sm:$0xff] }
 0x1db   :  { %3932 = vmatpush.bf16.msra.mxu3 %v6820_v39  ;;  %2455 = vst [vmem:[#allocation1 + $0x9] sm:$0xff] %v9141_v18  ;;  %4070 = vmatpush.bf16.msra.mxu2 %v6832_v4  ;;  %v6834_v39 = vld [vmem:[%s9558_s2 + $0x23c] sm:$0xff] }
 0x1dc   :  { %2452 = vst.msk [vmem:[#allocation2 + $0x45] ss:$8 sm:$0x3] %vm8238_vm2, %v2449_v28  ;;  %3799 = vmatpush.bf16.msrb.mxu0 %v6803_v36 }
 0x1dd   :  { %3662 = vmatpush.bf16.msrb.mxu1 %v6790_v23 }
 0x1df   :  { %3933 = vmatpush.bf16.msra.mxu3 %v6819_v24  ;;  %4071 = vmatpush.bf16.msra.mxu2 %v6831_v22 }
 0x1e1   :  { %3663 = vmatpush.bf16.msrb.mxu1 %v6789_v32  ;;  %v6840_v32 = vld [vmem:[%s9561_s4 + $0x18] sm:$0xff] }
 0x1e2   :  { %v2457_v29 = vld [vmem:[#allocation1 + $0x5] ss:$9 sm:$0xff] }
 0x1e3   :  { %2826 = vst [vmem:[#allocation1] sm:$0xff] %v9178_v60  ;;  %3934 = vmatpush.bf16.msra.mxu3 %v6818_v27  ;;  %4072 = vmatpush.bf16.msra.mxu2 %v6830_v30 }
 0x1e4   :  { %2827 = vst [vmem:[#allocation1 + $0x9] sm:$0xff] %v9171_v13 }
 0x1e5   :  { %2460 = vst.msk [vmem:[#allocation2 + $0x55] ss:$8 sm:$0x3] %vm8238_vm2, %v2457_v29 }
 0x1e7   :  { %3935 = vmatpush.bf16.msra.mxu3 %v6817_v38  ;;  %4073 = vmatpush.bf16.msra.mxu2 %v6829_v44  ;;  %v6842_v38 = vld [vmem:[%s9561_s4 + $0x28] sm:$0xff] }
 0x1e8   :  { %v6838_v44 = vld [vmem:[%s9561_s4 + $0x8] sm:$0xff] }
 0x1eb   :  { %v2829_v31 = vld [vmem:[#allocation1 + $0x1] ss:$9 sm:$0xff]  ;;  %4074 = vmatpush.bf16.msra.mxu2 %v6828_v50 }
 0x1ec   :  { %2832 = vst.msk [vmem:[#allocation2 + $0x16] ss:$8 sm:$0x3] %vm8238_vm2, %v2829_v31 }
 0x1ed   :  { %2834 = vst [vmem:[#allocation1] sm:$0xff] %v9178_v60 }
 0x1ee   :  { %2835 = vst [vmem:[#allocation1 + $0x9] sm:$0xff] %v9171_v13 }
 0x1ef   :  { %4075 = vmatpush.bf16.msra.mxu2 %v6827_v3  ;;  %v6850_v3 = vld [vmem:[%s9562_s6 + $0x28] sm:$0xff] }
 0x1f3   :  { %4076 = vmatpush.bf16.msra.mxu2 %v6826_v9 }
 0x1f5   :  { %v2837_v18 = vld [vmem:[#allocation1 + $0x2] ss:$9 sm:$0xff] }
 0x1f6   :  { %2842 = vst [vmem:[#allocation1] sm:$0xff] %v9178_v60 }
 0x1f7   :  { %2843 = vst [vmem:[#allocation1 + $0x9] sm:$0xff] %v9171_v13  ;;  %4077 = vmatpush.bf16.msra.mxu2 %v6825_v15 }
 0x1f8   :  { %2840 = vst.msk [vmem:[#allocation2 + $0x26] ss:$8 sm:$0x3] %vm8238_vm2, %v2837_v18 }
 0x1fe   :  { %v2845_v20 = vld [vmem:[#allocation1 + $0x3] ss:$9 sm:$0xff] }
 0x1ff   :  { %2850 = vst [vmem:[#allocation1] sm:$0xff] %v9178_v60 }
 0x200   :  { %2851 = vst [vmem:[#allocation1 + $0x9] sm:$0xff] %v9171_v13 }
 0x201   :  { %2848 = vst.msk [vmem:[#allocation2 + $0x36] ss:$8 sm:$0x3] %vm8238_vm2, %v2845_v20 }
 0x207   :  { %v2853_v37 = vld [vmem:[#allocation1 + $0x4] ss:$9 sm:$0xff] }
 0x208   :  { %2858 = vst [vmem:[#allocation1] sm:$0xff] %v9178_v60  ;;  %v6802_v60 = vld [vmem:[%s9558_s2 + $0x134] sm:$0xff] }
 0x209   :  { %2859 = vst [vmem:[#allocation1 + $0x9] sm:$0xff] %v9171_v13  ;;  %v6816_v13 = vld [vmem:[%s9558_s2 + $0x1a8] sm:$0xff]  ;;  %3800 = vmatpush.bf16.msrb.mxu0 %v6802_v60  ;;  %v6841_v60 = vld [vmem:[%s9561_s4 + $0x20] sm:$0xff] }
 0x20a   :  { %2856 = vst.msk [vmem:[#allocation2 + $0x46] ss:$8 sm:$0x3] %vm8238_vm2, %v2853_v37  ;;  %3936 = vmatpush.bf16.msra.mxu3 %v6816_v13  ;;  %v6844_v37 = vld [vmem:[%s9561_s4 + $0x38] sm:$0xff] }
 0x20d   :  { %3801 = vmatpush.bf16.msrb.mxu0 %v6801_v41 }
 0x20e   :  { %3937 = vmatpush.bf16.msra.mxu3 %v6815_v43 }
 0x210   :  { %v2861_v40 = vld [vmem:[#allocation1 + $0x5] ss:$9 sm:$0xff] }
 0x211   :  { %3230 = vst [vmem:[#allocation1] sm:$0xff] %v9282_v61 }
 0x212   :  { %3231 = vst [vmem:[#allocation1 + $0x9] sm:$0xff] %v9271_v53  ;;  %3938 = vmatpush.bf16.msra.mxu3 %v6814_v19 }
 0x213   :  { %2864 = vst.msk [vmem:[#allocation2 + $0x56] ss:$8 sm:$0x3] %vm8238_vm2, %v2861_v40  ;;  %v6839_v40 = vld [vmem:[%s9561_s4 + $0x10] sm:$0xff] }
 0x216   :  { %3939 = vmatpush.bf16.msra.mxu3 %v6813_v57 }
 0x219   :  { %v3233_v51 = vld [vmem:[#allocation1 + $0x1] ss:$9 sm:$0xff] }
 0x21a   :  { %3236 = vst.msk [vmem:[#allocation2 + $0x17] ss:$8 sm:$0x3] %vm8238_vm2, %v3233_v51  ;;  %v6852_v51 = vld [vmem:[%s9562_s6 + $0x38] sm:$0xff] }
 0x21b   :  { %3238 = vst [vmem:[#allocation1] sm:$0xff] %v9282_v61 }
 0x21c   :  { %3239 = vst [vmem:[#allocation1 + $0x9] sm:$0xff] %v9271_v53 }
 0x221   :  { %v3299_v62 = vld [vmem:[#allocation2 + $0x10] sm:$0xff]  ;;  %v3300_v63 = vld [vmem:[#allocation2 + $0x18] sm:$0xff] }
 0x222   :  { %v3301_v0 = vpack.c.bf16 %v3299_v62, %v3299_v62  ;;  %v3302_v5 = vpack.c.bf16 %v3300_v63, %v3300_v63  ;;  %v6849_v63 = vld [vmem:[%s9562_s6 + $0x20] sm:$0xff] }
 0x223   :  { %v3241_v10 = vld [vmem:[#allocation1 + $0x2] ss:$9 sm:$0xff] }
 0x224   :  { %3420 = vmatmul.bf16.vlgmr.msra.gmra.mxu0 %v3301_v0  ;;  %6035 = vmatmul.msk.bf16.vlgmr.msra.gmra.mxu1 %vm3404_vm4, %v3302_v5  ;;  %3244 = vst.msk [vmem:[#allocation2 + $0x27] ss:$8 sm:$0x3] %vm8238_vm2, %v3241_v10 }
 0x225   :  { %3246 = vst [vmem:[#allocation1] sm:$0xff] %v9282_v61  ;;  %3948 = vmatpush.bf16.msra.mxu1 %v3930_v7  ;;  %4086 = vmatpush.bf16.msra.mxu0 %v4068_v1  ;;  %v6848_v1 = vld [vmem:[%s9562_s6 + $0x18] sm:$0xff] }
 0x226   :  { %3247 = vst [vmem:[#allocation1 + $0x9] sm:$0xff] %v9271_v53 }
 0x229   :  { %3949 = vmatpush.bf16.msra.mxu1 %v6824_v11  ;;  %4087 = vmatpush.bf16.msra.mxu0 %v6836_v12 }
 0x22b   :  { %v3546_v14 = vld [vmem:[#allocation2 + $0x28] sm:$0xff]  ;;  %v3545_v42 = vld [vmem:[#allocation2 + $0x20] sm:$0xff] }
 0x22c   :  { %v3548_v47 = vpack.c.bf16 %v3546_v14, %v3546_v14  ;;  %v3547_v21 = vpack.c.bf16 %v3545_v42, %v3545_v42  ;;  %v6853_v42 = vld [vmem:[%s9559_s3] ss:$0 sm:$0xff] }
 0x22d   :  { %v3249_v48 = vld [vmem:[#allocation1 + $0x3] ss:$9 sm:$0xff]  ;;  %3950 = vmatpush.bf16.msra.mxu1 %v6823_v16  ;;  %4088 = vmatpush.bf16.msra.mxu0 %v6835_v49 }
 0x22e   :  { %6158 = vmatmul.msk.bf16.vlgmr.msrb.gmra.mxu3 %vm3404_vm4, %v3548_v47  ;;  %3252 = vst.msk [vmem:[#allocation2 + $0x37] ss:$8 sm:$0x3] %vm8238_vm2, %v3249_v48  ;;  %v6847_v49 = vld [vmem:[%s9562_s6 + $0x10] sm:$0xff] }
 0x22f   :  { %3254 = vst [vmem:[#allocation1] sm:$0xff] %v9282_v61  ;;  %4255 = vmatpush.bf16.msrb.mxu3 %v6852_v51 }
 0x230   :  { %3255 = vst [vmem:[#allocation1 + $0x9] sm:$0xff] %v9271_v53 }
 0x231   :  { %3951 = vmatpush.bf16.msra.mxu1 %v6822_v6  ;;  %4089 = vmatpush.bf16.msra.mxu0 %v6834_v39 }
 0x233   :  { %4256 = vmatpush.bf16.msrb.mxu3 %v6851_v55 }
 0x234   :  { %3664 = vmatmul.bf16.vlgmr.msrb.gmra.mxu1 %v3547_v21 }
 0x235   :  { %v3683_v24 = vld [vmem:[#allocation2 + $0x30] sm:$0xff]  ;;  %v3684_v25 = vld [vmem:[#allocation2 + $0x38] sm:$0xff]  ;;  %3952 = vmatpush.bf16.msra.mxu1 %v6821_v54  ;;  %4090 = vmatpush.bf16.msra.mxu0 %v6833_v17 }
 0x236   :  { %v3685_v26 = vpack.c.bf16 %v3683_v24, %v3683_v24  ;;  %v3686_v59 = vpack.c.bf16 %v3684_v25, %v3684_v25 }
 0x237   :  { %v3257_v28 = vld [vmem:[#allocation1 + $0x4] ss:$9 sm:$0xff]  ;;  %4257 = vmatpush.bf16.msrb.mxu3 %v6850_v3 }
 0x238   :  { %3802 = vmatmul.bf16.vlgmr.msrb.gmra.mxu0 %v3685_v26  ;;  %6232 = vmatmul.msk.bf16.vlgmr.msrb.gmra.mxu2 %vm3404_vm4, %v3686_v59  ;;  %3260 = vst.msk [vmem:[#allocation2 + $0x47] ss:$8 sm:$0x3] %vm8238_vm2, %v3257_v28  ;;  %v6846_v59 = vld [vmem:[%s9562_s6 + $0x8] sm:$0xff]  ;;  %v6845_v28 = vld [vmem:[%s9562_s6] sm:$0xff] }
 0x239   :  { %3262 = vst [vmem:[#allocation1] sm:$0xff] %v9282_v61  ;;  %4172 = vmatpush.bf16.msrb.mxu1 %v6844_v37 }
 0x23a   :  { %3263 = vst [vmem:[#allocation1 + $0x9] sm:$0xff] %v9271_v53 }
 0x23b   :  { %4258 = vmatpush.bf16.msrb.mxu3 %v6849_v63 }
 0x23d   :  { %4173 = vmatpush.bf16.msrb.mxu1 %v6843_v8 }
 0x23f   :  { %v3821_v29 = vld [vmem:[#allocation2 + $0x40] sm:$0xff]  ;;  %v3822_v31 = vld [vmem:[#allocation2 + $0x48] sm:$0xff]  ;;  %4259 = vmatpush.bf16.msrb.mxu3 %v6848_v1 }
 0x240   :  { %v3823_v18 = vpack.c.bf16 %v3821_v29, %v3821_v29  ;;  %v3824_v33 = vpack.c.bf16 %v3822_v31, %v3822_v31  ;;  %v6854_v29 = vld [vmem:[%s9560_s5] ss:$0 sm:$0xff] }
 0x241   :  { %v3265_v20 = vld [vmem:[#allocation1 + $0x5] ss:$9 sm:$0xff]  ;;  %4174 = vmatpush.bf16.msrb.mxu1 %v6842_v38 }
 0x242   :  { %3940 = vmatmul.bf16.vlgmr.msra.gmra.mxu3 %v3823_v18  ;;  %3268 = vst.msk [vmem:[#allocation2 + $0x57] ss:$8 sm:$0x3] %vm8238_vm2, %v3265_v20 }
 0x243   :  { %4260 = vmatpush.bf16.msrb.mxu3 %v6847_v49 }
 0x244   :  { %6306 = vmatmul.msk.bf16.vlgmr.msra.gmra.mxu1 %vm3404_vm4, %v3824_v33 }
 0x245   :  { %4175 = vmatpush.bf16.msrb.mxu1 %v6841_v60 }
 0x247   :  { %4261 = vmatpush.bf16.msrb.mxu3 %v6846_v59 }
 0x249   :  { %v3959_v34 = vld [vmem:[#allocation2 + $0x50] sm:$0xff]  ;;  %v3960_v2 = vld [vmem:[#allocation2 + $0x58] sm:$0xff]  ;;  %4176 = vmatpush.bf16.msrb.mxu1 %v6840_v32 }
 0x24a   :  { %v3961_v27 = vpack.c.bf16 %v3959_v34, %v3959_v34  ;;  %v3962_v4 = vpack.c.bf16 %v3960_v2, %v3960_v2  ;;  %v6855_v2 = vld [vmem:[%s9563_s7] ss:$0 sm:$0xff] }
 0x24b   :  { %4262 = vmatpush.bf16.msrb.mxu3 %v6845_v28 }
 0x24c   :  { %4078 = vmatmul.bf16.vlgmr.msra.gmra.mxu2 %v3961_v27  ;;  %6380 = vmatmul.msk.bf16.vlgmr.msra.gmra.mxu0 %vm3404_vm4, %v3962_v4 }
 0x24d   :  { %4177 = vmatpush.bf16.msrb.mxu1 %v6839_v40 }
 0x251   :  { %4178 = vmatpush.bf16.msrb.mxu1 %v6838_v44 }
 0x255   :  { %4179 = vmatpush.bf16.msrb.mxu1 %v6837_v46 }
 0x25d   :  { %v3528_v61 = vpop.f32.mrf.mxu2  ;;  %v3541_v53 = vpop.f32.mrf.mxu3 }
 0x265   :  { %v3530_v35 = vpop.f32.mrf.mxu2  ;;  %v3543_v36 = vpop.f32.mrf.mxu3 }
 0x2a1   :  { %v3421_v22 = vpop.f32.mrf.mxu0  ;;  %v3434_v23 = vpop.f32.mrf.mxu1 }
 0x2a2   :  { %v3435_v58 = vadd.f32 %v3434_v23, %v3421_v22 }
 0x2a4   :  { %v3529_v5 = vadd.f32 %v3528_v61, %v3435_v58 }
 0x2a6   :  { %v3542_v11 = vadd.f32 %v3541_v53, %v3529_v5 }
 0x2a9   :  { %v3423_v13 = vpop.f32.mrf.mxu0  ;;  %v3436_v30 = vpop.f32.mrf.mxu1 }
 0x2b1   :  { %v3678_v41 = vpop.f32.mrf.mxu3  ;;  %v3665_v43 = vpop.f32.mrf.mxu1 }
 0x2b2   :  { %v3679_v7 = vadd.f32 %v3678_v41, %v3665_v43 }
 0x2b4   :  { %v3682_v15 = vadd.f32 %v3679_v7, %v3542_v11 }
 0x2b5   :  { %v3803_v45 = vpop.f32.mrf.mxu0 }
 0x2b9   :  { %v3680_v19 = vpop.f32.mrf.mxu3  ;;  %v3667_v50 = vpop.f32.mrf.mxu1 }
 0x2bb   :  { %v3816_v52 = vpop.f32.mrf.mxu2 }
 0x2bc   :  { %v3817_v12 = vadd.f32 %v3816_v52, %v3803_v45 }
 0x2bd   :  { %v3805_v57 = vpop.f32.mrf.mxu0 }
 0x2be   :  { %v3820_v47 = vadd.f32 %v3817_v12, %v3682_v15 }
 0x2c1   :  { %v3954_v56 = vpop.f32.mrf.mxu1 }
 0x2c3   :  { %v3818_v62 = vpop.f32.mrf.mxu2 }
 0x2c5   :  { %v3941_v0 = vpop.f32.mrf.mxu3 }
 0x2c6   :  { %v3955_v16 = vadd.f32 %v3954_v56, %v3941_v0 }
 0x2c8   :  { %v3958_v6 = vadd.f32 %v3955_v16, %v3820_v47 }
 0x2c9   :  { %v4092_v9 = vpop.f32.mrf.mxu0  ;;  %v3956_v10 = vpop.f32.mrf.mxu1 }
 0x2cd   :  { %v3943_v14 = vpop.f32.mrf.mxu3 }
 0x2cf   :  { %v4079_v48 = vpop.f32.mrf.mxu2 }
 0x2d0   :  { %v4093_v39 = vadd.f32 %v4092_v9, %v4079_v48 }
 0x2d1   :  { %v4094_v54 = vpop.f32.mrf.mxu0 }
 0x2d2   :  { %v4096_v17 = vadd.f32 %v4093_v39, %v3958_v6 }
 0x2d4   :  { %v4101_v21 = vadd.f32 %v6853_v42, %v4096_v17 }
 0x2d6   :  { %v4102_v24 = vmax.f32 %v4101_v21, 0.0 }
 0x2d7   :  { %v4081_v25 = vpop.f32.mrf.mxu2 }
 0x2d8   :  { %v4103_v26 = vpack.c.bf16 %v4102_v24, %v4102_v24 }
 0x2da   :  { %4180 = vmatmul.bf16.vlgmr.msrb.gmra.mxu1 %v4103_v26 }
 0x357   :  { %v4181_v31 = vpop.f32.mrf.mxu1 }
 0x358   :  { %v4182_v18 = vadd.f32 %v6854_v29, %v4181_v31 }
 0x35a   :  { %v4185_v20 = vmax.f32 %v4182_v18, 0.0 }
 0x35c   :  { %v4186_v33 = vpack.c.bf16 %v4185_v20, %v4185_v20 }
 0x35e   :  { %4263 = vmatmul.bf16.vlgmr.msrb.gmra.mxu3 %v4186_v33 }
 0x35f   :  { %v4183_v34 = vpop.f32.mrf.mxu1 }
 0x3e1   :  { %v4264_v27 = vpop.f32.mrf.mxu3 }
 0x3e2   :  { %v4265_v4 = vadd.f32 %v6855_v2, %v4264_v27 }
 0x3e4   :  { %4268 = vst [vmem:[%s9564_s8] sm:$0xff] %v4265_v4 }
 0x3e9   :  { %v4266_v61 = vpop.f32.mrf.mxu3 }

</bundles_post_ra>
